<compile_context>
chip_gen: v7x
topology: tpu7x:2x2x1
jax: 0.10.0
libtpu: 0.0.40
codegen_flags: <defaults>
</compile_context>

<pallas_src>
import math
import functools

import jax
import jax.numpy as jnp
from jax.experimental import pallas as pl
from jax.experimental.pallas import tpu as pltpu

_PI_TORCH = 3.14159265   # the constant literally used in AngleLinear.forward
_M = 4                   # AngleLinear default margin (phiflag=True path)
_ALPHA = 12.0            # ScaleResNet34 default alpha
_EPS_NORMALIZE = 1e-12   # F.normalize default eps
_RENORM_MAX = 1e-5
_RENORM_EPS = 1e-7       # torch.renorm internal eps
_RENORM_SCALE = 1e5


def _round_up(a, b):
    return ((a + b - 1) // b) * b


# ---------------------------------------------------------------------------
# Kernel body: one (row_tile, col_tile) output block per grid step.
# Grid = (row_blocks, col_blocks): rows OUTER ("parallel"), cols INNER ("arbitrary").
# x_ref:     (TN, D)  original, un-normalized input rows (resident across inner loop)
# w_ref:     (D, TC)  column-unit-normalized AngleLinear weight (pre-computed, bf16)
# xunit_ref: (TN, D)  VMEM scratch — unit-normalized rows (written once per row block)
# xlen_ref:  (TN, 1)  VMEM scratch — torch xlen (== alpha except for eps-clamped rows)
# ---------------------------------------------------------------------------
def _scale_angle_kernel(x_ref, w_ref, cos_ref, phi_ref, xunit_ref, xlen_ref,
                        *, alpha, m):
    # Row normalization: once per row block (column axis is the inner, "arbitrary" axis).
    @pl.when(pl.program_id(1) == 0)
    def _():
        xf = x_ref[...].astype(jnp.float32)                              # (TN, D)
        row_norm = jnp.sqrt(jnp.sum(xf * xf, axis=1, keepdims=True))     # (TN, 1)
        inv = 1.0 / jnp.maximum(row_norm, _EPS_NORMALIZE)                # exact; off hot path
        # torch: xlen = ||alpha * F.normalize(x)|| == alpha for ||x|| >= eps,
        #        and alpha*||x||/eps below eps — keep that eps-clamped path.
        xlen_ref[...] = alpha * (row_norm * inv)
        xunit_ref[...] = (xf * inv).astype(xunit_ref.dtype)              # bf16 for the MXU

    # MXU: unit rows x unit columns -> cos(theta) directly, f32 accumulation.
    cos_theta = jnp.dot(xunit_ref[...], w_ref[...],
                        preferred_element_type=jnp.float32)              # (TN, TC)
    cos_theta = jnp.clip(cos_theta, -1.0, 1.0)

    # mlambda[4]: cos(4*theta) = 8c^4 - 8c^2 + 1 = 8*c2*(c2 - 1) + 1
    c2 = cos_theta * cos_theta
    cos_m_theta = 8.0 * (c2 * (c2 - 1.0)) + 1.0
    neg_cmt = -cos_m_theta

    # phi = (-1)^k * cos(m*theta) - 2k with k = floor(m*acos(c)/3.14159265).
    # acos is strictly decreasing on [-1,1], so k >= j  <=>  c <= cos(j*PI_T/m):
    # select the per-interval expression with a short where-chain (no acos/floor).
    phi_theta = cos_m_theta                                              # k = 0
    for j in range(1, m + 1):
        cand = (cos_m_theta if j % 2 == 0 else neg_cmt) - 2.0 * j
        phi_theta = jnp.where(cos_theta <= math.cos(j * _PI_TORCH / m), cand, phi_theta)

    xlen = xlen_ref[...]                                                 # (TN, 1) broadcast
    cos_ref[...] = (cos_theta * xlen).astype(cos_ref.dtype)
    phi_ref[...] = (phi_theta * xlen).astype(phi_ref.dtype)


# ---------------------------------------------------------------------------
# Wrapper
# ---------------------------------------------------------------------------
def scale_resnet34_forward(x, weight, *, alpha=_ALPHA, row_tile=256, col_tile=512,
                           matmul_dtype=jnp.bfloat16, out_dtype=jnp.float32,
                           single_step_max_bytes=4 * 1024 * 1024):
    """ScaleResNet34.forward (loss='angular'): returns (cos_theta, phi_theta), each (N, C)."""
    n, d = x.shape
    d2, c = weight.shape
    assert d == d2

    # ---- hoisted, x-independent weight work (once per call, plain XLA) ----
    # ww = w.renorm(2, 1, 1e-05).mul(1e5); fold the /wlen into the weight so the
    # kernel's matmul produces cos(theta) directly.
    w32 = weight.astype(jnp.float32)
    col_norm = jnp.sqrt(jnp.sum(w32 * w32, axis=0, keepdims=True))        # (1, C)
    factor = jnp.where(col_norm > _RENORM_MAX,
                       _RENORM_MAX / (col_norm + _RENORM_EPS), 1.0)
    ww = w32 * factor * _RENORM_SCALE
    wlen = jnp.sqrt(jnp.sum(ww * ww, axis=0, keepdims=True))              # (1, C)
    ww_unit = (ww / jnp.maximum(wlen, 1e-30)).astype(matmul_dtype)        # unit cols, bf16 MXU path

    # ---- tile selection ----------------------------------------------------
    c_min = _round_up(c, 128)          # lane-dense output columns
    n_min = _round_up(n, 8)            # sublane-aligned rows
    mm_bytes = jnp.dtype(matmul_dtype).itemsize
    out_bytes = jnp.dtype(out_dtype).itemsize
    full_bytes = (n_min * d * x.dtype.itemsize            # x
                  + d * c_min * mm_bytes                   # weight
                  + 2 * n_min * c_min * out_bytes          # both outputs
                  + n_min * d * mm_bytes                   # x_unit scratch
                  + n_min * 128 * 4)                       # xlen scratch (lane-padded)
    if full_bytes <= single_step_max_bytes:
        # Whole (padded) problem in one grid step: no per-step overhead, no re-DMA.
        row_tile, col_tile = n_min, c_min
    else:
        col_tile = max(128, (min(col_tile, c_min) // 128) * 128)
        row_tile = max(8, (min(row_tile, n_min) // 8) * 8)

    c_pad = _round_up(c, col_tile)
    n_pad = _round_up(n, row_tile)
    if c_pad != c:
        ww_unit = jnp.pad(ww_unit, ((0, 0), (0, c_pad - c)))   # zero cols -> sliced off below
    if n_pad != n:
        x = jnp.pad(x, ((0, n_pad - n), (0, 0)))               # zero rows -> sliced off below

    grid = (n_pad // row_tile, c_pad // col_tile)   # rows OUTER (parallel), cols INNER (arbitrary)

    # VMEM budget from the actual double-buffered footprint (+ scratch), 2x headroom,
    # capped well below the 64 MiB physical per-TC VMEM on v7x.
    step_bytes = 2 * (row_tile * d * x.dtype.itemsize
                      + d * col_tile * mm_bytes
                      + 2 * row_tile * col_tile * out_bytes) \
                 + row_tile * d * mm_bytes + row_tile * 128 * 4
    vmem_limit = int(min(32 * 1024 * 1024, max(8 * 1024 * 1024, 2 * step_bytes)))

    kernel = functools.partial(_scale_angle_kernel, alpha=float(alpha), m=_M)
    out_shape = (jax.ShapeDtypeStruct((n_pad, c_pad), out_dtype),
                 jax.ShapeDtypeStruct((n_pad, c_pad), out_dtype))

    cos_theta, phi_theta = pl.pallas_call(
        kernel,
        out_shape=out_shape,
        grid=grid,
        in_specs=[pl.BlockSpec((row_tile, d), lambda i, j: (i, 0)),       # x rows: resident over j
                  pl.BlockSpec((d, col_tile), lambda i, j: (0, j))],      # weight column tiles
        out_specs=(pl.BlockSpec((row_tile, col_tile), lambda i, j: (i, j)),
                   pl.BlockSpec((row_tile, col_tile), lambda i, j: (i, j))),
        scratch_shapes=[pltpu.VMEM((row_tile, d), matmul_dtype),          # x_unit (per row block)
                        pltpu.VMEM((row_tile, 1), jnp.float32)],          # xlen
        compiler_params=pltpu.CompilerParams(
            dimension_semantics=("parallel", "arbitrary"),
            vmem_limit_bytes=vmem_limit),
    )(x, ww_unit)

    if n_pad != n or c_pad != c:
        cos_theta = cos_theta[:n, :c]
        phi_theta = phi_theta[:n, :c]
    return cos_theta, phi_theta


def init_angle_linear_weight(key, in_features, out_features):
    """AngleLinear.__init__: uniform(-1,1) then renorm_(2, 1, 1e-5).mul_(1e5)."""
    w = jax.random.uniform(key, (in_features, out_features),
                           dtype=jnp.float32, minval=-1.0, maxval=1.0)
    col_norm = jnp.sqrt(jnp.sum(w * w, axis=0, keepdims=True))
    factor = jnp.where(col_norm > _RENORM_MAX,
                       _RENORM_MAX / (col_norm + _RENORM_EPS), 1.0)
    return w * factor * _RENORM_SCALE


def _reference_forward(x, weight, alpha, matmul_dtype=jnp.float32, m=_M):
    """Pure-JAX replica of ScaleResNet34.forward (angular path).

    `matmul_dtype` rounds the two matmul operands the same way the kernel does
    (bf16 on the MXU) so the check isolates kernel structure from the documented
    low-precision-matmul approximation.
    """
    x32 = x.astype(jnp.float32)
    xn = x32 / jnp.maximum(jnp.sqrt(jnp.sum(x32 * x32, axis=1, keepdims=True)),
                           _EPS_NORMALIZE)
    xs = alpha * xn
    w32 = weight.astype(jnp.float32)
    col_norm = jnp.sqrt(jnp.sum(w32 * w32, axis=0, keepdims=True))
    factor = jnp.where(col_norm > _RENORM_MAX,
                       _RENORM_MAX / (col_norm + _RENORM_EPS), 1.0)
    ww = w32 * factor * _RENORM_SCALE
    xlen = jnp.sqrt(jnp.sum(xs * xs, axis=1, keepdims=True))              # (N, 1)
    wlen = jnp.sqrt(jnp.sum(ww * ww, axis=0, keepdims=True))              # (1, C)
    xq = (xs / xlen).astype(matmul_dtype).astype(jnp.float32)
    wq = (ww / wlen).astype(matmul_dtype).astype(jnp.float32)
    cos = jnp.clip(xq @ wq, -1.0, 1.0)
    cos_m = 8.0 * cos ** 4 - 8.0 * cos ** 2 + 1.0
    theta = jnp.arccos(cos)
    k = jnp.floor(m * theta / _PI_TORCH)
    sign = jnp.where(jnp.mod(k, 2.0) == 0.0, 1.0, -1.0)                   # (-1)**k for float k
    phi = sign * cos_m - 2.0 * k
    return cos * xlen, phi * xlen


if __name__ == "__main__":
    # Shapes consistent with the module defaults: inplanes=16 -> D = 8*16 = 128
    # (AngleLinear in_features), n_labels=1000 (padded to 1024 internally), batch N=64.
    N, INPLANES, N_LABELS = 64, 16, 1000
    D = 8 * INPLANES

    key = jax.random.PRNGKey(0)
    kx, kw = jax.random.split(key)
    x = jax.random.normal(kx, (N, D), dtype=jnp.float32)
    w = init_angle_linear_weight(kw, D, N_LABELS)

    # Reference follows torch exactly, with the same bf16 rounding of the matmul operands.
    cos_ref, phi_ref = _reference_forward(x, w, _ALPHA, matmul_dtype=jnp.bfloat16)

    # 1) Default performance path: single grid step, bf16 MXU matmul, f32 accumulation.
    cos_theta, phi_theta = scale_resnet34_forward(x, w, alpha=_ALPHA)
    jax.block_until_ready((cos_theta, phi_theta))
    assert cos_theta.shape == (N, N_LABELS) and phi_theta.shape == (N, N_LABELS)
    assert cos_theta.dtype == jnp.float32 and phi_theta.dtype == jnp.float32
    cos_err = float(jnp.max(jnp.abs(cos_theta - cos_ref)))
    phi_err = float(jnp.max(jnp.abs(phi_theta - phi_ref)))
    assert cos_err < 1e-2, f"cos_theta mismatch (single-step): {cos_err}"
    assert phi_err < 1e-2, f"phi_theta mismatch (single-step): {phi_err}"

    # 2) Forced multi-step tiled path: exercises the pl.when row-norm scratch reuse
    #    across the inner column loop plus the row/column padding + slicing.
    cos2, phi2 = scale_resnet34_forward(x, w, alpha=_ALPHA, row_tile=32, col_tile=256,
                                        single_step_max_bytes=0)
    jax.block_until_ready((cos2, phi2))
    cos_err2 = float(jnp.max(jnp.abs(cos2 - cos_ref)))
    phi_err2 = float(jnp.max(jnp.abs(phi2 - phi_ref)))
    assert cos_err2 < 1e-2, f"cos_theta mismatch (tiled): {cos_err2}"
    assert phi_err2 < 1e-2, f"phi_theta mismatch (tiled): {phi_err2}"

    print("KERNEL_OK")
</pallas_src>

<mosaic_0001>
module attributes {stable_mosaic.version = 11 : i64} {
  func.func @_scale_angle_kernel(%arg0: i32, %arg1: i32, %arg2: memref<64x128xf32, #tpu.memory_space<vmem>>, %arg3: memref<128x1024xbf16, #tpu.memory_space<vmem>>, %arg4: memref<64x1024xf32, #tpu.memory_space<vmem>>, %arg5: memref<64x1024xf32, #tpu.memory_space<vmem>>, %arg6: memref<64x128xbf16, #tpu.memory_space<vmem>>, %arg7: memref<64x1xf32, #tpu.memory_space<vmem>>) attributes {dimension_semantics = [#tpu.dimension_semantics<parallel>, #tpu.dimension_semantics<arbitrary>], iteration_bounds = array<i64: 1, 1>, scalar_prefetch = 0 : i64, scratch_operands = 2 : i64, tpu.core_type = #tpu.core_type<tc>, window_params = [{transform_indices = @transform_0, window_bounds = array<i64: 64, 128>}, {transform_indices = @transform_1, window_bounds = array<i64: 128, 1024>}, {transform_indices = @transform_2, window_bounds = array<i64: 64, 1024>}, {transform_indices = @transform_3, window_bounds = array<i64: 64, 1024>}]} {
    %c0_i32 = arith.constant 0 : i32
    %0 = arith.cmpi eq, %arg1, %c0_i32 : i32
    %1 = arith.extui %0 : i1 to i32
    %c0_i32_0 = arith.constant 0 : i32
    %2 = arith.cmpi ne, %1, %c0_i32_0 : i32
    scf.if %2 {
      %c0_24 = arith.constant 0 : index
      %c0_25 = arith.constant 0 : index
      %47 = vector.load %arg2[%c0_24, %c0_25] : memref<64x128xf32, #tpu.memory_space<vmem>>, vector<64x128xf32>
      %48 = arith.mulf %47, %47 : vector<64x128xf32>
      %cst_26 = arith.constant dense<0.000000e+00> : vector<64xf32>
      %49 = vector.multi_reduction <add>, %48, %cst_26 [1] : vector<64x128xf32> to vector<64xf32>
      %50 = vector.shape_cast %49 : vector<64xf32> to vector<64x1xf32>
      %51 = math.sqrt %50 : vector<64x1xf32>
      %cst_27 = arith.constant 9.99999996E-13 : f32
      %52 = vector.broadcast %cst_27 : f32 to vector<64x1xf32>
      %53 = arith.maximumf %51, %52 : vector<64x1xf32>
      %cst_28 = arith.constant 1.000000e+00 : f32
      %54 = vector.broadcast %cst_28 : f32 to vector<64x1xf32>
      %55 = arith.divf %54, %53 : vector<64x1xf32>
      %56 = arith.mulf %51, %55 : vector<64x1xf32>
      %cst_29 = arith.constant 1.200000e+01 : f32
      %57 = vector.broadcast %cst_29 : f32 to vector<64x1xf32>
      %58 = arith.mulf %57, %56 : vector<64x1xf32>
      %c0_30 = arith.constant 0 : index
      %c0_31 = arith.constant 0 : index
      %59 = vector.load %arg7[%c0_30, %c0_31] : memref<64x1xf32, #tpu.memory_space<vmem>>, vector<64x1xf32>
      tpu.vector_store %arg7[%c0_30, %c0_31], %58 {strides = array<i32>} : memref<64x1xf32, #tpu.memory_space<vmem>>, vector<64x1xf32>,
      %60 = vector.broadcast %55 : vector<64x1xf32> to vector<64x128xf32>
      %61 = arith.mulf %47, %60 : vector<64x128xf32>
      %62 = arith.truncf %61 : vector<64x128xf32> to vector<64x128xbf16>
      %c0_32 = arith.constant 0 : index
      %c0_33 = arith.constant 0 : index
      %63 = vector.load %arg6[%c0_32, %c0_33] : memref<64x128xbf16, #tpu.memory_space<vmem>>, vector<64x128xbf16>
      tpu.vector_store %arg6[%c0_32, %c0_33], %62 {strides = array<i32>} : memref<64x128xbf16, #tpu.memory_space<vmem>>, vector<64x128xbf16>,
    } else {
    }
    %c0 = arith.constant 0 : index
    %c0_1 = arith.constant 0 : index
    %3 = vector.load %arg6[%c0, %c0_1] : memref<64x128xbf16, #tpu.memory_space<vmem>>, vector<64x128xbf16>
    %c0_2 = arith.constant 0 : index
    %c0_3 = arith.constant 0 : index
    %4 = vector.load %arg3[%c0_2, %c0_3] : memref<128x1024xbf16, #tpu.memory_space<vmem>>, vector<128x1024xbf16>
    %cst = arith.constant dense<0.000000e+00> : vector<64x1024xf32>
    %5 = tpu.matmul %3, %4, %cst {dimension_numbers = #tpu.dot_dimension_numbers<[1], [0], [0], [1], [0, 0, 1, 1], [], []>} : vector<64x128xbf16>, vector<128x1024xbf16>, vector<64x1024xf32> -> vector<64x1024xf32>
    %cst_4 = arith.constant -1.000000e+00 : f32
    %cst_5 = arith.constant 1.000000e+00 : f32
    %6 = vector.broadcast %cst_4 : f32 to vector<64x1024xf32>
    %7 = arith.maximumf %6, %5 : vector<64x1024xf32>
    %8 = vector.broadcast %cst_5 : f32 to vector<64x1024xf32>
    %9 = arith.minimumf %8, %7 : vector<64x1024xf32>
    %10 = arith.mulf %9, %9 : vector<64x1024xf32>
    %cst_6 = arith.constant 1.000000e+00 : f32
    %11 = vector.broadcast %cst_6 : f32 to vector<64x1024xf32>
    %12 = arith.subf %10, %11 : vector<64x1024xf32>
    %13 = arith.mulf %10, %12 : vector<64x1024xf32>
    %cst_7 = arith.constant 8.000000e+00 : f32
    %14 = vector.broadcast %cst_7 : f32 to vector<64x1024xf32>
    %15 = arith.mulf %14, %13 : vector<64x1024xf32>
    %cst_8 = arith.constant 1.000000e+00 : f32
    %16 = vector.broadcast %cst_8 : f32 to vector<64x1024xf32>
    %17 = arith.addf %15, %16 : vector<64x1024xf32>
    %cst_9 = arith.constant 0.000000e+00 : f32
    %18 = vector.broadcast %cst_9 : f32 to vector<64x1024xf32>
    %19 = arith.subf %18, %17 : vector<64x1024xf32>
    %cst_10 = arith.constant 2.000000e+00 : f32
    %20 = vector.broadcast %cst_10 : f32 to vector<64x1024xf32>
    %21 = arith.subf %19, %20 : vector<64x1024xf32>
    %cst_11 = arith.constant 0.707106769 : f32
    %22 = vector.broadcast %cst_11 : f32 to vector<64x1024xf32>
    %23 = arith.cmpf ole, %9, %22 : vector<64x1024xf32>
    %24 = arith.select %23, %21, %17 : vector<64x1024xi1>, vector<64x1024xf32>
    %cst_12 = arith.constant 4.000000e+00 : f32
    %25 = vector.broadcast %cst_12 : f32 to vector<64x1024xf32>
    %26 = arith.subf %17, %25 : vector<64x1024xf32>
    %cst_13 = arith.constant 1.79489656E-9 : f32
    %27 = vector.broadcast %cst_13 : f32 to vector<64x1024xf32>
    %28 = arith.cmpf ole, %9, %27 : vector<64x1024xf32>
    %29 = arith.select %28, %26, %24 : vector<64x1024xi1>, vector<64x1024xf32>
    %cst_14 = arith.constant 6.000000e+00 : f32
    %30 = vector.broadcast %cst_14 : f32 to vector<64x1024xf32>
    %31 = arith.subf %19, %30 : vector<64x1024xf32>
    %cst_15 = arith.constant -0.707106769 : f32
    %32 = vector.broadcast %cst_15 : f32 to vector<64x1024xf32>
    %33 = arith.cmpf ole, %9, %32 : vector<64x1024xf32>
    %34 = arith.select %33, %31, %29 : vector<64x1024xi1>, vector<64x1024xf32>
    %cst_16 = arith.constant 8.000000e+00 : f32
    %35 = vector.broadcast %cst_16 : f32 to vector<64x1024xf32>
    %36 = arith.subf %17, %35 : vector<64x1024xf32>
    %cst_17 = arith.constant -1.000000e+00 : f32
    %37 = vector.broadcast %cst_17 : f32 to vector<64x1024xf32>
    %38 = arith.cmpf ole, %9, %37 : vector<64x1024xf32>
    %39 = arith.select %38, %36, %34 : vector<64x1024xi1>, vector<64x1024xf32>
    %c0_18 = arith.constant 0 : index
    %c0_19 = arith.constant 0 : index
    %40 = vector.load %arg7[%c0_18, %c0_19] : memref<64x1xf32, #tpu.memory_space<vmem>>, vector<64x1xf32>
    %41 = vector.broadcast %40 : vector<64x1xf32> to vector<64x1024xf32>
    %42 = arith.mulf %9, %41 : vector<64x1024xf32>
    %c0_20 = arith.constant 0 : index
    %c0_21 = arith.constant 0 : index
    %43 = vector.load %arg4[%c0_20, %c0_21] : memref<64x1024xf32, #tpu.memory_space<vmem>>, vector<64x1024xf32>
    tpu.vector_store %arg4[%c0_20, %c0_21], %42 {strides = array<i32>} : memref<64x1024xf32, #tpu.memory_space<vmem>>, vector<64x1024xf32>,
    %44 = vector.broadcast %40 : vector<64x1xf32> to vector<64x1024xf32>
    %45 = arith.mulf %39, %44 : vector<64x1024xf32>
    %c0_22 = arith.constant 0 : index
    %c0_23 = arith.constant 0 : index
    %46 = vector.load %arg5[%c0_22, %c0_23] : memref<64x1024xf32, #tpu.memory_space<vmem>>, vector<64x1024xf32>
    tpu.vector_store %arg5[%c0_22, %c0_23], %45 {strides = array<i32>} : memref<64x1024xf32, #tpu.memory_space<vmem>>, vector<64x1024xf32>,
    return
  }
  func.func @transform_0(%arg0: i32, %arg1: i32) -> (i32, i32) {
    %c0_i32 = arith.constant 0 : i32
    %c0_i32_0 = arith.constant 0 : i32
    return %arg0, %c0_i32 : i32, i32
  }
  func.func @transform_1(%arg0: i32, %arg1: i32) -> (i32, i32) {
    %c0_i32 = arith.constant 0 : i32
    %c0_i32_0 = arith.constant 0 : i32
    return %c0_i32, %arg1 : i32, i32
  }
  func.func @transform_2(%arg0: i32, %arg1: i32) -> (i32, i32) {
    %c0_i32 = arith.constant 0 : i32
    return %arg0, %arg1 : i32, i32
  }
  func.func @transform_3(%arg0: i32, %arg1: i32) -> (i32, i32) {
    %c0_i32 = arith.constant 0 : i32
    return %arg0, %arg1 : i32, i32
  }
}

</mosaic_0001>

<bundles_post_ra>
// kernel: tpu_custom_call.1
= control target key start
LH: loop header
LB: loop body
LE: loop exit
PB: predicated region body
PF: predicated region fallthrough
CT: control target
= control target key end

     0   :  { %9 = vsyncpa [#allocation5], 0  ;;  %s4600_s0 = inlined_call_operand.hbm [shape: f32[64,128], index: 0, kind: input, shape index: {}]   ;;  %s4601_s1 = inlined_call_operand.hbm [shape: bf16[128,1024], index: 1, kind: input, shape index: {}]   ;;  %s4602_s2 = inlined_call_operand.hbm [shape: f32[64,1024], index: 2, kind: output, shape index: {0}]   ;;  %s4603_s3 = inlined_call_operand.hbm [shape: f32[64,1024], index: 3, kind: output, shape index: {1}]  }
   0x1   :  { %10 = vsyncpa [#allocation8], 0 }
   0x2   :  { %11 = vsyncpa [#allocation6], 0 }
   0x3   :  { %12 = vsyncpa [#allocation11], 0  ;;  %s3088_s12 = smov [#allocation4]   ;;  %s2992_s16 = scalar_lea.hbm %s4600_s0, 1024 }
   0x4   :  { %s18_s13 = sshll.u32 %s3088_s12, 4  ;;  %p2993_p0 = scmp.ne.s32.totalorder %s4600_s0, %s2992_s16  ;;  %s19_s13 = int_to_ptr.vmem [resolvable:$true] %s18_s13 }
   0x5   :  { %p2996_p1 = scmp.lt.u32.totalorder %s2992_s16, %s4600_s0 }
   0x7   :  { %p2998_p2 = pnand %p2996_p1, %p2993_p0 }
   0x9   :  { %3001 = shalt.err (!%p2998_p2)
}
   0xa   :  { %s3002_s21 = scalar_lea.vmem %s19_s13, 1024  ;;  %p3007_p4 = scmp.lt.s32.totalorder %s19_s13, %s19_s13 }
   0xb   :  { %p3003_p3 = scmp.ne.s32.totalorder %s19_s13, %s3002_s21  ;;  %p3008_p5 = scmp.lt.s32.totalorder %s3002_s21, %s3002_s21 }
   0xd   :  { %p3009_p6 = por %p3008_p5, %p3007_p4 }
   0xf   :  { %p3010_p7 = pnand %p3009_p6, %p3003_p3 }
  0x11   :  { %3013 = shalt.err (!%p3010_p7)
}
  0x12   :  { %s3089_s22 = smov 128   ;;  %s3090_s23 = smov 8  }
  0x13   :  { %24 = dma.hbm_to_vmem [thread:$0]  %s4600_s0, 1024, %s19_s13, [#allocation5], %s3089_s22, %s3089_s22, %s3090_s23  }
  0x14   :  { %s3091_s26 = smov [#allocation7]   ;;  %s3014_s30 = scalar_lea.hbm %s4601_s1, 8192 }
  0x15   :  { %s30_s27 = sshll.u32 %s3091_s26, 4  ;;  %p3015_p8 = scmp.ne.s32.totalorder %s4601_s1, %s3014_s30  ;;  %s31_s27 = int_to_ptr.vmem [resolvable:$true] %s30_s27 }
  0x16   :  { %p3018_p9 = scmp.lt.u32.totalorder %s3014_s30, %s4601_s1 }
  0x18   :  { %p3020_p10 = pnand %p3018_p9, %p3015_p8 }
  0x1a   :  { %3023 = shalt.err (!%p3020_p10)
}
  0x1b   :  { %s3024_s8 = scalar_lea.vmem %s31_s27, 8192  ;;  %p3029_p12 = scmp.lt.s32.totalorder %s31_s27, %s31_s27 }
  0x1c   :  { %p3025_p11 = scmp.ne.s32.totalorder %s31_s27, %s3024_s8  ;;  %p3030_p13 = scmp.lt.s32.totalorder %s3024_s8, %s3024_s8 }
  0x1e   :  { %p3031_p0 = por %p3030_p13, %p3029_p12 }
  0x20   :  { %p3032_p1 = pnand %p3031_p0, %p3025_p11 }
  0x22   :  { %3035 = shalt.err (!%p3032_p1)
}
  0x23   :  { %s3092_s0 = smov 512   ;;  %s3093_s9 = smov 32  }
  0x24   :  { %36 = dma.hbm_to_vmem [thread:$0]  %s4601_s1, 8192, %s31_s27, [#allocation8], %s3092_s0, %s3092_s0, %s3093_s9  }
  0x25   :  { %3080 = dma.done.wait [#allocation5], 1024  }
  0x26   :  { %3081 = vsyncadd [#allocation5], 4294966272 }
  0x27   :  { %3082 = dma.done.wait [#allocation8], 8192  }
  0x28   :  { %3083 = vsyncadd [#allocation8], 4294959104  ;;  %v3143_v0 = vld [vmem:[#allocation4 + $0x10] sm:$0xff]  ;;  %v3145_v1 = vld [vmem:[#allocation4] sm:$0xff]  ;;  %s3095_s1 = smov [#allocation9]  }
  0x29   :  { %v3147_v2 = vld [vmem:[#allocation4 + $0x18] sm:$0xff]  ;;  %v58_v3 = vmul.f32 %v3143_v0, %v3143_v0  ;;  %v56_v4 = vmul.f32 %v3145_v1, %v3145_v1  ;;  %v3153_v5 = vld [vmem:[#allocation4 + $0x8] sm:$0xff]  ;;  %v3161_v9 = vld [vmem:[#allocation4 + $0x20] sm:$0xff]  ;;  %s2470_s12 = sshll.u32 %s3095_s1, 4  ;;  %s4550_s12 = int_to_ptr.vmem [resolvable:$true] %s2470_s12 }
  0x2a   :  { %v59_v6 = vmul.f32 %v3147_v2, %v3147_v2  ;;  %v57_v7 = vmul.f32 %v3153_v5, %v3153_v5  ;;  %v3159_v8 = vld [vmem:[#allocation4 + $0x28] sm:$0xff]  ;;  %v60_v11 = vmul.f32 %v3161_v9, %v3161_v9  ;;  %v3167_v12 = vld [vmem:[#allocation4 + $0x38] sm:$0xff]  ;;  %v3169_v13 = vld [vmem:[#allocation4 + $0x30] sm:$0xff]  ;;  %s3036_s13 = scalar_lea.vmem %s4550_s12, 8192  ;;  %p3041_p3 = scmp.lt.s32.totalorder %s4550_s12, %s4550_s12 }
  0x2b   :  { %68 = vadd.xlane.f32.xlu1 %v58_v3  ;;  %64 = vadd.xlane.f32.xlu0 %v56_v4  ;;  %v61_v10 = vmul.f32 %v3159_v8, %v3159_v8  ;;  %v63_v14 = vmul.f32 %v3167_v12, %v3167_v12  ;;  %v62_v15 = vmul.f32 %v3169_v13, %v3169_v13  ;;  %v205_v16 = vld [vmem:[#allocation7] sm:$0xff]  ;;  %v206_v18 = vld [vmem:[#allocation7 + $0x8] sm:$0xff]  ;;  %p3037_p2 = scmp.ne.s32.totalorder %s4550_s12, %s3036_s13  ;;  %p3042_p4 = scmp.lt.s32.totalorder %s3036_s13, %s3036_s13 }
  0x2c   :  { %v209_v17 = vld [vmem:[#allocation7 + $0x20] sm:$0xff]  ;;  %v210_v20 = vld [vmem:[#allocation7 + $0x28] sm:$0xff] }
  0x2d   :  { %v2500_v19 = vcombine.high %v205_v16, %v209_v17  ;;  %v2502_v21 = vcombine.high %v206_v18, %v210_v20  ;;  %v2499_v22 = vcombine.low %v205_v16, %v209_v17  ;;  %v2501_v23 = vcombine.low %v206_v18, %v210_v20  ;;  %v213_v24 = vld [vmem:[#allocation7 + $0x40] sm:$0xff]  ;;  %v214_v26 = vld [vmem:[#allocation7 + $0x48] sm:$0xff]  ;;  %p3043_p5 = por %p3042_p4, %p3041_p3 }
  0x2e   :  { %v217_v25 = vld [vmem:[#allocation7 + $0x60] sm:$0xff]  ;;  %v218_v28 = vld [vmem:[#allocation7 + $0x68] sm:$0xff] }
  0x2f   :  { %70 = vadd.xlane.f32.xlu1 %v59_v6  ;;  %66 = vadd.xlane.f32.xlu0 %v57_v7  ;;  %v2508_v27 = vcombine.high %v213_v24, %v217_v25  ;;  %v2510_v29 = vcombine.high %v214_v26, %v218_v28  ;;  %v2507_v30 = vcombine.low %v213_v24, %v217_v25  ;;  %v221_v32 = vld [vmem:[#allocation7 + $0x80] sm:$0xff]  ;;  %v222_v34 = vld [vmem:[#allocation7 + $0x88] sm:$0xff]  ;;  %v3175_v24 = vld [vmem:[#allocation7 + $0x10] sm:$0xff]  ;;  %p3044_p6 = pnand %p3043_p5, %p3037_p2 }
  0x30   :  { %589 = vmatprep.subr.bf16.mxu0 %v2500_v19  ;;  %662 = vmatprep.subr.bf16.mxu1 %v2502_v21  ;;  %v2509_v31 = vcombine.low %v214_v26, %v218_v28  ;;  %v225_v33 = vld [vmem:[#allocation7 + $0xa0] sm:$0xff]  ;;  %v226_v36 = vld [vmem:[#allocation7 + $0xa8] sm:$0xff]  ;;  %v3177_v25 = vld [vmem:[#allocation7 + $0x30] sm:$0xff] }
  0x31   :  { %590 = vmatpush1.bf16.msra.mxu0 %v2499_v22  ;;  %663 = vmatpush1.bf16.msra.mxu1 %v2501_v23  ;;  %v2516_v35 = vcombine.high %v221_v32, %v225_v33  ;;  %v2518_v37 = vcombine.high %v222_v34, %v226_v36  ;;  %v2515_v38 = vcombine.low %v221_v32, %v225_v33  ;;  %v229_v40 = vld [vmem:[#allocation7 + $0xc0] sm:$0xff]  ;;  %v230_v42 = vld [vmem:[#allocation7 + $0xc8] sm:$0xff]  ;;  %v3179_v26 = vld [vmem:[#allocation7 + $0x18] sm:$0xff] }
  0x32   :  { %591 = vmatprep.subr.bf16.mxu0 %v2508_v27  ;;  %664 = vmatprep.subr.bf16.mxu1 %v2510_v29  ;;  %v2517_v39 = vcombine.low %v222_v34, %v226_v36  ;;  %v233_v41 = vld [vmem:[#allocation7 + $0xe0] sm:$0xff]  ;;  %v234_v44 = vld [vmem:[#allocation7 + $0xe8] sm:$0xff]  ;;  %v2504_v27 = vcombine.high %v3175_v24, %v3177_v25  ;;  %v3183_v28 = vld [vmem:[#allocation7 + $0x38] sm:$0xff]  ;;  %v3094_v29 = vmov 0  }
  0x33   :  { %74 = vadd.xlane.f32.xlu1 %v61_v10  ;;  %72 = vadd.xlane.f32.xlu0 %v60_v11  ;;  %v2524_v43 = vcombine.high %v229_v40, %v233_v41  ;;  %v2526_v45 = vcombine.high %v230_v42, %v234_v44  ;;  %v2523_v46 = vcombine.low %v229_v40, %v233_v41  ;;  %v237_v48 = vld [vmem:[#allocation7 + $0x100] sm:$0xff]  ;;  %v238_v50 = vld [vmem:[#allocation7 + $0x108] sm:$0xff] }
  0x34   :  { %v2525_v47 = vcombine.low %v230_v42, %v234_v44  ;;  %v241_v49 = vld [vmem:[#allocation7 + $0x120] sm:$0xff]  ;;  %v242_v52 = vld [vmem:[#allocation7 + $0x128] sm:$0xff]  ;;  %621 = vmatprep.mubr.bf16.mxu0 %v3094_v29  ;;  %694 = vmatprep.mubr.bf16.mxu1 %v3094_v29  ;;  %v2506_v32 = vcombine.high %v3179_v26, %v3183_v28 }
  0x35   :  { %592 = vmatpush1.bf16.msra.mxu0 %v2507_v30  ;;  %665 = vmatpush1.bf16.msra.mxu1 %v2509_v31  ;;  %v2532_v51 = vcombine.high %v237_v48, %v241_v49  ;;  %v2534_v53 = vcombine.high %v238_v50, %v242_v52  ;;  %v2531_v54 = vcombine.low %v237_v48, %v241_v49  ;;  %v245_v56 = vld [vmem:[#allocation7 + $0x140] sm:$0xff]  ;;  %v246_v58 = vld [vmem:[#allocation7 + $0x148] sm:$0xff] }
  0x36   :  { %593 = vmatprep.subr.bf16.mxu0 %v2516_v35  ;;  %666 = vmatprep.subr.bf16.mxu1 %v2518_v37  ;;  %v2533_v55 = vcombine.low %v238_v50, %v242_v52  ;;  %v249_v57 = vld [vmem:[#allocation7 + $0x160] sm:$0xff]  ;;  %v250_v60 = vld [vmem:[#allocation7 + $0x168] sm:$0xff]  ;;  %v2503_v30 = vcombine.low %v3175_v24, %v3177_v25  ;;  %v2505_v31 = vcombine.low %v3179_v26, %v3183_v28  ;;  %v231_v26 = vld [vmem:[#allocation7 + $0xd0] sm:$0xff] }
  0x37   :  { %78 = vadd.xlane.f32.xlu1 %v63_v14  ;;  %76 = vadd.xlane.f32.xlu0 %v62_v15  ;;  %v2540_v59 = vcombine.high %v245_v56, %v249_v57  ;;  %v2542_v61 = vcombine.high %v246_v58, %v250_v60  ;;  %v2539_v62 = vcombine.low %v245_v56, %v249_v57  ;;  %v253_v3 = vld [vmem:[#allocation7 + $0x180] sm:$0xff]  ;;  %v254_v6 = vld [vmem:[#allocation7 + $0x188] sm:$0xff]  ;;  %v235_v28 = vld [vmem:[#allocation7 + $0xf0] sm:$0xff] }
  0x38   :  { %v2541_v63 = vcombine.low %v246_v58, %v250_v60  ;;  %v257_v4 = vld [vmem:[#allocation7 + $0x1a0] sm:$0xff]  ;;  %v258_v10 = vld [vmem:[#allocation7 + $0x1a8] sm:$0xff]  ;;  %2958 = vset.pattern.permute.xlu0 %v3094_v29  ;;  %2959 = vset.pattern.permute.xlu1 %v3094_v29 }
  0x39   :  { %594 = vmatpush1.bf16.msra.mxu0 %v2515_v38  ;;  %667 = vmatpush1.bf16.msra.mxu1 %v2517_v39  ;;  %v2548_v7 = vcombine.high %v253_v3, %v257_v4  ;;  %v2550_v11 = vcombine.high %v254_v6, %v258_v10  ;;  %v2547_v14 = vcombine.low %v253_v3, %v257_v4  ;;  %v261_v16 = vld [vmem:[#allocation7 + $0x1c0] sm:$0xff]  ;;  %v262_v18 = vld [vmem:[#allocation7 + $0x1c8] sm:$0xff] }
  0x3a   :  { %595 = vmatprep.subr.bf16.mxu0 %v2524_v43  ;;  %668 = vmatprep.subr.bf16.mxu1 %v2526_v45  ;;  %v2549_v15 = vcombine.low %v254_v6, %v258_v10  ;;  %v265_v17 = vld [vmem:[#allocation7 + $0x1e0] sm:$0xff]  ;;  %v266_v20 = vld [vmem:[#allocation7 + $0x1e8] sm:$0xff] }
  0x3b   :  { %v2556_v19 = vcombine.high %v261_v16, %v265_v17  ;;  %v2558_v21 = vcombine.high %v262_v18, %v266_v20  ;;  %v2555_v22 = vcombine.low %v261_v16, %v265_v17  ;;  %v2557_v23 = vcombine.low %v262_v18, %v266_v20 }
  0x3d   :  { %596 = vmatpush1.bf16.msra.mxu0 %v2523_v46  ;;  %669 = vmatpush1.bf16.msra.mxu1 %v2525_v47 }
  0x3e   :  { %597 = vmatprep.subr.bf16.mxu0 %v2532_v51  ;;  %670 = vmatprep.subr.bf16.mxu1 %v2534_v53 }
  0x41   :  { %598 = vmatpush1.bf16.msra.mxu0 %v2531_v54  ;;  %671 = vmatpush1.bf16.msra.mxu1 %v2533_v55 }
  0x42   :  { %599 = vmatprep.subr.bf16.mxu0 %v2540_v59  ;;  %672 = vmatprep.subr.bf16.mxu1 %v2542_v61 }
  0x45   :  { %600 = vmatpush1.bf16.msra.mxu0 %v2539_v62  ;;  %673 = vmatpush1.bf16.msra.mxu1 %v2541_v63 }
  0x46   :  { %601 = vmatprep.subr.bf16.mxu0 %v2548_v7  ;;  %674 = vmatprep.subr.bf16.mxu1 %v2550_v11 }
  0x49   :  { %602 = vmatpush1.bf16.msra.mxu0 %v2547_v14  ;;  %675 = vmatpush1.bf16.msra.mxu1 %v2549_v15 }
  0x4a   :  { %603 = vmatprep.subr.bf16.mxu0 %v2556_v19  ;;  %676 = vmatprep.subr.bf16.mxu1 %v2558_v21 }
  0x4d   :  { %604 = vmatpush1.bf16.msra.mxu0 %v2555_v22  ;;  %677 = vmatpush1.bf16.msra.mxu1 %v2557_v23 }
  0x4e   :  { %735 = vmatprep.subr.bf16.mxu0 %v2504_v27  ;;  %808 = vmatprep.subr.bf16.mxu1 %v2506_v32 }
  0xb8   :  { %v69_v33 = vpop.xlane.xlu1 %68  ;;  %v65_v34 = vpop.xlane.xlu0 %64 }
  0xb9   :  { %2960 = vrsqrt.f32 %v69_v33  ;;  %vm96_vm0 = vcmp.eq.f32.partialorder %v69_v33, inf  ;;  %vm98_vm1 = vcmp.eq.f32.partialorder %v69_v33, 0.0  ;;  %v99_v42 = vand.u32 2147483648, %v69_v33 }
  0xba   :  { %2962 = vrsqrt.f32 %v65_v34  ;;  %vm82_vm2 = vcmp.eq.f32.partialorder %v65_v34, inf  ;;  %vm84_vm3 = vcmp.eq.f32.partialorder %v65_v34, 0.0  ;;  %v85_v46 = vand.u32 2147483648, %v65_v34 }
  0xbc   :  { %v71_v35 = vpop.xlane.xlu1 %70  ;;  %v67_v36 = vpop.xlane.xlu0 %66 }
  0xbd   :  { %2964 = vrsqrt.f32 %v71_v35  ;;  %vm103_vm4 = vcmp.eq.f32.partialorder %v71_v35, inf  ;;  %vm105_vm5 = vcmp.eq.f32.partialorder %v71_v35, 0.0  ;;  %v106_v51 = vand.u32 2147483648, %v71_v35 }
  0xbe   :  { %2966 = vrsqrt.f32 %v67_v36  ;;  %vm89_vm6 = vcmp.eq.f32.partialorder %v67_v36, inf  ;;  %vm91_vm7 = vcmp.eq.f32.partialorder %v67_v36, 0.0  ;;  %v92_v58 = vand.u32 2147483648, %v67_v36 }
  0xc0   :  { %v75_v37 = vpop.xlane.xlu1 %74  ;;  %v3195_v38 = vpop.xlane.xlu0 %72 }
  0xc1   :  { %2968 = vrsqrt.f32 %v75_v37  ;;  %vm117_vm8 = vcmp.eq.f32.partialorder %v75_v37, inf  ;;  %vm119_vm9 = vcmp.eq.f32.partialorder %v75_v37, 0.0  ;;  %v120_v60 = vand.u32 2147483648, %v75_v37 }
  0xc2   :  { %2970 = vrsqrt.f32 %v3195_v38  ;;  %vm110_vm10 = vcmp.eq.f32.partialorder %v3195_v38, inf  ;;  %v113_v10 = vand.u32 2147483648, %v3195_v38  ;;  %vm112_vm11 = vcmp.eq.f32.partialorder %v3195_v38, 0.0 }
  0xc3   :  { %v2961_v39 = vpop.eup %2960 }
  0xc4   :  { %v2963_v40 = vpop.eup %2962  ;;  %v95_v41 = vmul.f32 %v2961_v39, %v69_v33  ;;  %v3198_v43 = vpop.xlane.xlu1 %78 }
  0xc5   :  { %v3200_v44 = vpop.xlane.xlu0 %76  ;;  %v81_v45 = vmul.f32 %v2963_v40, %v65_v34  ;;  %2972 = vrsqrt.f32 %v3198_v43  ;;  %vm131_vm12 = vcmp.eq.f32.partialorder %v3198_v43, inf  ;;  %vm133_vm13 = vcmp.eq.f32.partialorder %v3198_v43, 0.0 }
  0xc6   :  { %v97_v47 = vsel %vm96_vm0, %v69_v33, %v95_v41  ;;  %2974 = vrsqrt.f32 %v3200_v44  ;;  %v134_v16 = vand.u32 2147483648, %v3198_v43  ;;  %vm124_vm14 = vcmp.eq.f32.partialorder %v3200_v44, inf }
  0xc7   :  { %v2965_v48 = vpop.eup %2964  ;;  %v100_v49 = vsel %vm98_vm1, %v99_v42, %v97_v47  ;;  %v83_v50 = vsel %vm82_vm2, %v65_v34, %v81_v45  ;;  %v127_v27 = vand.u32 2147483648, %v3200_v44  ;;  %vm126_vm15 = vcmp.eq.f32.partialorder %v3200_v44, 0.0 }
  0xc8   :  { %v2967_v52 = vpop.eup %2966  ;;  %v138_v53 = vmax.f32 %v100_v49, 1e-12  ;;  %v86_v54 = vsel %vm84_vm3, %v85_v46, %v83_v50  ;;  %v102_v55 = vmul.f32 %v2965_v48, %v71_v35  ;;  %vm176_vm0 = vcmask 7168   ;;  %v215_v50 = vld [vmem:[#allocation7 + $0x50] sm:$0xff] }
  0xc9   :  { %v136_v56 = vmax.f32 %v86_v54, 1e-12  ;;  %v88_v57 = vmul.f32 %v2967_v52, %v67_v36  ;;  %v216_v52 = vld [vmem:[#allocation7 + $0x58] sm:$0xff] }
  0xca   :  { %2976 = vrcp.f32 %v138_v53  ;;  %v104_v59 = vsel %vm103_vm4, %v71_v35, %v102_v55  ;;  %v220_v53 = vld [vmem:[#allocation7 + $0x78] sm:$0xff] }
  0xcb   :  { %v2969_v61 = vpop.eup %2968  ;;  %2978 = vrcp.f32 %v136_v56  ;;  %v107_v62 = vsel %vm105_vm5, %v106_v51, %v104_v59  ;;  %v90_v63 = vsel %vm89_vm6, %v67_v36, %v88_v57  ;;  %v219_v51 = vld [vmem:[#allocation7 + $0x70] sm:$0xff] }
  0xcc   :  { %v2971_v3 = vpop.eup %2970  ;;  %v139_v4 = vmax.f32 %v107_v62, 1e-12  ;;  %v93_v6 = vsel %vm91_vm7, %v92_v58, %v90_v63  ;;  %v116_v7 = vmul.f32 %v2969_v61, %v75_v37  ;;  %v2514_v61 = vcombine.high %v216_v52, %v220_v53  ;;  %v223_v63 = vld [vmem:[#allocation7 + $0x90] sm:$0xff] }
  0xcd   :  { %v137_v11 = vmax.f32 %v93_v6, 1e-12  ;;  %v109_v14 = vmul.f32 %v2971_v3, %v3195_v38 }
  0xce   :  { %2980 = vrcp.f32 %v139_v4  ;;  %v118_v15 = vsel %vm117_vm8, %v75_v37, %v116_v7  ;;  %v227_v4 = vld [vmem:[#allocation7 + $0xb0] sm:$0xff] }
  0xcf   :  { %v2973_v17 = vpop.eup %2972  ;;  %2982 = vrcp.f32 %v137_v11  ;;  %v121_v18 = vsel %vm119_vm9, %v120_v60, %v118_v15  ;;  %v111_v19 = vsel %vm110_vm10, %v3195_v38, %v109_v14  ;;  %v2512_v60 = vcombine.high %v215_v50, %v219_v51 }
  0xd0   :  { %v2975_v20 = vpop.eup %2974  ;;  %v141_v21 = vmax.f32 %v121_v18, 1e-12  ;;  %v114_v22 = vsel %vm112_vm11, %v113_v10, %v111_v19  ;;  %v130_v23 = vmul.f32 %v2973_v17, %v3198_v43  ;;  %v2511_v10 = vcombine.low %v215_v50, %v219_v51  ;;  %v248_v50 = vld [vmem:[#allocation7 + $0x158] sm:$0xff] }
  0xd1   :  { %v140_v32 = vmax.f32 %v114_v22, 1e-12  ;;  %v123_v33 = vmul.f32 %v2975_v20, %v3200_v44  ;;  %v2513_v11 = vcombine.low %v216_v52, %v220_v53  ;;  %v236_v20 = vld [vmem:[#allocation7 + $0xf8] sm:$0xff] }
  0xd2   :  { %2984 = vrcp.f32 %v141_v21  ;;  %v132_v34 = vsel %vm131_vm12, %v3198_v43, %v130_v23 }
  0xd3   :  { %2986 = vrcp.f32 %v140_v32  ;;  %v135_v35 = vsel %vm133_vm13, %v134_v16, %v132_v34  ;;  %v125_v36 = vsel %vm124_vm14, %v3200_v44, %v123_v33  ;;  %v2520_v16 = vcombine.high %v223_v63, %v227_v4 }
  0xd4   :  { %v3231_v37 = vpop.eup %2976  ;;  %v143_v38 = vmax.f32 %v135_v35, 1e-12  ;;  %v128_v39 = vsel %vm126_vm15, %v127_v27, %v125_v36  ;;  %v2528_v33 = vcombine.high %v231_v26, %v235_v28  ;;  %v239_v36 = vld [vmem:[#allocation7 + $0x110] sm:$0xff] }
  0xd5   :  { %v2979_v40 = vpop.eup %2978  ;;  %v162_v41 = vmul.f32 %v3231_v37, %v100_v49  ;;  %v142_v42 = vmax.f32 %v128_v39, 1e-12 }
  0xd6   :  { %v160_v45 = vmul.f32 %v2979_v40, %v86_v54  ;;  %2988 = vrcp.f32 %v143_v38  ;;  %v185_v49 = vmul.f32 %v2979_v40, %v3145_v1  ;;  %v228_v1 = vld [vmem:[#allocation7 + $0xb8] sm:$0xff]  ;;  %v243_v38 = vld [vmem:[#allocation7 + $0x130] sm:$0xff] }
  0xd7   :  { %v170_v46 = vmul.f32 12.0, %v162_v41  ;;  %2990 = vrcp.f32 %v142_v42  ;;  %v2536_v41 = vcombine.high %v239_v36, %v243_v38  ;;  %v2535_v51 = vcombine.low %v239_v36, %v243_v38 }
  0xd8   :  { %v2981_v47 = vpop.eup %2980  ;;  %v168_v48 = vmul.f32 12.0, %v160_v45 }
  0xd9   :  { %v2983_v43 = vpop.eup %2982  ;;  %179 = vst.msk [vmem:[#allocation3 + $0x10] sm:$0xff] %vm176_vm0, %v170_v46  ;;  %v163_v44 = vmul.f32 %v2981_v47, %v107_v62 }
  0xda   :  { %177 = vst.msk [vmem:[#allocation3] sm:$0xff] %vm176_vm0, %v168_v48  ;;  %v161_v55 = vmul.f32 %v2983_v43, %v93_v6  ;;  %v186_v54 = vmul.f32 %v2983_v43, %v3153_v5  ;;  %v224_v6 = vld [vmem:[#allocation7 + $0x98] sm:$0xff]  ;;  %v251_v48 = vld [vmem:[#allocation7 + $0x170] sm:$0xff] }
  0xdb   :  { %v171_v56 = vmul.f32 12.0, %v163_v44  ;;  %v2522_v17 = vcombine.high %v224_v6, %v228_v1  ;;  %v2521_v23 = vcombine.low %v224_v6, %v228_v1  ;;  %v252_v43 = vld [vmem:[#allocation7 + $0x178] sm:$0xff]  ;;  %v267_v6 = vld [vmem:[#allocation7 + $0x1f0] sm:$0xff] }
  0xdc   :  { %v3238_v57 = vpop.eup %2984  ;;  %v169_v58 = vmul.f32 12.0, %v161_v55  ;;  %v3240_v59 = vpack.c.bf16 %v186_v54, %v185_v49  ;;  %v2546_v53 = vcombine.high %v248_v50, %v252_v43  ;;  %v255_v55 = vld [vmem:[#allocation7 + $0x190] sm:$0xff]  ;;  %v256_v54 = vld [vmem:[#allocation7 + $0x198] sm:$0xff] }
  0xdd   :  { %v3242_v62 = vpop.eup %2986  ;;  %180 = vst.msk [vmem:[#allocation3 + $0x18] sm:$0xff] %vm176_vm0, %v171_v56  ;;  %v165_v3 = vmul.f32 %v3238_v57, %v121_v18  ;;  %v188_v18 = vmul.f32 %v2981_v47, %v3147_v2  ;;  %v187_v2 = vmul.f32 %v3231_v37, %v3143_v0  ;;  %v240_v0 = vld [vmem:[#allocation7 + $0x118] sm:$0xff]  ;;  %v190_v45 = vmul.f32 %v3238_v57, %v3159_v8  ;;  %v247_v47 = vld [vmem:[#allocation7 + $0x150] sm:$0xff] }
  0xde   :  { %178 = vst.msk [vmem:[#allocation3 + $0x8] sm:$0xff] %vm176_vm0, %v169_v58  ;;  %v164_v5 = vmul.f32 %v3242_v62, %v114_v22  ;;  %622 = vmatmul.mubr.bf16.vlgmr.msra.gmra.mrb[0].mxu0 %v3240_v59  ;;  %695 = vmatmul.mubr.bf16.vlgmr.msra.gmra.mrb[0].mxu1 %v3240_v59  ;;  %v2519_v22 = vcombine.low %v223_v63, %v227_v4  ;;  %v244_v37 = vld [vmem:[#allocation7 + $0x138] sm:$0xff]  ;;  %v259_v49 = vld [vmem:[#allocation7 + $0x1b0] sm:$0xff] }
  0xdf   :  { %v173_v7 = vmul.f32 12.0, %v165_v3  ;;  %736 = vmatpush1.bf16.msra.mxu0 %v2503_v30  ;;  %809 = vmatpush1.bf16.msra.mxu1 %v2505_v31  ;;  %v232_v31 = vld [vmem:[#allocation7 + $0xd8] sm:$0xff]  ;;  %v3269_v32 = vpack.c.bf16 %v188_v18, %v187_v2  ;;  %v189_v42 = vmul.f32 %v3242_v62, %v3161_v9  ;;  %v2538_v46 = vcombine.high %v240_v0, %v244_v37  ;;  %v263_v4 = vld [vmem:[#allocation7 + $0x1d0] sm:$0xff] }
  0xe0   :  { %v3256_v14 = vpop.eup %2988  ;;  %v172_v15 = vmul.f32 12.0, %v164_v5  ;;  %737 = vmatprep.subr.bf16.mxu0 %v2512_v60  ;;  %810 = vmatprep.subr.bf16.mxu1 %v2514_v61  ;;  %v2529_v40 = vcombine.low %v232_v31, %v236_v20  ;;  %v2163_v44 = vld [vmem:[#allocation3 + $0x10] sm:$0xff]  ;;  %v2537_v52 = vcombine.low %v240_v0, %v244_v37  ;;  %v2544_v8 = vcombine.high %v247_v47, %v251_v48  ;;  %v260_v56 = vld [vmem:[#allocation7 + $0x1b8] sm:$0xff] }
  0xe1   :  { %v3259_v19 = vpop.eup %2990  ;;  %182 = vst.msk [vmem:[#allocation3 + $0x28] sm:$0xff] %vm176_vm0, %v173_v7  ;;  %v167_v24 = vmul.f32 %v3256_v14, %v135_v35  ;;  %v2161_v25 = vld [vmem:[#allocation3] sm:$0xff]  ;;  %631 = vmatprep.mubr.bf16.mxu0 %v3094_v29  ;;  %704 = vmatprep.mubr.bf16.mxu1 %v3094_v29  ;;  %v2530_v35 = vcombine.high %v232_v31, %v236_v20  ;;  %v264_v1 = vld [vmem:[#allocation7 + $0x1d8] sm:$0xff] }
  0xe2   :  { %181 = vst.msk [vmem:[#allocation3 + $0x20] sm:$0xff] %vm176_vm0, %v172_v15  ;;  %v166_v30 = vmul.f32 %v3259_v19, %v128_v39  ;;  %2171 = vperm.xlu0 %2958, %v2161_v25   ;;  %v2527_v39 = vcombine.low %v231_v26, %v235_v28  ;;  %v3281_v9 = vpack.c.bf16 %v190_v45, %v189_v42  ;;  %v268_v5 = vld [vmem:[#allocation7 + $0x1f8] sm:$0xff] }
  0xe3   :  { %v175_v21 = vmul.f32 12.0, %v167_v24  ;;  %738 = vmatpush1.bf16.msra.mxu0 %v2511_v10  ;;  %811 = vmatpush1.bf16.msra.mxu1 %v2513_v11  ;;  %v2543_v58 = vcombine.low %v247_v47, %v251_v48  ;;  %v2545_v60 = vcombine.low %v248_v50, %v252_v43  ;;  %v2552_v61 = vcombine.high %v255_v55, %v259_v49 }
  0xe4   :  { %v174_v27 = vmul.f32 12.0, %v166_v30  ;;  %739 = vmatprep.subr.bf16.mxu0 %v2520_v16  ;;  %812 = vmatprep.subr.bf16.mxu1 %v2522_v17  ;;  %v2164_v57 = vld [vmem:[#allocation3 + $0x18] sm:$0xff]  ;;  %v191_v63 = vmul.f32 %v3259_v19, %v3169_v13  ;;  %v192_v62 = vmul.f32 %v3256_v14, %v3167_v12  ;;  %v2554_v3 = vcombine.high %v256_v54, %v260_v56 }
  0xe5   :  { %184 = vst.msk [vmem:[#allocation3 + $0x38] sm:$0xff] %vm176_vm0, %v175_v21  ;;  %v2162_v34 = vld [vmem:[#allocation3 + $0x8] sm:$0xff]  ;;  %v2551_v10 = vcombine.low %v255_v55, %v259_v49  ;;  %v2553_v11 = vcombine.low %v256_v54, %v260_v56  ;;  %v2560_v15 = vcombine.high %v263_v4, %v267_v6  ;;  %v2562_v12 = vcombine.high %v264_v1, %v268_v5 }
  0xe6   :  { %183 = vst.msk [vmem:[#allocation3 + $0x30] sm:$0xff] %vm176_vm0, %v174_v27  ;;  %632 = vmatmul.mubr.bf16.gmra.mrb[4].mxu0 %v3269_v32  ;;  %705 = vmatmul.mubr.bf16.gmra.mrb[4].mxu1 %v3269_v32  ;;  %v196_v13 = vpack.c.bf16 %v192_v62, %v191_v63  ;;  %v2559_v16 = vcombine.low %v263_v4, %v267_v6 }
  0xe7   :  { %740 = vmatpush1.bf16.msra.mxu0 %v2519_v22  ;;  %813 = vmatpush1.bf16.msra.mxu1 %v2521_v23  ;;  %v2561_v17 = vcombine.low %v264_v1, %v268_v5 }
  0xe8   :  { %2176 = vperm.xlu1 %2959, %v2162_v34   ;;  %741 = vmatprep.subr.bf16.mxu0 %v2528_v33  ;;  %v2166_v14 = vld [vmem:[#allocation3 + $0x28] sm:$0xff] }
  0xe9   :  { %814 = vmatprep.subr.bf16.mxu1 %v2530_v35  ;;  %641 = vmatprep.mubr.bf16.mxu0 %v3094_v29  ;;  %v2165_v7 = vld [vmem:[#allocation3 + $0x20] sm:$0xff] }
  0xea   :  { %714 = vmatprep.mubr.bf16.mxu1 %v3094_v29 }
  0xeb   :  { %742 = vmatpush1.bf16.msra.mxu0 %v2527_v39  ;;  %815 = vmatpush1.bf16.msra.mxu1 %v2529_v40 }
  0xec   :  { %2181 = vperm.xlu1 %2959, %v2163_v44   ;;  %743 = vmatprep.subr.bf16.mxu0 %v2536_v41  ;;  %v2168_v19 = vld [vmem:[#allocation3 + $0x38] sm:$0xff] }
  0xed   :  { %816 = vmatprep.subr.bf16.mxu1 %v2538_v46  ;;  %v2167_v18 = vld [vmem:[#allocation3 + $0x30] sm:$0xff] }
  0xee   :  { %642 = vmatmul.mubr.bf16.gmra.mrb[8].mxu0 %v3281_v9  ;;  %715 = vmatmul.mubr.bf16.gmra.mrb[8].mxu1 %v3281_v9 }
  0xef   :  { %744 = vmatpush1.bf16.msra.mxu0 %v2535_v51  ;;  %817 = vmatpush1.bf16.msra.mxu1 %v2537_v52 }
  0xf0   :  { %2186 = vperm.xlu1 %2959, %v2164_v57   ;;  %745 = vmatprep.subr.bf16.mxu0 %v2544_v8 }
  0xf1   :  { %818 = vmatprep.subr.bf16.mxu1 %v2546_v53  ;;  %651 = vmatprep.mubr.bf16.mxu0 %v3094_v29 }
  0xf2   :  { %724 = vmatprep.mubr.bf16.mxu1 %v3094_v29 }
  0xf3   :  { %746 = vmatpush1.bf16.msra.mxu0 %v2543_v58  ;;  %819 = vmatpush1.bf16.msra.mxu1 %v2545_v60 }
  0xf4   :  { %2191 = vperm.xlu1 %2959, %v2165_v7   ;;  %747 = vmatprep.subr.bf16.mxu0 %v2552_v61 }
  0xf5   :  { %820 = vmatprep.subr.bf16.mxu1 %v2554_v3 }
  0xf6   :  { %652 = vmatmul.mubr.bf16.gmra.mrb[12].mxu0 %v196_v13  ;;  %725 = vmatmul.mubr.bf16.gmra.mrb[12].mxu1 %v196_v13 }
  0xf7   :  { %748 = vmatpush1.bf16.msra.mxu0 %v2551_v10  ;;  %821 = vmatpush1.bf16.msra.mxu1 %v2553_v11 }
  0xf8   :  { %2196 = vperm.xlu1 %2959, %v2166_v14   ;;  %749 = vmatprep.subr.bf16.mxu0 %v2560_v15 }
  0xf9   :  { %822 = vmatprep.subr.bf16.mxu1 %v2562_v12  ;;  %767 = vmatprep.mubr.bf16.mxu0 %v3094_v29 }
  0xfa   :  { %840 = vmatprep.mubr.bf16.mxu1 %v3094_v29 }
  0xfb   :  { %750 = vmatpush1.bf16.msra.mxu0 %v2559_v16  ;;  %823 = vmatpush1.bf16.msra.mxu1 %v2561_v17 }
  0xfc   :  { %2201 = vperm.xlu1 %2959, %v2167_v18  }
  0xfe   :  { %768 = vmatmul.mubr.bf16.vlgmr.msra.gmra.mrb[16].mxu0 %v3240_v59  ;;  %841 = vmatmul.mubr.bf16.vlgmr.msra.gmra.mrb[16].mxu1 %v3240_v59 }
  0xff   :  { %777 = vmatprep.mubr.bf16.mxu0 %v3094_v29  ;;  %850 = vmatprep.mubr.bf16.mxu1 %v3094_v29 }
 0x100   :  { %2206 = vperm.xlu1 %2959, %v2168_v19  }
 0x106   :  { %778 = vmatmul.mubr.bf16.gmra.mrb[20].mxu0 %v3269_v32  ;;  %851 = vmatmul.mubr.bf16.gmra.mrb[20].mxu1 %v3269_v32 }
 0x107   :  { %787 = vmatprep.mubr.bf16.mxu0 %v3094_v29  ;;  %860 = vmatprep.mubr.bf16.mxu1 %v3094_v29 }
 0x10e   :  { %788 = vmatmul.mubr.bf16.gmra.mrb[24].mxu0 %v3281_v9  ;;  %861 = vmatmul.mubr.bf16.gmra.mrb[24].mxu1 %v3281_v9 }
 0x10f   :  { %797 = vmatprep.mubr.bf16.mxu0 %v3094_v29  ;;  %870 = vmatprep.mubr.bf16.mxu1 %v3094_v29 }
 0x116   :  { %798 = vmatmul.mubr.bf16.gmra.mrb[28].mxu0 %v196_v13  ;;  %871 = vmatmul.mubr.bf16.gmra.mrb[28].mxu1 %v196_v13 }
 0x161   :  { %v3311_v21 = vpop.permute.xlu0 %2171 }
 0x1b1   :  { %v623_v59 = vpop.f32.mrb[0].mxu0  ;;  %v696_v24 = vpop.f32.mrb[0].mxu1 }
 0x1b2   :  { %v3305_v25 = vclamps-f32 %v623_v59, 1.0  ;;  %v3307_v26 = vclamps-f32 %v696_v24, 1.0  ;;  %v625_v28 = vpop.f32.mrb[1].mxu0  ;;  %v698_v30 = vpop.f32.mrb[1].mxu1 }
 0x1b3   :  { %v3309_v2 = vclamps-f32 %v625_v28, 1.0  ;;  %v627_v31 = vpop.f32.mrb[2].mxu0  ;;  %v700_v20 = vpop.f32.mrb[2].mxu1  ;;  %v3319_v27 = vclamps-f32 %v698_v30, 1.0 }
 0x1b4   :  { %v1009_v22 = vmul.f32 %v3305_v25, %v3305_v25  ;;  %v2209_v29 = vmul.f32 %v3305_v25, %v3311_v21  ;;  %v1011_v23 = vmul.f32 %v3307_v26, %v3307_v26  ;;  %v3321_v32 = vpop.f32.mrb[3].mxu0  ;;  %v3323_v33 = vpop.f32.mrb[3].mxu1  ;;  %v2211_v36 = vmul.f32 %v3307_v26, %v3311_v21 }
 0x1b5   :  { %v1010_v38 = vmul.f32 %v3309_v2, %v3309_v2  ;;  %vm1457_vm1 = vcmp.le.f32.partialorder %v3305_v25, 0.70710677  ;;  %v2210_v40 = vmul.f32 %v3309_v2, %v3311_v21  ;;  %v1012_v41 = vmul.f32 %v3319_v27, %v3319_v27 }
 0x1b6   :  { %v2627_v34 = vadd.f32 -1.0, %v1009_v22  ;;  %2273 = vst [vmem:[#allocation9] sm:$0xff] %v2209_v29  ;;  %v2629_v35 = vadd.f32 -1.0, %v1011_v23  ;;  %2275 = vst [vmem:[#allocation9 + $0x10] sm:$0xff] %v2211_v36  ;;  %vm1649_vm2 = vcmp.le.f32.partialorder %v3305_v25, 1.7948966e-09  ;;  %v2212_v52 = vmul.f32 %v3319_v27, %v3311_v21 }
 0x1b7   :  { %v2628_v39 = vadd.f32 -1.0, %v1010_v38  ;;  %vm1459_vm3 = vcmp.le.f32.partialorder %v3307_v26, 0.70710677  ;;  %vm1841_vm4 = vcmp.le.f32.partialorder %v3305_v25, -0.70710677  ;;  %2274 = vst [vmem:[#allocation9 + $0x8] sm:$0xff] %v2210_v40 }
 0x1b8   :  { %v1137_v0 = vmul.f32 %v2627_v34, %v1009_v22  ;;  %v1139_v37 = vmul.f32 %v2629_v35, %v1011_v23  ;;  %vm1651_vm5 = vcmp.le.f32.partialorder %v3307_v26, 1.7948966e-09  ;;  %v2630_v50 = vadd.f32 -1.0, %v1012_v41  ;;  %2276 = vst [vmem:[#allocation9 + $0x18] sm:$0xff] %v2212_v52 }
 0x1b9   :  { %v3334_v42 = vpop.f32.mrb[4].mxu0  ;;  %v3336_v45 = vpop.f32.mrb[4].mxu1  ;;  %v1138_v48 = vmul.f32 %v2628_v39, %v1010_v38  ;;  %vm2033_vm6 = vcmp.le.f32.partialorder %v3305_v25, -1.0  ;;  %vm1843_vm7 = vcmp.le.f32.partialorder %v3307_v26, -0.70710677  ;;  %v3351_v9 = vclamps-f32 %v627_v31, 1.0 }
 0x1ba   :  { %v1201_v46 = vmul.f32 8.0, %v1137_v0  ;;  %v1203_v47 = vmul.f32 8.0, %v1139_v37  ;;  %v3342_v43 = vpop.f32.mrb[5].mxu0  ;;  %v3344_v44 = vpop.f32.mrb[5].mxu1  ;;  %vm1458_vm8 = vcmp.le.f32.partialorder %v3309_v2, 0.70710677  ;;  %v1140_v54 = vmul.f32 %v2630_v50, %v1012_v41 }
 0x1bb   :  { %v3353_v8 = vpop.f32.mrb[6].mxu0  ;;  %v3355_v53 = vpop.f32.mrb[6].mxu1  ;;  %vm2035_vm9 = vcmp.le.f32.partialorder %v3307_v26, -1.0  ;;  %v1202_v49 = vmul.f32 8.0, %v1138_v48  ;;  %vm1650_vm10 = vcmp.le.f32.partialorder %v3309_v2, 1.7948966e-09  ;;  %v1017_v60 = vmul.f32 %v3351_v9, %v3351_v9 }
 0x1bc   :  { %v1265_v51 = vadd.f32 1.0, %v1201_v46  ;;  %v1267_v55 = vadd.f32 1.0, %v1203_v47  ;;  %v3359_v56 = vpop.f32.mrb[7].mxu0  ;;  %v3361_v57 = vpop.f32.mrb[7].mxu1  ;;  %vm1842_vm11 = vcmp.le.f32.partialorder %v3309_v2, -0.70710677 }
 0x1bd   :  { %v3366_v61 = vclamps-f32 %v700_v20, 1.0  ;;  %v1266_v4 = vadd.f32 1.0, %v1202_v49  ;;  %vm2034_vm12 = vcmp.le.f32.partialorder %v3309_v2, -1.0  ;;  %vm1460_vm13 = vcmp.le.f32.partialorder %v3319_v27, 0.70710677  ;;  %v3412_v49 = vpop.permute.xlu1 %2176 }
 0x1be   :  { %v1329_v58 = vsub.f32 0.0, %v1265_v51  ;;  %v2755_v63 = vadd.f32 -4.0, %v1265_v51  ;;  %v2883_v62 = vadd.f32 -8.0, %v1265_v51  ;;  %v1331_v3 = vsub.f32 0.0, %v1267_v55 }
 0x1bf   :  { %v2757_v1 = vadd.f32 -4.0, %v1267_v55  ;;  %v1204_v5 = vmul.f32 8.0, %v1140_v54  ;;  %vm1652_vm14 = vcmp.le.f32.partialorder %v3319_v27, 1.7948966e-09  ;;  %v2635_v7 = vadd.f32 -1.0, %v1017_v60 }
 0x1c0   :  { %v2691_v6 = vadd.f32 -2.0, %v1329_v58  ;;  %v2819_v10 = vadd.f32 -6.0, %v1329_v58  ;;  %v2693_v11 = vadd.f32 -2.0, %v1331_v3  ;;  %v2885_v13 = vadd.f32 -8.0, %v1267_v55 }
 0x1c1   :  { %v1330_v15 = vsub.f32 0.0, %v1266_v4  ;;  %v3371_v12 = vpop.f32.mrb[8].mxu0  ;;  %v3373_v14 = vpop.f32.mrb[8].mxu1  ;;  %v2821_v17 = vadd.f32 -6.0, %v1331_v3  ;;  %v2756_v18 = vadd.f32 -4.0, %v1266_v4  ;;  %v1268_v19 = vadd.f32 1.0, %v1204_v5 }
 0x1c2   :  { %v1521_v16 = vsel %vm1457_vm1, %v2691_v6, %v1265_v51  ;;  %vm2036_vm15 = vcmp.le.f32.partialorder %v3319_v27, -1.0  ;;  %v3378_v59 = vpop.f32.mrb[9].mxu0  ;;  %v3380_v24 = vpop.f32.mrb[9].mxu1  ;;  %v1523_v30 = vsel %vm1459_vm3, %v2693_v11, %v1267_v55  ;;  %v1145_v20 = vmul.f32 %v2635_v7, %v1017_v60 }
 0x1c3   :  { %v1713_v28 = vsel %vm1649_vm2, %v2755_v63, %v1521_v16  ;;  %v2692_v31 = vadd.f32 -2.0, %v1330_v15  ;;  %v3386_v22 = vpop.f32.mrb[10].mxu0  ;;  %v3388_v29 = vpop.f32.mrb[10].mxu1  ;;  %v1715_v34 = vsel %vm1651_vm5, %v2757_v1, %v1523_v30  ;;  %v2884_v35 = vadd.f32 -8.0, %v1266_v4 }
 0x1c4   :  { %v1905_v23 = vsel %vm1841_vm4, %v2819_v10, %v1713_v28  ;;  %v1332_v36 = vsub.f32 0.0, %v1268_v19  ;;  %v3394_v38 = vpop.f32.mrb[11].mxu0  ;;  %v3396_v0 = vpop.f32.mrb[11].mxu1  ;;  %v1907_v39 = vsel %vm1843_vm7, %v2821_v17, %v1715_v34  ;;  %v2820_v41 = vadd.f32 -6.0, %v1330_v15 }
 0x1c5   :  { %v2097_v37 = vsel %vm2033_vm6, %v2883_v62, %v1905_v23  ;;  %v1522_v40 = vsel %vm1458_vm8, %v2692_v31, %v1266_v4  ;;  %v2099_v47 = vsel %vm2035_vm9, %v2885_v13, %v1907_v39  ;;  %v2758_v52 = vadd.f32 -4.0, %v1268_v19 }
 0x1c6   :  { %v2337_v46 = vmul.f32 %v3311_v21, %v2097_v37  ;;  %v1714_v48 = vsel %vm1650_vm10, %v2756_v18, %v1522_v40  ;;  %v2694_v50 = vadd.f32 -2.0, %v1332_v36  ;;  %v2339_v51 = vmul.f32 %v3311_v21, %v2099_v47 }
 0x1c7   :  { %v1906_v25 = vsel %vm1842_vm11, %v2820_v41, %v1714_v48  ;;  %v1209_v55 = vmul.f32 8.0, %v1145_v20  ;;  %v2822_v58 = vadd.f32 -6.0, %v1332_v36  ;;  %vm1844_vm0 = vcmp.le.f32.partialorder %v3319_v27, -0.70710677 }
 0x1c8   :  { %2401 = vst [vmem:[#allocation10] sm:$0xff] %v2337_v46  ;;  %v2098_v54 = vsel %vm2034_vm12, %v2884_v35, %v1906_v25  ;;  %v1524_v26 = vsel %vm1460_vm13, %v2694_v50, %v1268_v19  ;;  %2403 = vst [vmem:[#allocation10 + $0x10] sm:$0xff] %v2339_v51  ;;  %v2886_v62 = vadd.f32 -8.0, %v1268_v19  ;;  %v2217_v1 = vmul.f32 %v3351_v9, %v3412_v49 }
 0x1c9   :  { %v2338_v60 = vmul.f32 %v3311_v21, %v2098_v54  ;;  %v1716_v63 = vsel %vm1652_vm14, %v2758_v52, %v1524_v26  ;;  %v1273_v3 = vadd.f32 1.0, %v1209_v55  ;;  %v3422_v4 = vpop.f32.mrb[12].mxu0  ;;  %v3424_v6 = vpop.f32.mrb[12].mxu1  ;;  %v1019_v5 = vmul.f32 %v3366_v61, %v3366_v61 }
 0x1ca   :  { %v1908_v2 = vsel %vm1844_vm0, %v2822_v58, %v1716_v63  ;;  %v3431_v7 = vclamps-f32 %v3321_v32, 1.0  ;;  %v3433_v10 = vpop.f32.mrb[13].mxu0  ;;  %v3435_v11 = vpop.f32.mrb[13].mxu1  ;;  %2281 = vst [vmem:[#allocation9 + $0x40] sm:$0xff] %v2217_v1  ;;  %vm1465_vm1 = vcmp.le.f32.partialorder %v3351_v9, 0.70710677  ;;  %v2219_v20 = vmul.f32 %v3366_v61, %v3412_v49 }
 0x1cb   :  { %2402 = vst [vmem:[#allocation10 + $0x8] sm:$0xff] %v2338_v60  ;;  %v2100_v13 = vsel %vm2036_vm15, %v2886_v62, %v1908_v2  ;;  %v1337_v15 = vsub.f32 0.0, %v1273_v3  ;;  %v3439_v16 = vpop.f32.mrb[14].mxu0  ;;  %v3441_v17 = vpop.f32.mrb[14].mxu1  ;;  %v2637_v19 = vadd.f32 -1.0, %v1019_v5  ;;  %v2763_v27 = vadd.f32 -4.0, %v1273_v3 }
 0x1cc   :  { %v2340_v18 = vmul.f32 %v3311_v21, %v2100_v13  ;;  %v3444_v28 = vpop.f32.mrb[15].mxu0  ;;  %vm1657_vm2 = vcmp.le.f32.partialorder %v3351_v9, 1.7948966e-09  ;;  %v3448_v30 = vpop.f32.mrb[15].mxu1  ;;  %v1018_v23 = vmul.f32 %v3431_v7, %v3431_v7  ;;  %vm1849_vm3 = vcmp.le.f32.partialorder %v3351_v9, -0.70710677 }
 0x1cd   :  { %v2699_v32 = vadd.f32 -2.0, %v1337_v15  ;;  %v1147_v31 = vmul.f32 %v2637_v19, %v1019_v5  ;;  %v2827_v35 = vadd.f32 -6.0, %v1337_v15  ;;  %v2891_v36 = vadd.f32 -8.0, %v1273_v3  ;;  %2283 = vst [vmem:[#allocation9 + $0x50] sm:$0xff] %v2219_v20  ;;  %v3492_v19 = vpop.permute.xlu1 %2181 }
 0x1ce   :  { %2404 = vst [vmem:[#allocation10 + $0x18] sm:$0xff] %v2340_v18  ;;  %v2636_v40 = vadd.f32 -1.0, %v1018_v23  ;;  %v2218_v41 = vmul.f32 %v3431_v7, %v3412_v49  ;;  %vm2041_vm4 = vcmp.le.f32.partialorder %v3351_v9, -1.0  ;;  %vm1467_vm5 = vcmp.le.f32.partialorder %v3366_v61, 0.70710677 }
 0x1cf   :  { %v1529_v34 = vsel %vm1465_vm1, %v2699_v32, %v1273_v3  ;;  %v1211_v39 = vmul.f32 8.0, %v1147_v31  ;;  %v3460_v47 = vclamps-f32 %v3323_v33, 1.0  ;;  %v3463_v25 = vclamps-f32 %v3334_v42, 1.0 }
 0x1d0   :  { %v1721_v37 = vsel %vm1657_vm2, %v2763_v27, %v1529_v34  ;;  %v1146_v51 = vmul.f32 %v2636_v40, %v1018_v23  ;;  %2282 = vst [vmem:[#allocation9 + $0x48] sm:$0xff] %v2218_v41  ;;  %vm1659_vm6 = vcmp.le.f32.partialorder %v3366_v61, 1.7948966e-09  ;;  %vm1851_vm7 = vcmp.le.f32.partialorder %v3366_v61, -0.70710677 }
 0x1d1   :  { %v1913_v46 = vsel %vm1849_vm3, %v2827_v35, %v1721_v37  ;;  %v1275_v50 = vadd.f32 1.0, %v1211_v39  ;;  %v1020_v9 = vmul.f32 %v3460_v47, %v3460_v47  ;;  %vm1466_vm8 = vcmp.le.f32.partialorder %v3431_v7, 0.70710677  ;;  %v3476_v26 = vpop.f32.mrb[16].mxu0  ;;  %v3478_v58 = vpop.f32.mrb[16].mxu1 }
 0x1d2   :  { %v2105_v48 = vsel %vm2041_vm4, %v2891_v36, %v1913_v46  ;;  %v1210_v54 = vmul.f32 8.0, %v1146_v51  ;;  %vm1658_vm9 = vcmp.le.f32.partialorder %v3431_v7, 1.7948966e-09  ;;  %vm2043_vm10 = vcmp.le.f32.partialorder %v3366_v61, -1.0  ;;  %v3505_v40 = vpop.f32.mrb[17].mxu0 }
 0x1d3   :  { %v2345_v52 = vmul.f32 %v3412_v49, %v2105_v48  ;;  %v1339_v55 = vsub.f32 0.0, %v1275_v50  ;;  %vm1850_vm11 = vcmp.le.f32.partialorder %v3431_v7, -0.70710677  ;;  %v2638_v33 = vadd.f32 -1.0, %v1020_v9 }
 0x1d4   :  { %v2220_v42 = vmul.f32 %v3460_v47, %v3412_v49  ;;  %v1274_v63 = vadd.f32 1.0, %v1210_v54  ;;  %vm2042_vm12 = vcmp.le.f32.partialorder %v3431_v7, -1.0  ;;  %v1025_v62 = vmul.f32 %v3463_v25, %v3463_v25 }
 0x1d5   :  { %2409 = vst [vmem:[#allocation10 + $0x40] sm:$0xff] %v2345_v52  ;;  %v2701_v60 = vadd.f32 -2.0, %v1339_v55  ;;  %v2765_v3 = vadd.f32 -4.0, %v1275_v50  ;;  %v1148_v2 = vmul.f32 %v2638_v33, %v1020_v9  ;;  %v3484_v1 = vclamps-f32 %v3336_v45, 1.0 }
 0x1d6   :  { %2284 = vst [vmem:[#allocation9 + $0x58] sm:$0xff] %v2220_v42  ;;  %v3487_v5 = vclamps-f32 %v3342_v43, 1.0  ;;  %v2829_v15 = vadd.f32 -6.0, %v1339_v55  ;;  %v1338_v18 = vsub.f32 0.0, %v1274_v63  ;;  %vm1468_vm13 = vcmp.le.f32.partialorder %v3460_v47, 0.70710677 }
 0x1d7   :  { %v1531_v13 = vsel %vm1467_vm5, %v2701_v60, %v1275_v50  ;;  %v2893_v27 = vadd.f32 -8.0, %v1275_v50  ;;  %v1212_v31 = vmul.f32 8.0, %v1148_v2  ;;  %vm1660_vm14 = vcmp.le.f32.partialorder %v3460_v47, 1.7948966e-09 }
 0x1d8   :  { %v1723_v32 = vsel %vm1659_vm6, %v2765_v3, %v1531_v13  ;;  %v2643_v45 = vadd.f32 -1.0, %v1025_v62  ;;  %v2700_v20 = vadd.f32 -2.0, %v1338_v18  ;;  %v2764_v23 = vadd.f32 -4.0, %v1274_v63 }
 0x1d9   :  { %v1915_v43 = vsel %vm1851_vm7, %v2829_v15, %v1723_v32  ;;  %v2225_v34 = vmul.f32 %v3463_v25, %v3492_v19  ;;  %v1276_v36 = vadd.f32 1.0, %v1212_v31  ;;  %v1027_v39 = vmul.f32 %v3484_v1, %v3484_v1 }
 0x1da   :  { %v2107_v35 = vsel %vm2043_vm10, %v2893_v27, %v1915_v43  ;;  %v1153_v37 = vmul.f32 %v2643_v45, %v1025_v62  ;;  %v1530_v46 = vsel %vm1466_vm8, %v2700_v20, %v1274_v63  ;;  %v2828_v48 = vadd.f32 -6.0, %v1338_v18  ;;  %v3531_v27 = vpop.f32.mrb[17].mxu1 }
 0x1db   :  { %v2347_v41 = vmul.f32 %v3412_v49, %v2107_v35  ;;  %vm1852_vm15 = vcmp.le.f32.partialorder %v3460_v47, -0.70710677  ;;  %2289 = vst [vmem:[#allocation9 + $0x80] sm:$0xff] %v2225_v34  ;;  %v1722_v61 = vsel %vm1658_vm9, %v2764_v23, %v1530_v46  ;;  %v2892_v50 = vadd.f32 -8.0, %v1274_v63 }
 0x1dc   :  { %v1340_v51 = vsub.f32 0.0, %v1276_v36  ;;  %vm2044_vm0 = vcmp.le.f32.partialorder %v3460_v47, -1.0  ;;  %v1914_v52 = vsel %vm1850_vm11, %v2828_v48, %v1722_v61  ;;  %v1217_v9 = vmul.f32 8.0, %v1153_v37  ;;  %v3548_v48 = vpop.f32.mrb[18].mxu0 }
 0x1dd   :  { %2411 = vst [vmem:[#allocation10 + $0x50] sm:$0xff] %v2347_v41  ;;  %vm1473_vm1 = vcmp.le.f32.partialorder %v3463_v25, 0.70710677  ;;  %v2645_v55 = vadd.f32 -1.0, %v1027_v39  ;;  %v2106_v54 = vsel %vm2042_vm12, %v2892_v50, %v1914_v52  ;;  %v2766_v42 = vadd.f32 -4.0, %v1276_v36 }
 0x1de   :  { %v2702_v33 = vadd.f32 -2.0, %v1340_v51  ;;  %vm1665_vm2 = vcmp.le.f32.partialorder %v3463_v25, 1.7948966e-09  ;;  %v2346_v60 = vmul.f32 %v3412_v49, %v2106_v54  ;;  %v1281_v63 = vadd.f32 1.0, %v1217_v9 }
 0x1df   :  { %v1155_v62 = vmul.f32 %v2645_v55, %v1027_v39  ;;  %v2227_v3 = vmul.f32 %v3484_v1, %v3492_v19  ;;  %v2830_v13 = vadd.f32 -6.0, %v1340_v51  ;;  %vm1857_vm3 = vcmp.le.f32.partialorder %v3463_v25, -0.70710677 }
 0x1e0   :  { %v1532_v2 = vsel %vm1468_vm13, %v2702_v33, %v1276_v36  ;;  %v1026_v7 = vmul.f32 %v3487_v5, %v3487_v5  ;;  %2410 = vst [vmem:[#allocation10 + $0x48] sm:$0xff] %v2346_v60  ;;  %v2894_v18 = vadd.f32 -8.0, %v1276_v36  ;;  %v1345_v32 = vsub.f32 0.0, %v1281_v63 }
 0x1e1   :  { %v1724_v15 = vsel %vm1660_vm14, %v2766_v42, %v1532_v2  ;;  %vm2049_vm4 = vcmp.le.f32.partialorder %v3463_v25, -1.0  ;;  %2291 = vst [vmem:[#allocation9 + $0x90] sm:$0xff] %v2227_v3  ;;  %v1219_v45 = vmul.f32 8.0, %v1155_v62  ;;  %vm1475_vm5 = vcmp.le.f32.partialorder %v3484_v1, 0.70710677 }
 0x1e2   :  { %v1916_v31 = vsel %vm1852_vm15, %v2830_v13, %v1724_v15  ;;  %v2644_v43 = vadd.f32 -1.0, %v1026_v7  ;;  %v2707_v23 = vadd.f32 -2.0, %v1345_v32  ;;  %v2771_v34 = vadd.f32 -4.0, %v1281_v63  ;;  %v3571_v13 = vpop.f32.mrb[18].mxu1 }
 0x1e3   :  { %v2108_v20 = vsel %vm2044_vm0, %v2894_v18, %v1916_v31  ;;  %vm1667_vm6 = vcmp.le.f32.partialorder %v3484_v1, 1.7948966e-09  ;;  %v1283_v36 = vadd.f32 1.0, %v1219_v45  ;;  %v2226_v39 = vmul.f32 %v3487_v5, %v3492_v19 }
 0x1e4   :  { %v2348_v35 = vmul.f32 %v3412_v49, %v2108_v20  ;;  %v1154_v37 = vmul.f32 %v2644_v43, %v1026_v7  ;;  %v1537_v41 = vsel %vm1473_vm1, %v2707_v23, %v1281_v63  ;;  %v2835_v46 = vadd.f32 -6.0, %v1345_v32 }
 0x1e5   :  { %vm1859_vm7 = vcmp.le.f32.partialorder %v3484_v1, -0.70710677  ;;  %v3546_v47 = vclamps-f32 %v3344_v44, 1.0  ;;  %v1729_v61 = vsel %vm1665_vm2, %v2771_v34, %v1537_v41  ;;  %v2899_v50 = vadd.f32 -8.0, %v1281_v63  ;;  %2290 = vst [vmem:[#allocation9 + $0x88] sm:$0xff] %v2226_v39  ;;  %v3585_v34 = vpop.permute.xlu1 %2186 }
 0x1e6   :  { %2412 = vst [vmem:[#allocation10 + $0x58] sm:$0xff] %v2348_v35  ;;  %v1347_v51 = vsub.f32 0.0, %v1283_v36  ;;  %v3553_v52 = vclamps-f32 %v3353_v8, 1.0  ;;  %v1921_v9 = vsel %vm1857_vm3, %v2835_v46, %v1729_v61  ;;  %vm2051_vm8 = vcmp.le.f32.partialorder %v3484_v1, -1.0 }
 0x1e7   :  { %v1218_v55 = vmul.f32 8.0, %v1154_v37  ;;  %v1028_v44 = vmul.f32 %v3546_v47, %v3546_v47  ;;  %v2113_v54 = vsel %vm2049_vm4, %v2899_v50, %v1921_v9  ;;  %vm1474_vm9 = vcmp.le.f32.partialorder %v3487_v5, 0.70710677 }
 0x1e8   :  { %v2709_v33 = vadd.f32 -2.0, %v1347_v51  ;;  %vm1666_vm10 = vcmp.le.f32.partialorder %v3487_v5, 1.7948966e-09  ;;  %v2353_v8 = vmul.f32 %v3492_v19, %v2113_v54  ;;  %v2773_v42 = vadd.f32 -4.0, %v1283_v36 }
 0x1e9   :  { %v1282_v60 = vadd.f32 1.0, %v1218_v55  ;;  %v2646_v63 = vadd.f32 -1.0, %v1028_v44  ;;  %v2837_v3 = vadd.f32 -6.0, %v1347_v51  ;;  %v2228_v2 = vmul.f32 %v3546_v47, %v3492_v19  ;;  %v3596_v55 = vpop.f32.mrb[19].mxu0 }
 0x1ea   :  { %v1539_v62 = vsel %vm1475_vm5, %v2709_v33, %v1283_v36  ;;  %v1033_v25 = vmul.f32 %v3553_v52, %v3553_v52  ;;  %2417 = vst [vmem:[#allocation10 + $0x80] sm:$0xff] %v2353_v8  ;;  %v2901_v15 = vadd.f32 -8.0, %v1283_v36  ;;  %v3576_v32 = vclamps-f32 %v3355_v53, 1.0 }
 0x1eb   :  { %v1731_v7 = vsel %vm1667_vm6, %v2773_v42, %v1539_v62  ;;  %v1346_v18 = vsub.f32 0.0, %v1282_v60  ;;  %vm1858_vm11 = vcmp.le.f32.partialorder %v3487_v5, -0.70710677  ;;  %v1156_v45 = vmul.f32 %v2646_v63, %v1028_v44  ;;  %2292 = vst [vmem:[#allocation9 + $0x98] sm:$0xff] %v2228_v2  ;;  %v3606_v42 = vpop.f32.mrb[19].mxu1 }
 0x1ec   :  { %v1923_v31 = vsel %vm1859_vm7, %v2837_v3, %v1731_v7  ;;  %v2651_v43 = vadd.f32 -1.0, %v1033_v25  ;;  %vm2050_vm12 = vcmp.le.f32.partialorder %v3487_v5, -1.0  ;;  %vm1476_vm13 = vcmp.le.f32.partialorder %v3546_v47, 0.70710677 }
 0x1ed   :  { %v2115_v20 = vsel %vm2051_vm8, %v2901_v15, %v1923_v31  ;;  %v2708_v23 = vadd.f32 -2.0, %v1346_v18  ;;  %v2772_v35 = vadd.f32 -4.0, %v1282_v60  ;;  %v1220_v36 = vmul.f32 8.0, %v1156_v45 }
 0x1ee   :  { %v2355_v53 = vmul.f32 %v3492_v19, %v2115_v20  ;;  %v1161_v37 = vmul.f32 %v2651_v43, %v1033_v25  ;;  %v2836_v41 = vadd.f32 -6.0, %v1346_v18  ;;  %v2233_v1 = vmul.f32 %v3553_v52, %v3585_v34 }
 0x1ef   :  { %v1538_v39 = vsel %vm1474_vm9, %v2708_v23, %v1282_v60  ;;  %v1035_v46 = vmul.f32 %v3576_v32, %v3576_v32  ;;  %v2900_v50 = vadd.f32 -8.0, %v1282_v60  ;;  %v1284_v51 = vadd.f32 1.0, %v1220_v36 }
 0x1f0   :  { %2419 = vst [vmem:[#allocation10 + $0x90] sm:$0xff] %v2355_v53  ;;  %v1730_v61 = vsel %vm1666_vm10, %v2772_v35, %v1538_v39  ;;  %v1225_v9 = vmul.f32 8.0, %v1161_v37  ;;  %vm1668_vm14 = vcmp.le.f32.partialorder %v3546_v47, 1.7948966e-09  ;;  %vm1860_vm15 = vcmp.le.f32.partialorder %v3546_v47, -0.70710677 }
 0x1f1   :  { %v1922_v44 = vsel %vm1858_vm11, %v2836_v41, %v1730_v61  ;;  %2297 = vst [vmem:[#allocation9 + $0xc0] sm:$0xff] %v2233_v1  ;;  %v2653_v54 = vadd.f32 -1.0, %v1035_v46  ;;  %v1348_v8 = vsub.f32 0.0, %v1284_v51  ;;  %vm2052_vm0 = vcmp.le.f32.partialorder %v3546_v47, -1.0 }
 0x1f2   :  { %v2114_v33 = vsel %vm2050_vm12, %v2900_v50, %v1922_v44  ;;  %vm1481_vm1 = vcmp.le.f32.partialorder %v3553_v52, 0.70710677  ;;  %v1289_v63 = vadd.f32 1.0, %v1225_v9  ;;  %vm1673_vm2 = vcmp.le.f32.partialorder %v3553_v52, 1.7948966e-09 }
 0x1f3   :  { %v2354_v60 = vmul.f32 %v3492_v19, %v2114_v33  ;;  %v1163_v62 = vmul.f32 %v2653_v54, %v1035_v46  ;;  %v2710_v3 = vadd.f32 -2.0, %v1348_v8  ;;  %vm1865_vm3 = vcmp.le.f32.partialorder %v3553_v52, -0.70710677 }
 0x1f4   :  { %v2235_v5 = vmul.f32 %v3576_v32, %v3585_v34  ;;  %v3614_v2 = vclamps-f32 %v3359_v56, 1.0  ;;  %v2774_v25 = vadd.f32 -4.0, %v1284_v51  ;;  %v1353_v7 = vsub.f32 0.0, %v1289_v63 }
 0x1f5   :  { %2418 = vst [vmem:[#allocation10 + $0x88] sm:$0xff] %v2354_v60  ;;  %vm2057_vm4 = vcmp.le.f32.partialorder %v3553_v52, -1.0  ;;  %v1227_v15 = vmul.f32 8.0, %v1163_v62  ;;  %v1540_v18 = vsel %vm1476_vm13, %v2710_v3, %v1284_v51  ;;  %v2838_v31 = vadd.f32 -6.0, %v1348_v8 }
 0x1f6   :  { %vm1483_vm5 = vcmp.le.f32.partialorder %v3576_v32, 0.70710677  ;;  %2299 = vst [vmem:[#allocation9 + $0xd0] sm:$0xff] %v2235_v5  ;;  %v1034_v45 = vmul.f32 %v3614_v2, %v3614_v2  ;;  %v1732_v56 = vsel %vm1668_vm14, %v2774_v25, %v1540_v18  ;;  %v2902_v43 = vadd.f32 -8.0, %v1284_v51 }
 0x1f7   :  { %v2715_v20 = vadd.f32 -2.0, %v1353_v7  ;;  %v1291_v23 = vadd.f32 1.0, %v1227_v15  ;;  %v1924_v53 = vsel %vm1860_vm15, %v2838_v31, %v1732_v56  ;;  %v2779_v35 = vadd.f32 -4.0, %v1289_v63  ;;  %v3663_v56 = vpop.f32.mrb[20].mxu1 }
 0x1f8   :  { %vm1675_vm6 = vcmp.le.f32.partialorder %v3576_v32, 1.7948966e-09  ;;  %v2652_v36 = vadd.f32 -1.0, %v1034_v45  ;;  %v2116_v37 = vsel %vm2052_vm0, %v2902_v43, %v1924_v53  ;;  %v2843_v41 = vadd.f32 -6.0, %v1353_v7 }
 0x1f9   :  { %v1545_v39 = vsel %vm1481_vm1, %v2715_v20, %v1289_v63  ;;  %v1355_v1 = vsub.f32 0.0, %v1291_v23  ;;  %v2356_v46 = vmul.f32 %v3492_v19, %v2116_v37  ;;  %v2907_v50 = vadd.f32 -8.0, %v1289_v63 }
 0x1fa   :  { %v1737_v61 = vsel %vm1673_vm2, %v2779_v35, %v1545_v39  ;;  %v1162_v51 = vmul.f32 %v2652_v36, %v1034_v45  ;;  %vm1867_vm7 = vcmp.le.f32.partialorder %v3576_v32, -0.70710677  ;;  %v2234_v47 = vmul.f32 %v3614_v2, %v3585_v34 }
 0x1fb   :  { %v1929_v9 = vsel %vm1865_vm3, %v2843_v41, %v1737_v61  ;;  %v2717_v44 = vadd.f32 -2.0, %v1355_v1  ;;  %2420 = vst [vmem:[#allocation10 + $0x98] sm:$0xff] %v2356_v46  ;;  %v2781_v33 = vadd.f32 -4.0, %v1291_v23  ;;  %v3642_v60 = vclamps-f32 %v3361_v57, 1.0  ;;  %v3654_v57 = vpop.f32.mrb[20].mxu0 }
 0x1fc   :  { %v2121_v54 = vsel %vm2057_vm4, %v2907_v50, %v1929_v9  ;;  %v1226_v8 = vmul.f32 8.0, %v1162_v51  ;;  %v2845_v3 = vadd.f32 -6.0, %v1355_v1  ;;  %2298 = vst [vmem:[#allocation9 + $0xc8] sm:$0xff] %v2234_v47  ;;  %v3648_v5 = vclamps-f32 %v3371_v12, 1.0 }
 0x1fd   :  { %v2361_v63 = vmul.f32 %v3585_v34, %v2121_v54  ;;  %v1547_v62 = vsel %vm1483_vm5, %v2717_v44, %v1291_v23  ;;  %v2909_v52 = vadd.f32 -8.0, %v1291_v23  ;;  %v1036_v15 = vmul.f32 %v3642_v60, %v3642_v60  ;;  %v3690_v54 = vpop.f32.mrb[21].mxu0 }
 0x1fe   :  { %v1739_v25 = vsel %vm1675_vm6, %v2781_v33, %v1547_v62  ;;  %v1290_v7 = vadd.f32 1.0, %v1226_v8  ;;  %vm2059_vm8 = vcmp.le.f32.partialorder %v3576_v32, -1.0  ;;  %vm1482_vm9 = vcmp.le.f32.partialorder %v3614_v2, 0.70710677 }
 0x1ff   :  { %2425 = vst [vmem:[#allocation10 + $0xc0] sm:$0xff] %v2361_v63  ;;  %v1931_v18 = vsel %vm1867_vm7, %v2845_v3, %v1739_v25  ;;  %v3661_v12 = vclamps-f32 %v3373_v14, 1.0  ;;  %v2654_v20 = vadd.f32 -1.0, %v1036_v15  ;;  %v2236_v23 = vmul.f32 %v3642_v60, %v3585_v34  ;;  %v3673_v14 = vpop.permute.xlu1 %2191 }
 0x200   :  { %v2123_v31 = vsel %vm2059_vm8, %v2909_v52, %v1931_v18  ;;  %v1354_v45 = vsub.f32 0.0, %v1290_v7  ;;  %v1041_v53 = vmul.f32 %v3648_v5, %v3648_v5  ;;  %vm1674_vm10 = vcmp.le.f32.partialorder %v3614_v2, 1.7948966e-09 }
 0x201   :  { %v2363_v43 = vmul.f32 %v3585_v34, %v2123_v31  ;;  %vm1866_vm11 = vcmp.le.f32.partialorder %v3614_v2, -0.70710677  ;;  %vm2058_vm12 = vcmp.le.f32.partialorder %v3614_v2, -1.0  ;;  %v2780_v32 = vadd.f32 -4.0, %v1290_v7  ;;  %2300 = vst [vmem:[#allocation9 + $0xd8] sm:$0xff] %v2236_v23  ;;  %v3702_v2 = vpop.f32.mrb[21].mxu1 }
 0x202   :  { %v2716_v35 = vadd.f32 -2.0, %v1354_v45  ;;  %v1164_v36 = vmul.f32 %v2654_v20, %v1036_v15  ;;  %v2659_v37 = vadd.f32 -1.0, %v1041_v53  ;;  %v3676_v39 = vclamps-f32 %v3378_v59, 1.0 }
 0x203   :  { %2427 = vst [vmem:[#allocation10 + $0xd0] sm:$0xff] %v2363_v43  ;;  %v2844_v1 = vadd.f32 -6.0, %v1354_v45  ;;  %vm1484_vm13 = vcmp.le.f32.partialorder %v3642_v60, 0.70710677  ;;  %v2241_v46 = vmul.f32 %v3648_v5, %v3673_v14  ;;  %v1043_v61 = vmul.f32 %v3661_v12, %v3661_v12 }
 0x204   :  { %v1546_v41 = vsel %vm1482_vm9, %v2716_v35, %v1290_v7  ;;  %v2908_v51 = vadd.f32 -8.0, %v1290_v7  ;;  %v1228_v9 = vmul.f32 8.0, %v1164_v36  ;;  %vm1676_vm14 = vcmp.le.f32.partialorder %v3642_v60, 1.7948966e-09 }
 0x205   :  { %v1738_v50 = vsel %vm1674_vm10, %v2780_v32, %v1546_v41  ;;  %v1169_v44 = vmul.f32 %v2659_v37, %v1041_v53  ;;  %vm1868_vm15 = vcmp.le.f32.partialorder %v3642_v60, -0.70710677  ;;  %vm1489_vm0 = vcmp.le.f32.partialorder %v3648_v5, 0.70710677  ;;  %2305 = vst [vmem:[#allocation9 + $0x100] sm:$0xff] %v2241_v46  ;;  %v3711_v46 = vpop.f32.mrb[22].mxu0 }
 0x206   :  { %v1930_v59 = vsel %vm1866_vm11, %v2844_v1, %v1738_v50  ;;  %v2661_v47 = vadd.f32 -1.0, %v1043_v61  ;;  %v1292_v8 = vadd.f32 1.0, %v1228_v9  ;;  %v2243_v62 = vmul.f32 %v3661_v12, %v3673_v14 }
 0x207   :  { %v2122_v33 = vsel %vm2058_vm12, %v2908_v51, %v1930_v59  ;;  %v1233_v63 = vmul.f32 8.0, %v1169_v44  ;;  %vm1681_vm1 = vcmp.le.f32.partialorder %v3648_v5, 1.7948966e-09  ;;  %v1042_v52 = vmul.f32 %v3676_v39, %v3676_v39 }
 0x208   :  { %v2362_v3 = vmul.f32 %v3585_v34, %v2122_v33  ;;  %v1171_v25 = vmul.f32 %v2661_v47, %v1043_v61  ;;  %v1356_v7 = vsub.f32 0.0, %v1292_v8  ;;  %vm2060_vm2 = vcmp.le.f32.partialorder %v3642_v60, -1.0  ;;  %2307 = vst [vmem:[#allocation9 + $0x110] sm:$0xff] %v2243_v62 }
 0x209   :  { %v1297_v15 = vadd.f32 1.0, %v1233_v63  ;;  %vm1873_vm3 = vcmp.le.f32.partialorder %v3648_v5, -0.70710677  ;;  %vm2065_vm4 = vcmp.le.f32.partialorder %v3648_v5, -1.0  ;;  %vm1491_vm5 = vcmp.le.f32.partialorder %v3661_v12, 0.70710677 }
 0x20a   :  { %2426 = vst [vmem:[#allocation10 + $0xc8] sm:$0xff] %v2362_v3  ;;  %v1235_v18 = vmul.f32 8.0, %v1171_v25  ;;  %v2660_v31 = vadd.f32 -1.0, %v1042_v52  ;;  %v2718_v45 = vadd.f32 -2.0, %v1356_v7  ;;  %v2782_v43 = vadd.f32 -4.0, %v1292_v8 }
 0x20b   :  { %v1361_v20 = vsub.f32 0.0, %v1297_v15  ;;  %vm1683_vm6 = vcmp.le.f32.partialorder %v3661_v12, 1.7948966e-09  ;;  %v2846_v23 = vadd.f32 -6.0, %v1356_v7  ;;  %v2910_v53 = vadd.f32 -8.0, %v1292_v8 }
 0x20c   :  { %v1299_v35 = vadd.f32 1.0, %v1235_v18  ;;  %v1170_v32 = vmul.f32 %v2660_v31, %v1042_v52  ;;  %v1548_v36 = vsel %vm1484_vm13, %v2718_v45, %v1292_v8  ;;  %v2787_v41 = vadd.f32 -4.0, %v1297_v15 }
 0x20d   :  { %v2723_v37 = vadd.f32 -2.0, %v1361_v20  ;;  %v2242_v1 = vmul.f32 %v3676_v39, %v3673_v14  ;;  %v1740_v61 = vsel %vm1676_vm14, %v2782_v43, %v1548_v36  ;;  %v2851_v50 = vadd.f32 -6.0, %v1361_v20 }
 0x20e   :  { %v2915_v51 = vadd.f32 -8.0, %v1297_v15  ;;  %v1363_v9 = vsub.f32 0.0, %v1299_v35  ;;  %v1932_v44 = vsel %vm1868_vm15, %v2846_v23, %v1740_v61  ;;  %v1234_v47 = vmul.f32 8.0, %v1170_v32  ;;  %v3748_v61 = vpop.f32.mrb[22].mxu1 }
 0x20f   :  { %v1553_v59 = vsel %vm1489_vm0, %v2723_v37, %v1297_v15  ;;  %2306 = vst [vmem:[#allocation9 + $0x108] sm:$0xff] %v2242_v1  ;;  %v3720_v33 = vclamps-f32 %v3380_v24, 1.0  ;;  %v2124_v8 = vsel %vm2060_vm2, %v2910_v53, %v1932_v44  ;;  %v2789_v3 = vadd.f32 -4.0, %v1299_v35 }
 0x210   :  { %v1745_v63 = vsel %vm1681_vm1, %v2787_v41, %v1553_v59  ;;  %v2725_v62 = vadd.f32 -2.0, %v1363_v9  ;;  %v2364_v25 = vmul.f32 %v3585_v34, %v2124_v8  ;;  %v1298_v7 = vadd.f32 1.0, %v1234_v47  ;;  %v3756_v8 = vpop.permute.xlu1 %2196 }
 0x211   :  { %v1937_v52 = vsel %vm1873_vm3, %v2851_v50, %v1745_v63  ;;  %v1044_v15 = vmul.f32 %v3720_v33, %v3720_v33  ;;  %v2853_v18 = vadd.f32 -6.0, %v1363_v9  ;;  %vm1875_vm7 = vcmp.le.f32.partialorder %v3661_v12, -0.70710677 }
 0x212   :  { %v2129_v24 = vsel %vm2065_vm4, %v2915_v51, %v1937_v52  ;;  %v1555_v60 = vsel %vm1491_vm5, %v2725_v62, %v1299_v35  ;;  %2428 = vst [vmem:[#allocation10 + $0xd8] sm:$0xff] %v2364_v25  ;;  %v2917_v43 = vadd.f32 -8.0, %v1299_v35  ;;  %v1362_v20 = vsub.f32 0.0, %v1298_v7 }
 0x213   :  { %v2369_v31 = vmul.f32 %v3673_v14, %v2129_v24  ;;  %v1747_v45 = vsel %vm1683_vm6, %v2789_v3, %v1555_v60  ;;  %vm2067_vm8 = vcmp.le.f32.partialorder %v3661_v12, -1.0  ;;  %vm1490_vm9 = vcmp.le.f32.partialorder %v3676_v39, 0.70710677 }
 0x214   :  { %v1939_v23 = vsel %vm1875_vm7, %v2853_v18, %v1747_v45  ;;  %v2662_v5 = vadd.f32 -1.0, %v1044_v15  ;;  %v2724_v32 = vadd.f32 -2.0, %v1362_v20  ;;  %v2788_v36 = vadd.f32 -4.0, %v1298_v7 }
 0x215   :  { %2433 = vst [vmem:[#allocation10 + $0x100] sm:$0xff] %v2369_v31  ;;  %v2131_v53 = vsel %vm2067_vm8, %v2917_v43, %v1939_v23  ;;  %vm1682_vm10 = vcmp.le.f32.partialorder %v3676_v39, 1.7948966e-09  ;;  %v2244_v1 = vmul.f32 %v3720_v33, %v3673_v14  ;;  %v3746_v35 = vclamps-f32 %v3386_v22, 1.0 }
 0x216   :  { %v2371_v37 = vmul.f32 %v3673_v14, %v2131_v53  ;;  %v1172_v41 = vmul.f32 %v2662_v5, %v1044_v15  ;;  %v1554_v12 = vsel %vm1490_vm9, %v2724_v32, %v1298_v7  ;;  %v2852_v50 = vadd.f32 -6.0, %v1362_v20  ;;  %v3769_v15 = vpop.f32.mrb[23].mxu0  ;;  %v3782_v20 = vpop.f32.mrb[23].mxu1 }
 0x217   :  { %vm1874_vm11 = vcmp.le.f32.partialorder %v3676_v39, -0.70710677  ;;  %v3752_v51 = vclamps-f32 %v3388_v29, 1.0  ;;  %v1746_v9 = vsel %vm1682_vm10, %v2788_v36, %v1554_v12  ;;  %v2916_v44 = vadd.f32 -8.0, %v1298_v7  ;;  %2308 = vst [vmem:[#allocation9 + $0x118] sm:$0xff] %v2244_v1 }
 0x218   :  { %2435 = vst [vmem:[#allocation10 + $0x110] sm:$0xff] %v2371_v37  ;;  %v1236_v59 = vmul.f32 8.0, %v1172_v41  ;;  %v1049_v47 = vmul.f32 %v3746_v35, %v3746_v35  ;;  %v1938_v22 = vsel %vm1874_vm11, %v2852_v50, %v1746_v9  ;;  %vm2066_vm12 = vcmp.le.f32.partialorder %v3676_v39, -1.0 }
 0x219   :  { %v3760_v63 = vclamps-f32 %v3394_v38, 1.0  ;;  %v2130_v62 = vsel %vm2066_vm12, %v2916_v44, %v1938_v22  ;;  %v2249_v25 = vmul.f32 %v3746_v35, %v3756_v8  ;;  %vm1492_vm13 = vcmp.le.f32.partialorder %v3720_v33, 0.70710677 }
 0x21a   :  { %v1300_v3 = vadd.f32 1.0, %v1236_v59  ;;  %v2667_v29 = vadd.f32 -1.0, %v1049_v47  ;;  %v2370_v52 = vmul.f32 %v3673_v14, %v2130_v62  ;;  %vm1684_vm14 = vcmp.le.f32.partialorder %v3720_v33, 1.7948966e-09 }
 0x21b   :  { %v1051_v7 = vmul.f32 %v3752_v51, %v3752_v51  ;;  %vm1876_vm15 = vcmp.le.f32.partialorder %v3720_v33, -0.70710677  ;;  %vm2068_vm0 = vcmp.le.f32.partialorder %v3720_v33, -1.0  ;;  %2313 = vst [vmem:[#allocation9 + $0x140] sm:$0xff] %v2249_v25  ;;  %vm1497_vm1 = vcmp.le.f32.partialorder %v3746_v35, 0.70710677 }
 0x21c   :  { %v1364_v39 = vsub.f32 0.0, %v1300_v3  ;;  %v1177_v38 = vmul.f32 %v2667_v29, %v1049_v47  ;;  %2434 = vst [vmem:[#allocation10 + $0x108] sm:$0xff] %v2370_v52  ;;  %v2251_v60 = vmul.f32 %v3752_v51, %v3756_v8  ;;  %v3777_v18 = vclamps-f32 %v3396_v0, 1.0 }
 0x21d   :  { %v2669_v24 = vadd.f32 -1.0, %v1051_v7  ;;  %vm1689_vm2 = vcmp.le.f32.partialorder %v3746_v35, 1.7948966e-09  ;;  %v1050_v43 = vmul.f32 %v3760_v63, %v3760_v63  ;;  %v2790_v23 = vadd.f32 -4.0, %v1300_v3 }
 0x21e   :  { %v2726_v31 = vadd.f32 -2.0, %v1364_v39  ;;  %v1241_v45 = vmul.f32 8.0, %v1177_v38  ;;  %v2918_v5 = vadd.f32 -8.0, %v1300_v3  ;;  %vm1881_vm3 = vcmp.le.f32.partialorder %v3746_v35, -0.70710677  ;;  %2315 = vst [vmem:[#allocation9 + $0x150] sm:$0xff] %v2251_v60 }
 0x21f   :  { %v1179_v53 = vmul.f32 %v2669_v24, %v1051_v7  ;;  %v2854_v0 = vadd.f32 -6.0, %v1364_v39  ;;  %vm2073_vm4 = vcmp.le.f32.partialorder %v3746_v35, -1.0  ;;  %vm1499_vm5 = vcmp.le.f32.partialorder %v3752_v51, 0.70710677 }
 0x220   :  { %v1556_v32 = vsel %vm1492_vm13, %v2726_v31, %v1300_v3  ;;  %v1305_v36 = vadd.f32 1.0, %v1241_v45  ;;  %v2668_v37 = vadd.f32 -1.0, %v1050_v43  ;;  %v2250_v12 = vmul.f32 %v3760_v63, %v3756_v8 }
 0x221   :  { %v1748_v41 = vsel %vm1684_vm14, %v2790_v23, %v1556_v32  ;;  %v1243_v1 = vmul.f32 8.0, %v1179_v53  ;;  %v1052_v50 = vmul.f32 %v3777_v18, %v3777_v18  ;;  %vm1691_vm6 = vcmp.le.f32.partialorder %v3752_v51, 1.7948966e-09 }
 0x222   :  { %v1940_v9 = vsel %vm1876_vm15, %v2854_v0, %v1748_v41  ;;  %v1369_v44 = vsub.f32 0.0, %v1305_v36  ;;  %vm1883_vm7 = vcmp.le.f32.partialorder %v3752_v51, -0.70710677  ;;  %v1178_v22 = vmul.f32 %v2668_v37, %v1050_v43  ;;  %2314 = vst [vmem:[#allocation9 + $0x148] sm:$0xff] %v2250_v12  ;;  %v3820_v41 = vpop.f32.mrb[24].mxu0 }
 0x223   :  { %v2132_v59 = vsel %vm2068_vm0, %v2918_v5, %v1940_v9  ;;  %v1307_v47 = vadd.f32 1.0, %v1243_v1  ;;  %v2670_v62 = vadd.f32 -1.0, %v1052_v50  ;;  %vm2075_vm8 = vcmp.le.f32.partialorder %v3752_v51, -1.0  ;;  %v3822_v1 = vpop.f32.mrb[24].mxu1 }
 0x224   :  { %v2372_v3 = vmul.f32 %v3673_v14, %v2132_v59  ;;  %v2731_v29 = vadd.f32 -2.0, %v1369_v44  ;;  %vm1498_vm9 = vcmp.le.f32.partialorder %v3760_v63, 0.70710677  ;;  %v2795_v25 = vadd.f32 -4.0, %v1305_v36 }
 0x225   :  { %v1371_v52 = vsub.f32 0.0, %v1307_v47  ;;  %v1242_v7 = vmul.f32 8.0, %v1178_v22  ;;  %vm1690_vm10 = vcmp.le.f32.partialorder %v3760_v63, 1.7948966e-09  ;;  %v2859_v39 = vadd.f32 -6.0, %v1369_v44 }
 0x226   :  { %2436 = vst [vmem:[#allocation10 + $0x118] sm:$0xff] %v2372_v3  ;;  %v1561_v33 = vsel %vm1497_vm1, %v2731_v29, %v1305_v36  ;;  %v2923_v38 = vadd.f32 -8.0, %v1305_v36  ;;  %vm1882_vm11 = vcmp.le.f32.partialorder %v3760_v63, -0.70710677  ;;  %v1180_v24 = vmul.f32 %v2670_v62, %v1052_v50 }
 0x227   :  { %v1753_v60 = vsel %vm1689_vm2, %v2795_v25, %v1561_v33  ;;  %v2733_v31 = vadd.f32 -2.0, %v1371_v52  ;;  %v1306_v45 = vadd.f32 1.0, %v1242_v7  ;;  %vm2074_vm12 = vcmp.le.f32.partialorder %v3760_v63, -1.0 }
 0x228   :  { %vm1500_vm13 = vcmp.le.f32.partialorder %v3777_v18, 0.70710677  ;;  %v1945_v43 = vsel %vm1881_vm3, %v2859_v39, %v1753_v60  ;;  %v2797_v23 = vadd.f32 -4.0, %v1307_v47  ;;  %v1244_v5 = vmul.f32 8.0, %v1180_v24 }
 0x229   :  { %v2252_v53 = vmul.f32 %v3777_v18, %v3756_v8  ;;  %v2137_v32 = vsel %vm2073_vm4, %v2923_v38, %v1945_v43  ;;  %v1563_v0 = vsel %vm1499_vm5, %v2733_v31, %v1307_v47  ;;  %v2861_v36 = vadd.f32 -6.0, %v1371_v52  ;;  %v3843_v38 = vpop.permute.xlu1 %2201 }
 0x22a   :  { %v1370_v37 = vsub.f32 0.0, %v1306_v45  ;;  %v2377_v12 = vmul.f32 %v3756_v8, %v2137_v32  ;;  %v1755_v50 = vsel %vm1691_vm6, %v2797_v23, %v1563_v0  ;;  %v2925_v9 = vadd.f32 -8.0, %v1307_v47  ;;  %v3856_v32 = vpop.f32.mrb[25].mxu0 }
 0x22b   :  { %v1308_v44 = vadd.f32 1.0, %v1244_v5  ;;  %2316 = vst [vmem:[#allocation9 + $0x158] sm:$0xff] %v2252_v53  ;;  %v1947_v35 = vsel %vm1883_vm7, %v2861_v36, %v1755_v50  ;;  %vm1692_vm14 = vcmp.le.f32.partialorder %v3777_v18, 1.7948966e-09  ;;  %v3831_v22 = vclamps-f32 %v3422_v4, 1.0 }
 0x22c   :  { %v2732_v59 = vadd.f32 -2.0, %v1370_v37  ;;  %2441 = vst [vmem:[#allocation10 + $0x140] sm:$0xff] %v2377_v12  ;;  %v2139_v62 = vsel %vm2075_vm8, %v2925_v9, %v1947_v35  ;;  %v2796_v3 = vadd.f32 -4.0, %v1306_v45  ;;  %vm1884_vm15 = vcmp.le.f32.partialorder %v3777_v18, -0.70710677 }
 0x22d   :  { %v1372_v29 = vsub.f32 0.0, %v1308_v44  ;;  %v2379_v47 = vmul.f32 %v3756_v8, %v2139_v62  ;;  %v2860_v52 = vadd.f32 -6.0, %v1370_v37  ;;  %v1057_v7 = vmul.f32 %v3831_v22, %v3831_v22 }
 0x22e   :  { %v1562_v25 = vsel %vm1498_vm9, %v2732_v59, %v1306_v45  ;;  %v2924_v33 = vadd.f32 -8.0, %v1306_v45  ;;  %v2798_v51 = vadd.f32 -4.0, %v1308_v44  ;;  %v2926_v31 = vadd.f32 -8.0, %v1308_v44 }
 0x22f   :  { %v1754_v4 = vsel %vm1690_vm10, %v2796_v3, %v1562_v25  ;;  %v2734_v39 = vadd.f32 -2.0, %v1372_v29  ;;  %2443 = vst [vmem:[#allocation10 + $0x150] sm:$0xff] %v2379_v47  ;;  %v2862_v60 = vadd.f32 -6.0, %v1372_v29  ;;  %v2675_v43 = vadd.f32 -1.0, %v1057_v7  ;;  %v3878_v47 = vpop.f32.mrb[25].mxu1 }
 0x230   :  { %v1946_v24 = vsel %vm1882_vm11, %v2860_v52, %v1754_v4  ;;  %v2257_v45 = vmul.f32 %v3831_v22, %v3843_v38  ;;  %v3854_v53 = vclamps-f32 %v3424_v6, 1.0  ;;  %v3862_v63 = vclamps-f32 %v3433_v10, 1.0 }
 0x231   :  { %v2138_v23 = vsel %vm2074_vm12, %v2924_v33, %v1946_v24  ;;  %v1564_v5 = vsel %vm1500_vm13, %v2734_v39, %v1308_v44  ;;  %v1185_v37 = vmul.f32 %v2675_v43, %v1057_v7  ;;  %vm2076_vm0 = vcmp.le.f32.partialorder %v3777_v18, -1.0  ;;  %v3893_v24 = vpop.f32.mrb[26].mxu0 }
 0x232   :  { %v2378_v0 = vmul.f32 %v3756_v8, %v2138_v23  ;;  %v1756_v36 = vsel %vm1692_vm14, %v2798_v51, %v1564_v5  ;;  %2321 = vst [vmem:[#allocation9 + $0x180] sm:$0xff] %v2257_v45  ;;  %v1059_v6 = vmul.f32 %v3854_v53, %v3854_v53  ;;  %v2259_v59 = vmul.f32 %v3854_v53, %v3843_v38 }
 0x233   :  { %v1948_v12 = vsel %vm1884_vm15, %v2862_v60, %v1756_v36  ;;  %v1249_v9 = vmul.f32 8.0, %v1185_v37  ;;  %v1058_v10 = vmul.f32 %v3862_v63, %v3862_v63  ;;  %vm1505_vm1 = vcmp.le.f32.partialorder %v3831_v22, 0.70710677 }
 0x234   :  { %2442 = vst [vmem:[#allocation10 + $0x148] sm:$0xff] %v2378_v0  ;;  %v2140_v50 = vsel %vm2076_vm0, %v2926_v31, %v1948_v12  ;;  %v2677_v35 = vadd.f32 -1.0, %v1059_v6  ;;  %vm1697_vm2 = vcmp.le.f32.partialorder %v3831_v22, 1.7948966e-09  ;;  %2323 = vst [vmem:[#allocation9 + $0x190] sm:$0xff] %v2259_v59  ;;  %v2258_v29 = vmul.f32 %v3862_v63, %v3843_v38 }
 0x235   :  { %v2380_v44 = vmul.f32 %v3756_v8, %v2140_v50  ;;  %v1313_v62 = vadd.f32 1.0, %v1249_v9  ;;  %v2676_v3 = vadd.f32 -1.0, %v1058_v10  ;;  %vm1889_vm3 = vcmp.le.f32.partialorder %v3831_v22, -0.70710677  ;;  %v3908_v9 = vpop.f32.mrb[26].mxu1 }
 0x236   :  { %v1187_v18 = vmul.f32 %v2677_v35, %v1059_v6  ;;  %vm2081_vm4 = vcmp.le.f32.partialorder %v3831_v22, -1.0  ;;  %v3883_v52 = vclamps-f32 %v3435_v11, 1.0  ;;  %vm1507_vm5 = vcmp.le.f32.partialorder %v3854_v53, 0.70710677  ;;  %2322 = vst [vmem:[#allocation9 + $0x188] sm:$0xff] %v2258_v29 }
 0x237   :  { %2444 = vst [vmem:[#allocation10 + $0x158] sm:$0xff] %v2380_v44  ;;  %v1377_v25 = vsub.f32 0.0, %v1313_v62  ;;  %vm1699_vm6 = vcmp.le.f32.partialorder %v3854_v53, 1.7948966e-09  ;;  %v1186_v4 = vmul.f32 %v2676_v3, %v1058_v10  ;;  %vm1891_vm7 = vcmp.le.f32.partialorder %v3854_v53, -0.70710677 }
 0x238   :  { %v1251_v7 = vmul.f32 8.0, %v1187_v18  ;;  %v1060_v39 = vmul.f32 %v3883_v52, %v3883_v52  ;;  %v3891_v51 = vclamps-f32 %v3439_v16, 1.0  ;;  %v2803_v11 = vadd.f32 -4.0, %v1313_v62 }
 0x239   :  { %v2739_v33 = vadd.f32 -2.0, %v1377_v25  ;;  %vm2083_vm8 = vcmp.le.f32.partialorder %v3854_v53, -1.0  ;;  %v1250_v31 = vmul.f32 8.0, %v1186_v4  ;;  %vm1506_vm9 = vcmp.le.f32.partialorder %v3862_v63, 0.70710677 }
 0x23a   :  { %v1315_v60 = vadd.f32 1.0, %v1251_v7  ;;  %v2867_v23 = vadd.f32 -6.0, %v1377_v25  ;;  %v2678_v5 = vadd.f32 -1.0, %v1060_v39  ;;  %v2260_v45 = vmul.f32 %v3883_v52, %v3843_v38 }
 0x23b   :  { %v1569_v43 = vsel %vm1505_vm1, %v2739_v33, %v1313_v62  ;;  %v2931_v0 = vadd.f32 -8.0, %v1313_v62  ;;  %vm1698_vm10 = vcmp.le.f32.partialorder %v3862_v63, 1.7948966e-09  ;;  %v1314_v12 = vadd.f32 1.0, %v1250_v31 }
 0x23c   :  { %v1761_v16 = vsel %vm1697_vm2, %v2803_v11, %v1569_v43  ;;  %v1379_v36 = vsub.f32 0.0, %v1315_v60  ;;  %v1188_v6 = vmul.f32 %v2678_v5, %v1060_v39  ;;  %2324 = vst [vmem:[#allocation9 + $0x198] sm:$0xff] %v2260_v45  ;;  %v1065_v50 = vmul.f32 %v3891_v51, %v3891_v51  ;;  %v3922_v11 = vpop.permute.xlu1 %2206  ;;  %v3926_v5 = vpop.f32.mrb[27].mxu0 }
 0x23d   :  { %v1953_v37 = vsel %vm1889_vm3, %v2867_v23, %v1761_v16  ;;  %vm1890_vm11 = vcmp.le.f32.partialorder %v3862_v63, -0.70710677  ;;  %vm2082_vm12 = vcmp.le.f32.partialorder %v3862_v63, -1.0  ;;  %v2805_v10 = vadd.f32 -4.0, %v1315_v60 }
 0x23e   :  { %v2145_v44 = vsel %vm2081_vm4, %v2931_v0, %v1953_v37  ;;  %v2741_v35 = vadd.f32 -2.0, %v1379_v36  ;;  %v1378_v62 = vsub.f32 0.0, %v1314_v12  ;;  %v3916_v18 = vclamps-f32 %v3441_v17, 1.0 }
 0x23f   :  { %v2385_v59 = vmul.f32 %v3843_v38, %v2145_v44  ;;  %v2869_v29 = vadd.f32 -6.0, %v1379_v36  ;;  %v1252_v25 = vmul.f32 8.0, %v1188_v6  ;;  %v2683_v7 = vadd.f32 -1.0, %v1065_v50 }
 0x240   :  { %v1571_v3 = vsel %vm1507_vm5, %v2741_v35, %v1315_v60  ;;  %v2933_v4 = vadd.f32 -8.0, %v1315_v60  ;;  %v2740_v33 = vadd.f32 -2.0, %v1378_v62  ;;  %v2804_v39 = vadd.f32 -4.0, %v1314_v12 }
 0x241   :  { %2449 = vst [vmem:[#allocation10 + $0x180] sm:$0xff] %v2385_v59  ;;  %v1763_v22 = vsel %vm1699_vm6, %v2805_v10, %v1571_v3  ;;  %v2868_v17 = vadd.f32 -6.0, %v1378_v62  ;;  %v1316_v43 = vadd.f32 1.0, %v1252_v25  ;;  %v1193_v23 = vmul.f32 %v2683_v7, %v1065_v50 }
 0x242   :  { %v1955_v31 = vsel %vm1891_vm7, %v2869_v29, %v1763_v22  ;;  %v1570_v16 = vsel %vm1506_vm9, %v2740_v33, %v1314_v12  ;;  %v2265_v60 = vmul.f32 %v3891_v51, %v3922_v11  ;;  %v1067_v0 = vmul.f32 %v3916_v18, %v3916_v18 }
 0x243   :  { %v2147_v45 = vsel %vm2083_vm8, %v2933_v4, %v1955_v31  ;;  %v1762_v37 = vsel %vm1698_vm10, %v2804_v39, %v1570_v16  ;;  %v2932_v6 = vadd.f32 -8.0, %v1314_v12  ;;  %v1380_v50 = vsub.f32 0.0, %v1316_v43  ;;  %v3950_v4 = vpop.f32.mrb[27].mxu1 }
 0x244   :  { %v2387_v36 = vmul.f32 %v3843_v38, %v2147_v45  ;;  %v1954_v53 = vsel %vm1890_vm11, %v2868_v17, %v1762_v37  ;;  %vm1508_vm13 = vcmp.le.f32.partialorder %v3883_v52, 0.70710677  ;;  %v1257_v44 = vmul.f32 8.0, %v1193_v23  ;;  %2329 = vst [vmem:[#allocation9 + $0x1c0] sm:$0xff] %v2265_v60 }
 0x245   :  { %v2685_v35 = vadd.f32 -1.0, %v1067_v0  ;;  %v2146_v59 = vsel %vm2082_vm12, %v2932_v6, %v1954_v53  ;;  %v2742_v10 = vadd.f32 -2.0, %v1380_v50  ;;  %vm1700_vm14 = vcmp.le.f32.partialorder %v3883_v52, 1.7948966e-09 }
 0x246   :  { %2451 = vst [vmem:[#allocation10 + $0x190] sm:$0xff] %v2387_v36  ;;  %vm1892_vm15 = vcmp.le.f32.partialorder %v3883_v52, -0.70710677  ;;  %v2386_v12 = vmul.f32 %v3843_v38, %v2146_v59  ;;  %v2806_v62 = vadd.f32 -4.0, %v1316_v43  ;;  %v1321_v3 = vadd.f32 1.0, %v1257_v44 }
 0x247   :  { %v1195_v29 = vmul.f32 %v2685_v35, %v1067_v0  ;;  %v1572_v25 = vsel %vm1508_vm13, %v2742_v10, %v1316_v43  ;;  %v2870_v7 = vadd.f32 -6.0, %v1380_v50  ;;  %vm2084_vm0 = vcmp.le.f32.partialorder %v3883_v52, -1.0 }
 0x248   :  { %v2267_v22 = vmul.f32 %v3916_v18, %v3922_v11  ;;  %2450 = vst [vmem:[#allocation10 + $0x188] sm:$0xff] %v2386_v12  ;;  %v1764_v63 = vsel %vm1700_vm14, %v2806_v62, %v1572_v25  ;;  %v2934_v33 = vadd.f32 -8.0, %v1316_v43  ;;  %v1385_v39 = vsub.f32 0.0, %v1321_v3 }
 0x249   :  { %vm1513_vm1 = vcmp.le.f32.partialorder %v3891_v51, 0.70710677  ;;  %v1956_v31 = vsel %vm1892_vm15, %v2870_v7, %v1764_v63  ;;  %vm1705_vm2 = vcmp.le.f32.partialorder %v3891_v51, 1.7948966e-09  ;;  %v1259_v17 = vmul.f32 8.0, %v1195_v29 }
 0x24a   :  { %2331 = vst [vmem:[#allocation9 + $0x1d0] sm:$0xff] %v2267_v22  ;;  %v3955_v23 = vclamps-f32 %v3444_v28, 1.0  ;;  %v2148_v52 = vsel %vm2084_vm0, %v2934_v33, %v1956_v31  ;;  %v2747_v45 = vadd.f32 -2.0, %v1385_v39  ;;  %vm1897_vm3 = vcmp.le.f32.partialorder %v3891_v51, -0.70710677 }
 0x24b   :  { %v3959_v16 = vclamps-f32 %v3448_v30, 1.0  ;;  %v2388_v43 = vmul.f32 %v3843_v38, %v2148_v52  ;;  %v2811_v60 = vadd.f32 -4.0, %v1321_v3  ;;  %v1323_v0 = vadd.f32 1.0, %v1259_v17 }
 0x24c   :  { %v1066_v36 = vmul.f32 %v3955_v23, %v3955_v23  ;;  %v1577_v37 = vsel %vm1513_vm1, %v2747_v45, %v1321_v3  ;;  %v2875_v6 = vadd.f32 -6.0, %v1385_v39  ;;  %vm2089_vm4 = vcmp.le.f32.partialorder %v3891_v51, -1.0 }
 0x24d   :  { %vm1515_vm5 = vcmp.le.f32.partialorder %v3916_v18, 0.70710677  ;;  %2452 = vst [vmem:[#allocation10 + $0x198] sm:$0xff] %v2388_v43  ;;  %v1769_v28 = vsel %vm1705_vm2, %v2811_v60, %v1577_v37  ;;  %v2939_v50 = vadd.f32 -8.0, %v1321_v3  ;;  %v1387_v30 = vsub.f32 0.0, %v1323_v0  ;;  %v3989_v37 = vpop.f32.mrb[28].mxu1 }
 0x24e   :  { %v3969_v53 = vclamps-f32 %v3476_v26, 1.0  ;;  %v1961_v44 = vsel %vm1897_vm3, %v2875_v6, %v1769_v28  ;;  %v2684_v35 = vadd.f32 -1.0, %v1066_v36  ;;  %v2266_v59 = vmul.f32 %v3955_v23, %v3922_v11 }
 0x24f   :  { %v1068_v10 = vmul.f32 %v3959_v16, %v3959_v16  ;;  %v2153_v12 = vsel %vm2089_vm4, %v2939_v50, %v1961_v44  ;;  %v2749_v62 = vadd.f32 -2.0, %v1387_v30  ;;  %vm1707_vm6 = vcmp.le.f32.partialorder %v3916_v18, 1.7948966e-09 }
 0x250   :  { %vm1899_vm7 = vcmp.le.f32.partialorder %v3916_v18, -0.70710677  ;;  %v2393_v51 = vmul.f32 %v3922_v11, %v2153_v12  ;;  %v2813_v3 = vadd.f32 -4.0, %v1323_v0  ;;  %v1194_v29 = vmul.f32 %v2684_v35, %v1066_v36  ;;  %2330 = vst [vmem:[#allocation9 + $0x1c8] sm:$0xff] %v2266_v59  ;;  %v3987_v36 = vpop.f32.mrb[28].mxu0 }
 0x251   :  { %v2686_v26 = vadd.f32 -1.0, %v1068_v10  ;;  %v1579_v25 = vsel %vm1515_vm5, %v2749_v62, %v1323_v0  ;;  %v2877_v7 = vadd.f32 -6.0, %v1387_v30  ;;  %v2941_v22 = vadd.f32 -8.0, %v1323_v0 }
 0x252   :  { %v2268_v63 = vmul.f32 %v3959_v16, %v3922_v11  ;;  %2457 = vst [vmem:[#allocation10 + $0x1c0] sm:$0xff] %v2393_v51  ;;  %v1771_v33 = vsel %vm1707_vm6, %v2813_v3, %v1579_v25  ;;  %v1258_v39 = vmul.f32 8.0, %v1194_v29  ;;  %v1013_v17 = vmul.f32 %v3969_v53, %v3969_v53 }
 0x253   :  { %v1196_v31 = vmul.f32 %v2686_v26, %v1068_v10  ;;  %v1963_v52 = vsel %vm1899_vm7, %v2877_v7, %v1771_v33  ;;  %vm2091_vm8 = vcmp.le.f32.partialorder %v3916_v18, -1.0  ;;  %vm1514_vm9 = vcmp.le.f32.partialorder %v3955_v23, 0.70710677 }
 0x254   :  { %vm1706_vm10 = vcmp.le.f32.partialorder %v3955_v23, 1.7948966e-09  ;;  %2332 = vst [vmem:[#allocation9 + $0x1d8] sm:$0xff] %v2268_v63  ;;  %v2155_v45 = vsel %vm2091_vm8, %v2941_v22, %v1963_v52  ;;  %v1322_v43 = vadd.f32 1.0, %v1258_v39  ;;  %v2631_v0 = vadd.f32 -1.0, %v1013_v17  ;;  %v4010_v22 = vpop.f32.mrb[29].mxu1 }
 0x255   :  { %v1260_v60 = vmul.f32 8.0, %v1196_v31  ;;  %v2395_v6 = vmul.f32 %v3922_v11, %v2155_v45  ;;  %vm1898_vm11 = vcmp.le.f32.partialorder %v3955_v23, -0.70710677  ;;  %v2213_v18 = vmul.f32 %v3969_v53, %v3311_v21 }
 0x256   :  { %v3996_v28 = vclamps-f32 %v3478_v58, 1.0  ;;  %v1386_v50 = vsub.f32 0.0, %v1322_v43  ;;  %vm2090_vm12 = vcmp.le.f32.partialorder %v3955_v23, -1.0  ;;  %vm1516_vm13 = vcmp.le.f32.partialorder %v3959_v16, 0.70710677  ;;  %v4006_v58 = vpop.f32.mrb[29].mxu0 }
 0x257   :  { %v1324_v30 = vadd.f32 1.0, %v1260_v60  ;;  %2459 = vst [vmem:[#allocation10 + $0x1d0] sm:$0xff] %v2395_v6  ;;  %vm1708_vm14 = vcmp.le.f32.partialorder %v3959_v16, 1.7948966e-09  ;;  %vm1900_vm15 = vcmp.le.f32.partialorder %v3959_v16, -0.70710677  ;;  %v1141_v44 = vmul.f32 %v2631_v0, %v1013_v17 }
 0x258   :  { %2277 = vst [vmem:[#allocation9 + $0x20] sm:$0xff] %v2213_v18  ;;  %v1015_v35 = vmul.f32 %v3996_v28, %v3996_v28  ;;  %v2748_v59 = vadd.f32 -2.0, %v1386_v50  ;;  %vm2092_vm0 = vcmp.le.f32.partialorder %v3959_v16, -1.0  ;;  %vm1461_vm1 = vcmp.le.f32.partialorder %v3969_v53, 0.70710677 }
 0x259   :  { %v1388_v10 = vsub.f32 0.0, %v1324_v30  ;;  %v2812_v12 = vadd.f32 -4.0, %v1322_v43  ;;  %v2940_v62 = vadd.f32 -8.0, %v1322_v43  ;;  %v1205_v51 = vmul.f32 8.0, %v1141_v44 }
 0x25a   :  { %v2633_v3 = vadd.f32 -1.0, %v1015_v35  ;;  %v1578_v29 = vsel %vm1514_vm9, %v2748_v59, %v1322_v43  ;;  %v2876_v26 = vadd.f32 -6.0, %v1386_v50  ;;  %v2814_v7 = vadd.f32 -4.0, %v1324_v30 }
 0x25b   :  { %v2750_v25 = vadd.f32 -2.0, %v1388_v10  ;;  %v1770_v63 = vsel %vm1706_vm10, %v2812_v12, %v1578_v29  ;;  %v1269_v33 = vadd.f32 1.0, %v1205_v51  ;;  %v2215_v31 = vmul.f32 %v3996_v28, %v3311_v21 }
 0x25c   :  { %v1143_v39 = vmul.f32 %v2633_v3, %v1015_v35  ;;  %v1962_v17 = vsel %vm1898_vm11, %v2876_v26, %v1770_v63  ;;  %v2878_v45 = vadd.f32 -6.0, %v1388_v10  ;;  %v4021_v43 = vclamps-f32 %v3505_v40, 1.0 }
 0x25d   :  { %v1580_v52 = vsel %vm1516_vm13, %v2750_v25, %v1324_v30  ;;  %v2154_v60 = vsel %vm2090_vm12, %v2940_v62, %v1962_v17  ;;  %v2942_v6 = vadd.f32 -8.0, %v1324_v30  ;;  %v1333_v18 = vsub.f32 0.0, %v1269_v33  ;;  %2279 = vst [vmem:[#allocation9 + $0x30] sm:$0xff] %v2215_v31 }
 0x25e   :  { %v1772_v0 = vsel %vm1708_vm14, %v2814_v7, %v1580_v52  ;;  %v2394_v50 = vmul.f32 %v3922_v11, %v2154_v60  ;;  %vm1653_vm2 = vcmp.le.f32.partialorder %v3969_v53, 1.7948966e-09  ;;  %v1207_v35 = vmul.f32 8.0, %v1143_v39 }
 0x25f   :  { %v1964_v44 = vsel %vm1900_vm15, %v2878_v45, %v1772_v0  ;;  %v2695_v59 = vadd.f32 -2.0, %v1333_v18  ;;  %v1014_v23 = vmul.f32 %v4021_v43, %v4021_v43  ;;  %v4036_v10 = vclamps-f32 %v3531_v27, 1.0 }
 0x260   :  { %v2156_v40 = vsel %vm2092_vm0, %v2942_v6, %v1964_v44  ;;  %2458 = vst [vmem:[#allocation10 + $0x1c8] sm:$0xff] %v2394_v50  ;;  %v2759_v12 = vadd.f32 -4.0, %v1269_v33  ;;  %vm1845_vm3 = vcmp.le.f32.partialorder %v3969_v53, -0.70710677  ;;  %v1271_v62 = vadd.f32 1.0, %v1207_v35 }
 0x261   :  { %v2396_v30 = vmul.f32 %v3922_v11, %v2156_v40  ;;  %v1525_v51 = vsel %vm1461_vm1, %v2695_v59, %v1269_v33  ;;  %v2823_v3 = vadd.f32 -6.0, %v1333_v18  ;;  %vm2037_vm4 = vcmp.le.f32.partialorder %v3969_v53, -1.0  ;;  %v4052_v53 = vpop.f32.mrb[30].mxu0 }
 0x262   :  { %v2632_v16 = vadd.f32 -1.0, %v1014_v23  ;;  %v1717_v29 = vsel %vm1653_vm2, %v2759_v12, %v1525_v51  ;;  %v2887_v27 = vadd.f32 -8.0, %v1269_v33  ;;  %v1335_v26 = vsub.f32 0.0, %v1271_v62 }
 0x263   :  { %2460 = vst [vmem:[#allocation10 + $0x1d8] sm:$0xff] %v2396_v30  ;;  %vm1463_vm5 = vcmp.le.f32.partialorder %v3996_v28, 0.70710677  ;;  %v1909_v25 = vsel %vm1845_vm3, %v2823_v3, %v1717_v29  ;;  %v2214_v63 = vmul.f32 %v4021_v43, %v3311_v21  ;;  %v1016_v39 = vmul.f32 %v4036_v10, %v4036_v10  ;;  %v4065_v30 = vpop.f32.mrb[30].mxu1 }
 0x264   :  { %v1142_v7 = vmul.f32 %v2632_v16, %v1014_v23  ;;  %v2101_v31 = vsel %vm2037_vm4, %v2887_v27, %v1909_v25  ;;  %v2697_v17 = vadd.f32 -2.0, %v1335_v26  ;;  %vm1655_vm6 = vcmp.le.f32.partialorder %v3996_v28, 1.7948966e-09 }
 0x265   :  { %vm1847_vm7 = vcmp.le.f32.partialorder %v3996_v28, -0.70710677  ;;  %v2341_v33 = vmul.f32 %v3311_v21, %v2101_v31  ;;  %v2761_v52 = vadd.f32 -4.0, %v1271_v62  ;;  %2278 = vst [vmem:[#allocation9 + $0x28] sm:$0xff] %v2214_v63  ;;  %v2634_v60 = vadd.f32 -1.0, %v1016_v39 }
 0x266   :  { %v1206_v45 = vmul.f32 8.0, %v1142_v7  ;;  %v1527_v0 = vsel %vm1463_vm5, %v2697_v17, %v1271_v62  ;;  %v2825_v6 = vadd.f32 -6.0, %v1335_v26  ;;  %v2889_v18 = vadd.f32 -8.0, %v1271_v62 }
 0x267   :  { %v2216_v50 = vmul.f32 %v4036_v10, %v3311_v21  ;;  %2405 = vst [vmem:[#allocation10 + $0x20] sm:$0xff] %v2341_v33  ;;  %v1719_v44 = vsel %vm1655_vm6, %v2761_v52, %v1527_v0  ;;  %v1144_v40 = vmul.f32 %v2634_v60, %v1016_v39  ;;  %v4058_v59 = vclamps-f32 %v3548_v48, 1.0  ;;  %v4085_v39 = vpop.f32.mrb[31].mxu0 }
 0x268   :  { %v1270_v35 = vadd.f32 1.0, %v1206_v45  ;;  %v1911_v23 = vsel %vm1847_vm7, %v2825_v6, %v1719_v44  ;;  %vm2039_vm8 = vcmp.le.f32.partialorder %v3996_v28, -1.0  ;;  %vm1462_vm9 = vcmp.le.f32.partialorder %v4021_v43, 0.70710677 }
 0x269   :  { %vm1654_vm10 = vcmp.le.f32.partialorder %v4021_v43, 1.7948966e-09  ;;  %2280 = vst [vmem:[#allocation9 + $0x38] sm:$0xff] %v2216_v50  ;;  %v2103_v12 = vsel %vm2039_vm8, %v2889_v18, %v1911_v23  ;;  %vm1846_vm11 = vcmp.le.f32.partialorder %v4021_v43, -0.70710677  ;;  %v4069_v51 = vclamps-f32 %v3571_v13, 1.0 }
 0x26a   :  { %v1334_v62 = vsub.f32 0.0, %v1270_v35  ;;  %v2343_v48 = vmul.f32 %v3311_v21, %v2103_v12  ;;  %v1208_v3 = vmul.f32 8.0, %v1144_v40  ;;  %vm1464_vm12 = vcmp.le.f32.partialorder %v4036_v10, 0.70710677  ;;  %v4103_v12 = vpop.f32.mrb[31].mxu1 }
 0x26b   :  { %v1021_v28 = vmul.f32 %v4058_v59, %v4058_v59  ;;  %vm2038_vm13 = vcmp.le.f32.partialorder %v4021_v43, -1.0  ;;  %vm1656_vm14 = vcmp.le.f32.partialorder %v4036_v10, 1.7948966e-09  ;;  %vm1848_vm15 = vcmp.le.f32.partialorder %v4036_v10, -0.70710677 }
 0x26c   :  { %v2696_v16 = vadd.f32 -2.0, %v1334_v62  ;;  %2407 = vst [vmem:[#allocation10 + $0x30] sm:$0xff] %v2343_v48  ;;  %v2760_v29 = vadd.f32 -4.0, %v1270_v35  ;;  %v1272_v27 = vadd.f32 1.0, %v1208_v3  ;;  %v2221_v26 = vmul.f32 %v4058_v59, %v3412_v49 }
 0x26d   :  { %v2639_v13 = vadd.f32 -1.0, %v1021_v28  ;;  %v2824_v7 = vadd.f32 -6.0, %v1334_v62  ;;  %vm2040_vm0 = vcmp.le.f32.partialorder %v4036_v10, -1.0  ;;  %v1023_v63 = vmul.f32 %v4069_v51, %v4069_v51 }
 0x26e   :  { %v1526_v25 = vsel %vm1462_vm9, %v2696_v16, %v1270_v35  ;;  %v2888_v17 = vadd.f32 -8.0, %v1270_v35  ;;  %v1336_v33 = vsub.f32 0.0, %v1272_v27  ;;  %2285 = vst [vmem:[#allocation9 + $0x60] sm:$0xff] %v2221_v26  ;;  %v4090_v52 = vclamps-f32 %v3596_v55, 1.0 }
 0x26f   :  { %v1718_v31 = vsel %vm1654_vm10, %v2760_v29, %v1526_v25  ;;  %v1149_v60 = vmul.f32 %v2639_v13, %v1021_v28  ;;  %v2641_v0 = vadd.f32 -1.0, %v1023_v63  ;;  %v4095_v6 = vclamps-f32 %v3606_v42, 1.0 }
 0x270   :  { %v1910_v45 = vsel %vm1846_vm11, %v2824_v7, %v1718_v31  ;;  %v2698_v50 = vadd.f32 -2.0, %v1336_v33  ;;  %v2762_v44 = vadd.f32 -4.0, %v1272_v27  ;;  %vm1469_vm1 = vcmp.le.f32.partialorder %v4058_v59, 0.70710677 }
 0x271   :  { %v2102_v18 = vsel %vm2038_vm13, %v2888_v17, %v1910_v45  ;;  %v1213_v40 = vmul.f32 8.0, %v1149_v60  ;;  %v1151_v55 = vmul.f32 %v2641_v0, %v1023_v63  ;;  %v2223_v23 = vmul.f32 %v4069_v51, %v3412_v49 }
 0x272   :  { %v2342_v35 = vmul.f32 %v3311_v21, %v2102_v18  ;;  %v1528_v42 = vsel %vm1464_vm12, %v2698_v50, %v1272_v27  ;;  %v2826_v62 = vadd.f32 -6.0, %v1336_v33  ;;  %vm1661_vm2 = vcmp.le.f32.partialorder %v4058_v59, 1.7948966e-09 }
 0x273   :  { %v1022_v43 = vmul.f32 %v4090_v52, %v4090_v52  ;;  %v1720_v48 = vsel %vm1656_vm14, %v2762_v44, %v1528_v42  ;;  %v2890_v3 = vadd.f32 -8.0, %v1272_v27  ;;  %v1277_v28 = vadd.f32 1.0, %v1213_v40  ;;  %2287 = vst [vmem:[#allocation9 + $0x70] sm:$0xff] %v2223_v23 }
 0x274   :  { %2406 = vst [vmem:[#allocation10 + $0x28] sm:$0xff] %v2342_v35  ;;  %v1215_v16 = vmul.f32 8.0, %v1151_v55  ;;  %v1912_v29 = vsel %vm1848_vm15, %v2826_v62, %v1720_v48  ;;  %vm1853_vm3 = vcmp.le.f32.partialorder %v4058_v59, -0.70710677  ;;  %v2222_v26 = vmul.f32 %v4090_v52, %v3412_v49 }
 0x275   :  { %v2640_v13 = vadd.f32 -1.0, %v1022_v43  ;;  %v2104_v25 = vsel %vm2040_vm0, %v2890_v3, %v1912_v29  ;;  %v1341_v7 = vsub.f32 0.0, %v1277_v28  ;;  %vm2045_vm4 = vcmp.le.f32.partialorder %v4058_v59, -1.0 }
 0x276   :  { %vm1471_vm5 = vcmp.le.f32.partialorder %v4069_v51, 0.70710677  ;;  %v2344_v27 = vmul.f32 %v3311_v21, %v2104_v25  ;;  %v1279_v63 = vadd.f32 1.0, %v1215_v16  ;;  %2286 = vst [vmem:[#allocation9 + $0x68] sm:$0xff] %v2222_v26  ;;  %v1024_v17 = vmul.f32 %v4095_v6, %v4095_v6 }
 0x277   :  { %v1150_v31 = vmul.f32 %v2640_v13, %v1022_v43  ;;  %v2703_v33 = vadd.f32 -2.0, %v1341_v7  ;;  %vm1663_vm6 = vcmp.le.f32.partialorder %v4069_v51, 1.7948966e-09  ;;  %vm1855_vm7 = vcmp.le.f32.partialorder %v4069_v51, -0.70710677 }
 0x278   :  { %vm2047_vm8 = vcmp.le.f32.partialorder %v4069_v51, -1.0  ;;  %2408 = vst [vmem:[#allocation10 + $0x38] sm:$0xff] %v2344_v27  ;;  %v2767_v10 = vadd.f32 -4.0, %v1277_v28  ;;  %v1343_v45 = vsub.f32 0.0, %v1279_v63  ;;  %vm1470_vm9 = vcmp.le.f32.partialorder %v4090_v52, 0.70710677 }
 0x279   :  { %v1214_v60 = vmul.f32 8.0, %v1150_v31  ;;  %v1533_v21 = vsel %vm1469_vm1, %v2703_v33, %v1277_v28  ;;  %v2831_v0 = vadd.f32 -6.0, %v1341_v7  ;;  %v2895_v18 = vadd.f32 -8.0, %v1277_v28 }
 0x27a   :  { %v2642_v50 = vadd.f32 -1.0, %v1024_v17  ;;  %v1725_v44 = vsel %vm1661_vm2, %v2767_v10, %v1533_v21  ;;  %v2705_v35 = vadd.f32 -2.0, %v1343_v45  ;;  %v2769_v40 = vadd.f32 -4.0, %v1279_v63 }
 0x27b   :  { %v1278_v55 = vadd.f32 1.0, %v1214_v60  ;;  %v1917_v23 = vsel %vm1853_vm3, %v2831_v0, %v1725_v44  ;;  %v2224_v62 = vmul.f32 %v4095_v6, %v3412_v49  ;;  %v4137_v43 = vclamps-f32 %v3654_v57, 1.0 }
 0x27c   :  { %v1152_v42 = vmul.f32 %v2642_v50, %v1024_v17  ;;  %v2109_v48 = vsel %vm2045_vm4, %v2895_v18, %v1917_v23  ;;  %v1535_v3 = vsel %vm1471_vm5, %v2705_v35, %v1279_v63  ;;  %v2833_v28 = vadd.f32 -6.0, %v1343_v45 }
 0x27d   :  { %v1342_v16 = vsub.f32 0.0, %v1278_v55  ;;  %v2349_v29 = vmul.f32 %v3412_v49, %v2109_v48  ;;  %v1727_v13 = vsel %vm1663_vm6, %v2769_v40, %v1535_v3  ;;  %v2897_v26 = vadd.f32 -8.0, %v1279_v63  ;;  %2288 = vst [vmem:[#allocation9 + $0x78] sm:$0xff] %v2224_v62 }
 0x27e   :  { %v1216_v25 = vmul.f32 8.0, %v1152_v42  ;;  %v1919_v57 = vsel %vm1855_vm7, %v2833_v28, %v1727_v13  ;;  %vm1662_vm10 = vcmp.le.f32.partialorder %v4090_v52, 1.7948966e-09  ;;  %v1029_v59 = vmul.f32 %v4137_v43, %v4137_v43 }
 0x27f   :  { %v2704_v7 = vadd.f32 -2.0, %v1342_v16  ;;  %2413 = vst [vmem:[#allocation10 + $0x60] sm:$0xff] %v2349_v29  ;;  %v2111_v27 = vsel %vm2047_vm8, %v2897_v26, %v1919_v57  ;;  %v2768_v31 = vadd.f32 -4.0, %v1278_v55  ;;  %vm1854_vm11 = vcmp.le.f32.partialorder %v4090_v52, -0.70710677 }
 0x280   :  { %v1280_v17 = vadd.f32 1.0, %v1216_v25  ;;  %v2351_v63 = vmul.f32 %v3412_v49, %v2111_v27  ;;  %v2832_v10 = vadd.f32 -6.0, %v1342_v16  ;;  %v2647_v45 = vadd.f32 -1.0, %v1029_v59 }
 0x281   :  { %v1534_v33 = vsel %vm1470_vm9, %v2704_v7, %v1278_v55  ;;  %v2896_v21 = vadd.f32 -8.0, %v1278_v55  ;;  %vm2046_vm12 = vcmp.le.f32.partialorder %v4090_v52, -1.0  ;;  %vm1472_vm13 = vcmp.le.f32.partialorder %v4095_v6, 0.70710677 }
 0x282   :  { %v1726_v60 = vsel %vm1662_vm10, %v2768_v31, %v1534_v33  ;;  %v1344_v0 = vsub.f32 0.0, %v1280_v17  ;;  %2415 = vst [vmem:[#allocation10 + $0x70] sm:$0xff] %v2351_v63  ;;  %v1157_v51 = vmul.f32 %v2647_v45, %v1029_v59  ;;  %v2229_v50 = vmul.f32 %v4137_v43, %v3492_v19 }
 0x283   :  { %v1918_v18 = vsel %vm1854_vm11, %v2832_v10, %v1726_v60  ;;  %vm1664_vm14 = vcmp.le.f32.partialorder %v4095_v6, 1.7948966e-09  ;;  %v4163_v40 = vclamps-f32 %v3663_v56, 1.0  ;;  %v2770_v23 = vadd.f32 -4.0, %v1280_v17 }
 0x284   :  { %v2110_v44 = vsel %vm2046_vm12, %v2896_v21, %v1918_v18  ;;  %v2706_v35 = vadd.f32 -2.0, %v1344_v0  ;;  %v1221_v52 = vmul.f32 8.0, %v1157_v51  ;;  %2293 = vst [vmem:[#allocation9 + $0xa0] sm:$0xff] %v2229_v50  ;;  %v4167_v42 = vclamps-f32 %v3690_v54, 1.0 }
 0x285   :  { %v2350_v55 = vmul.f32 %v3412_v49, %v2110_v44  ;;  %v2834_v48 = vadd.f32 -6.0, %v1344_v0  ;;  %vm1856_vm15 = vcmp.le.f32.partialorder %v4095_v6, -0.70710677  ;;  %v1031_v3 = vmul.f32 %v4163_v40, %v4163_v40 }
 0x286   :  { %v1536_v62 = vsel %vm1472_vm13, %v2706_v35, %v1280_v17  ;;  %v2898_v16 = vadd.f32 -8.0, %v1280_v17  ;;  %vm2048_vm0 = vcmp.le.f32.partialorder %v4095_v6, -1.0  ;;  %v1285_v56 = vadd.f32 1.0, %v1221_v52 }
 0x287   :  { %2414 = vst [vmem:[#allocation10 + $0x68] sm:$0xff] %v2350_v55  ;;  %v1728_v28 = vsel %vm1664_vm14, %v2770_v23, %v1536_v62  ;;  %v2649_v13 = vadd.f32 -1.0, %v1031_v3  ;;  %v2231_v26 = vmul.f32 %v4163_v40, %v3492_v19  ;;  %v1030_v54 = vmul.f32 %v4167_v42, %v4167_v42 }
 0x288   :  { %v1920_v29 = vsel %vm1856_vm15, %v2834_v48, %v1728_v28  ;;  %v1349_v57 = vsub.f32 0.0, %v1285_v56  ;;  %vm1477_vm1 = vcmp.le.f32.partialorder %v4137_v43, 0.70710677  ;;  %v4179_v7 = vclamps-f32 %v3702_v2, 1.0 }
 0x289   :  { %v2112_v25 = vsel %vm2048_vm0, %v2898_v16, %v1920_v29  ;;  %vm1669_vm2 = vcmp.le.f32.partialorder %v4137_v43, 1.7948966e-09  ;;  %v1159_v6 = vmul.f32 %v2649_v13, %v1031_v3  ;;  %2295 = vst [vmem:[#allocation9 + $0xb0] sm:$0xff] %v2231_v26  ;;  %v2648_v27 = vadd.f32 -1.0, %v1030_v54 }
 0x28a   :  { %v2352_v59 = vmul.f32 %v3412_v49, %v2112_v25  ;;  %v2711_v31 = vadd.f32 -2.0, %v1349_v57  ;;  %vm1861_vm3 = vcmp.le.f32.partialorder %v4137_v43, -0.70710677  ;;  %vm2053_vm4 = vcmp.le.f32.partialorder %v4137_v43, -1.0 }
 0x28b   :  { %vm1479_vm5 = vcmp.le.f32.partialorder %v4163_v40, 0.70710677  ;;  %v2775_v17 = vadd.f32 -4.0, %v1285_v56  ;;  %v1223_v63 = vmul.f32 8.0, %v1159_v6  ;;  %v1158_v33 = vmul.f32 %v2648_v27, %v1030_v54 }
 0x28c   :  { %2416 = vst [vmem:[#allocation10 + $0x78] sm:$0xff] %v2352_v59  ;;  %v2230_v2 = vmul.f32 %v4167_v42, %v3492_v19  ;;  %v1541_v49 = vsel %vm1477_vm1, %v2711_v31, %v1285_v56  ;;  %v2839_v10 = vadd.f32 -6.0, %v1349_v57  ;;  %vm1671_vm6 = vcmp.le.f32.partialorder %v4163_v40, 1.7948966e-09 }
 0x28d   :  { %v1032_v45 = vmul.f32 %v4179_v7, %v4179_v7  ;;  %v1733_v60 = vsel %vm1669_vm2, %v2775_v17, %v1541_v49  ;;  %v2903_v21 = vadd.f32 -8.0, %v1285_v56  ;;  %v1287_v0 = vadd.f32 1.0, %v1223_v63 }
 0x28e   :  { %v1222_v18 = vmul.f32 8.0, %v1158_v33  ;;  %2294 = vst [vmem:[#allocation9 + $0xa8] sm:$0xff] %v2230_v2  ;;  %v1925_v51 = vsel %vm1861_vm3, %v2839_v10, %v1733_v60  ;;  %vm1863_vm7 = vcmp.le.f32.partialorder %v4163_v40, -0.70710677  ;;  %v2232_v44 = vmul.f32 %v4179_v7, %v3492_v19 }
 0x28f   :  { %v2650_v50 = vadd.f32 -1.0, %v1032_v45  ;;  %v2117_v35 = vsel %vm2053_vm4, %v2903_v21, %v1925_v51  ;;  %v1351_v55 = vsub.f32 0.0, %v1287_v0  ;;  %vm2055_vm8 = vcmp.le.f32.partialorder %v4163_v40, -1.0 }
 0x290   :  { %vm1478_vm9 = vcmp.le.f32.partialorder %v4167_v42, 0.70710677  ;;  %v2357_v23 = vmul.f32 %v3492_v19, %v2117_v35  ;;  %v1286_v52 = vadd.f32 1.0, %v1222_v18  ;;  %2296 = vst [vmem:[#allocation9 + $0xb8] sm:$0xff] %v2232_v44  ;;  %v4206_v48 = vclamps-f32 %v3711_v46, 1.0 }
 0x291   :  { %v1160_v62 = vmul.f32 %v2650_v50, %v1032_v45  ;;  %v2713_v3 = vadd.f32 -2.0, %v1351_v55  ;;  %vm1670_vm10 = vcmp.le.f32.partialorder %v4167_v42, 1.7948966e-09  ;;  %vm1862_vm11 = vcmp.le.f32.partialorder %v4167_v42, -0.70710677 }
 0x292   :  { %vm2054_vm12 = vcmp.le.f32.partialorder %v4167_v42, -1.0  ;;  %2421 = vst [vmem:[#allocation10 + $0xa0] sm:$0xff] %v2357_v23  ;;  %v2777_v43 = vadd.f32 -4.0, %v1287_v0  ;;  %v1350_v28 = vsub.f32 0.0, %v1286_v52  ;;  %vm1480_vm13 = vcmp.le.f32.partialorder %v4179_v7, 0.70710677 }
 0x293   :  { %v1224_v16 = vmul.f32 8.0, %v1160_v62  ;;  %v1543_v56 = vsel %vm1479_vm5, %v2713_v3, %v1287_v0  ;;  %v2841_v29 = vadd.f32 -6.0, %v1351_v55  ;;  %vm1672_vm14 = vcmp.le.f32.partialorder %v4179_v7, 1.7948966e-09 }
 0x294   :  { %v1037_v46 = vmul.f32 %v4206_v48, %v4206_v48  ;;  %v1735_v13 = vsel %vm1671_vm6, %v2777_v43, %v1543_v56  ;;  %v2905_v26 = vadd.f32 -8.0, %v1287_v0  ;;  %v2712_v54 = vadd.f32 -2.0, %v1350_v28 }
 0x295   :  { %v1288_v25 = vadd.f32 1.0, %v1224_v16  ;;  %v1927_v57 = vsel %vm1863_vm7, %v2841_v29, %v1735_v13  ;;  %v2776_v59 = vadd.f32 -4.0, %v1286_v52  ;;  %v4222_v27 = vclamps-f32 %v3748_v61, 1.0 }
 0x296   :  { %v2655_v6 = vadd.f32 -1.0, %v1037_v46  ;;  %v2119_v31 = vsel %vm2055_vm8, %v2905_v26, %v1927_v57  ;;  %v1542_v17 = vsel %vm1478_vm9, %v2712_v54, %v1286_v52  ;;  %v2840_v63 = vadd.f32 -6.0, %v1350_v28 }
 0x297   :  { %v1352_v33 = vsub.f32 0.0, %v1288_v25  ;;  %v2359_v2 = vmul.f32 %v3492_v19, %v2119_v31  ;;  %v1734_v49 = vsel %vm1670_vm10, %v2776_v59, %v1542_v17  ;;  %v2904_v10 = vadd.f32 -8.0, %v1286_v52 }
 0x298   :  { %v1165_v45 = vmul.f32 %v2655_v6, %v1037_v46  ;;  %v1926_v60 = vsel %vm1862_vm11, %v2840_v63, %v1734_v49  ;;  %v2237_v40 = vmul.f32 %v4206_v48, %v3585_v34  ;;  %v4236_v21 = vclamps-f32 %v3769_v15, 1.0 }
 0x299   :  { %v2714_v61 = vadd.f32 -2.0, %v1352_v33  ;;  %2423 = vst [vmem:[#allocation10 + $0xb0] sm:$0xff] %v2359_v2  ;;  %v2118_v0 = vsel %vm2054_vm12, %v2904_v10, %v1926_v60  ;;  %v2778_v18 = vadd.f32 -4.0, %v1288_v25  ;;  %v1039_v50 = vmul.f32 %v4222_v27, %v4222_v27 }
 0x29a   :  { %v1229_v51 = vmul.f32 8.0, %v1165_v45  ;;  %v2358_v44 = vmul.f32 %v3492_v19, %v2118_v0  ;;  %v2842_v55 = vadd.f32 -6.0, %v1352_v33  ;;  %vm1864_vm15 = vcmp.le.f32.partialorder %v4179_v7, -0.70710677  ;;  %2301 = vst [vmem:[#allocation9 + $0xe0] sm:$0xff] %v2237_v40 }
 0x29b   :  { %v1544_v35 = vsel %vm1480_vm13, %v2714_v61, %v1288_v25  ;;  %v2906_v23 = vadd.f32 -8.0, %v1288_v25  ;;  %v2657_v52 = vadd.f32 -1.0, %v1039_v50  ;;  %vm2056_vm0 = vcmp.le.f32.partialorder %v4179_v7, -1.0 }
 0x29c   :  { %v1736_v15 = vsel %vm1672_vm14, %v2778_v18, %v1544_v35  ;;  %v1293_v42 = vadd.f32 1.0, %v1229_v51  ;;  %2422 = vst [vmem:[#allocation10 + $0xa8] sm:$0xff] %v2358_v44  ;;  %v2239_v3 = vmul.f32 %v4222_v27, %v3585_v34  ;;  %v1038_v43 = vmul.f32 %v4236_v21, %v4236_v21 }
 0x29d   :  { %v1928_v62 = vsel %vm1864_vm15, %v2842_v55, %v1736_v15  ;;  %vm1485_vm1 = vcmp.le.f32.partialorder %v4206_v48, 0.70710677  ;;  %vm1677_vm2 = vcmp.le.f32.partialorder %v4206_v48, 1.7948966e-09  ;;  %vm1869_vm3 = vcmp.le.f32.partialorder %v4206_v48, -0.70710677 }
 0x29e   :  { %v2120_v28 = vsel %vm2056_vm0, %v2906_v23, %v1928_v62  ;;  %v1357_v16 = vsub.f32 0.0, %v1293_v42  ;;  %v1167_v29 = vmul.f32 %v2657_v52, %v1039_v50  ;;  %2303 = vst [vmem:[#allocation9 + $0xf0] sm:$0xff] %v2239_v3  ;;  %v2656_v46 = vadd.f32 -1.0, %v1038_v43 }
 0x29f   :  { %v2360_v56 = vmul.f32 %v3492_v19, %v2120_v28  ;;  %v2783_v13 = vadd.f32 -4.0, %v1293_v42  ;;  %vm2061_vm4 = vcmp.le.f32.partialorder %v4206_v48, -1.0  ;;  %vm1487_vm5 = vcmp.le.f32.partialorder %v4222_v27, 0.70710677 }
 0x2a0   :  { %v2719_v7 = vadd.f32 -2.0, %v1357_v16  ;;  %v1231_v26 = vmul.f32 8.0, %v1167_v29  ;;  %v1166_v54 = vmul.f32 %v2656_v46, %v1038_v43  ;;  %v2238_v25 = vmul.f32 %v4236_v21, %v3585_v34 }
 0x2a1   :  { %2424 = vst [vmem:[#allocation10 + $0xb8] sm:$0xff] %v2360_v56  ;;  %v4262_v57 = vclamps-f32 %v3782_v20, 1.0  ;;  %v2847_v59 = vadd.f32 -6.0, %v1357_v16  ;;  %v2911_v6 = vadd.f32 -8.0, %v1293_v42  ;;  %v4267_v31 = vclamps-f32 %v3820_v41, 1.0 }
 0x2a2   :  { %v1549_v19 = vsel %vm1485_vm1, %v2719_v7, %v1293_v42  ;;  %v1295_v63 = vadd.f32 1.0, %v1231_v26  ;;  %v1230_v33 = vmul.f32 8.0, %v1166_v54  ;;  %2302 = vst [vmem:[#allocation9 + $0xe8] sm:$0xff] %v2238_v25  ;;  %vm1679_vm6 = vcmp.le.f32.partialorder %v4222_v27, 1.7948966e-09 }
 0x2a3   :  { %v1741_v17 = vsel %vm1677_vm2, %v2783_v13, %v1549_v19  ;;  %v1040_v2 = vmul.f32 %v4262_v57, %v4262_v57  ;;  %vm1871_vm7 = vcmp.le.f32.partialorder %v4222_v27, -0.70710677  ;;  %vm2063_vm8 = vcmp.le.f32.partialorder %v4222_v27, -1.0 }
 0x2a4   :  { %v1933_v20 = vsel %vm1869_vm3, %v2847_v59, %v1741_v17  ;;  %v1359_v49 = vsub.f32 0.0, %v1295_v63  ;;  %vm1486_vm9 = vcmp.le.f32.partialorder %v4236_v21, 0.70710677  ;;  %vm1678_vm10 = vcmp.le.f32.partialorder %v4236_v21, 1.7948966e-09 }
 0x2a5   :  { %v2125_v41 = vsel %vm2061_vm4, %v2911_v6, %v1933_v20  ;;  %v1294_v45 = vadd.f32 1.0, %v1230_v33  ;;  %vm1870_vm11 = vcmp.le.f32.partialorder %v4236_v21, -0.70710677  ;;  %v2658_v60 = vadd.f32 -1.0, %v1040_v2 }
 0x2a6   :  { %v2365_v10 = vmul.f32 %v3585_v34, %v2125_v41  ;;  %v2721_v61 = vadd.f32 -2.0, %v1359_v49  ;;  %vm2062_vm12 = vcmp.le.f32.partialorder %v4236_v21, -1.0  ;;  %v2240_v40 = vmul.f32 %v4262_v57, %v3585_v34 }
 0x2a7   :  { %v1045_v48 = vmul.f32 %v4267_v31, %v4267_v31  ;;  %v2785_v0 = vadd.f32 -4.0, %v1295_v63  ;;  %v1358_v18 = vsub.f32 0.0, %v1294_v45  ;;  %v1168_v51 = vmul.f32 %v2658_v60, %v1040_v2 }
 0x2a8   :  { %2429 = vst [vmem:[#allocation10 + $0xe0] sm:$0xff] %v2365_v10  ;;  %v4290_v50 = vclamps-f32 %v3822_v1, 1.0  ;;  %v1551_v44 = vsel %vm1487_vm5, %v2721_v61, %v1295_v63  ;;  %v2849_v35 = vadd.f32 -6.0, %v1359_v49  ;;  %v2913_v55 = vadd.f32 -8.0, %v1295_v63  ;;  %2304 = vst [vmem:[#allocation9 + $0xf8] sm:$0xff] %v2240_v40 }
 0x2a9   :  { %v2663_v15 = vadd.f32 -1.0, %v1045_v48  ;;  %v1743_v23 = vsel %vm1679_vm6, %v2785_v0, %v1551_v44  ;;  %v2720_v42 = vadd.f32 -2.0, %v1358_v18  ;;  %v2784_v52 = vadd.f32 -4.0, %v1294_v45 }
 0x2aa   :  { %v1232_v62 = vmul.f32 8.0, %v1168_v51  ;;  %v1935_v3 = vsel %vm1871_vm7, %v2849_v35, %v1743_v23  ;;  %v2848_v43 = vadd.f32 -6.0, %v1358_v18  ;;  %v2912_v28 = vadd.f32 -8.0, %v1294_v45 }
 0x2ab   :  { %v1173_v1 = vmul.f32 %v2663_v15, %v1045_v48  ;;  %v2127_v16 = vsel %vm2063_vm8, %v2913_v55, %v1935_v3  ;;  %v1550_v56 = vsel %vm1486_vm9, %v2720_v42, %v1294_v45  ;;  %v2245_v46 = vmul.f32 %v4267_v31, %v3673_v14 }
 0x2ac   :  { %v1296_v29 = vadd.f32 1.0, %v1232_v62  ;;  %v2367_v7 = vmul.f32 %v3585_v34, %v2127_v16  ;;  %v1742_v13 = vsel %vm1678_vm10, %v2784_v52, %v1550_v56  ;;  %v1047_v54 = vmul.f32 %v4290_v50, %v4290_v50 }
 0x2ad   :  { %v1237_v26 = vmul.f32 8.0, %v1173_v1  ;;  %v1934_v27 = vsel %vm1870_vm11, %v2848_v43, %v1742_v13  ;;  %vm1488_vm13 = vcmp.le.f32.partialorder %v4262_v57, 0.70710677  ;;  %2309 = vst [vmem:[#allocation9 + $0x120] sm:$0xff] %v2245_v46  ;;  %v4313_v19 = vclamps-f32 %v3856_v32, 1.0 }
 0x2ae   :  { %v1360_v25 = vsub.f32 0.0, %v1296_v29  ;;  %2431 = vst [vmem:[#allocation10 + $0xf0] sm:$0xff] %v2367_v7  ;;  %v2126_v59 = vsel %vm2062_vm12, %v2912_v28, %v1934_v27  ;;  %vm1680_vm14 = vcmp.le.f32.partialorder %v4262_v57, 1.7948966e-09  ;;  %v2665_v17 = vadd.f32 -1.0, %v1047_v54 }
 0x2af   :  { %v1301_v6 = vadd.f32 1.0, %v1237_v26  ;;  %v2366_v63 = vmul.f32 %v3585_v34, %v2126_v59  ;;  %vm1872_vm15 = vcmp.le.f32.partialorder %v4262_v57, -0.70710677  ;;  %vm2064_vm0 = vcmp.le.f32.partialorder %v4262_v57, -1.0 }
 0x2b0   :  { %v2722_v33 = vadd.f32 -2.0, %v1360_v25  ;;  %v2786_v2 = vadd.f32 -4.0, %v1296_v29  ;;  %vm1493_vm1 = vcmp.le.f32.partialorder %v4267_v31, 0.70710677  ;;  %v1175_v32 = vmul.f32 %v2665_v17, %v1047_v54 }
 0x2b1   :  { %v1365_v20 = vsub.f32 0.0, %v1301_v6  ;;  %2430 = vst [vmem:[#allocation10 + $0xe8] sm:$0xff] %v2366_v63  ;;  %v2850_v41 = vadd.f32 -6.0, %v1360_v25  ;;  %vm1685_vm2 = vcmp.le.f32.partialorder %v4267_v31, 1.7948966e-09  ;;  %v2247_v49 = vmul.f32 %v4290_v50, %v3673_v14 }
 0x2b2   :  { %v1552_v21 = vsel %vm1488_vm13, %v2722_v33, %v1296_v29  ;;  %v2914_v45 = vadd.f32 -8.0, %v1296_v29  ;;  %v1239_v61 = vmul.f32 8.0, %v1175_v32  ;;  %v2791_v48 = vadd.f32 -4.0, %v1301_v6 }
 0x2b3   :  { %v1744_v10 = vsel %vm1680_vm14, %v2786_v2, %v1552_v21  ;;  %v2727_v60 = vadd.f32 -2.0, %v1365_v20  ;;  %vm1877_vm3 = vcmp.le.f32.partialorder %v4267_v31, -0.70710677  ;;  %2311 = vst [vmem:[#allocation9 + $0x130] sm:$0xff] %v2247_v49  ;;  %v1046_v0 = vmul.f32 %v4313_v19, %v4313_v19 }
 0x2b4   :  { %v1936_v40 = vsel %vm1872_vm15, %v2850_v41, %v1744_v10  ;;  %v2855_v44 = vadd.f32 -6.0, %v1365_v20  ;;  %v1303_v35 = vadd.f32 1.0, %v1239_v61  ;;  %v2919_v23 = vadd.f32 -8.0, %v1301_v6 }
 0x2b5   :  { %v2128_v18 = vsel %vm2064_vm0, %v2914_v45, %v1936_v40  ;;  %v1557_v51 = vsel %vm1493_vm1, %v2727_v60, %v1301_v6  ;;  %v2664_v42 = vadd.f32 -1.0, %v1046_v0  ;;  %vm2069_vm4 = vcmp.le.f32.partialorder %v4267_v31, -1.0 }
 0x2b6   :  { %v2368_v55 = vmul.f32 %v3585_v34, %v2128_v18  ;;  %v1749_v15 = vsel %vm1685_vm2, %v2791_v48, %v1557_v51  ;;  %v1367_v62 = vsub.f32 0.0, %v1303_v35  ;;  %vm1495_vm5 = vcmp.le.f32.partialorder %v4290_v50, 0.70710677 }
 0x2b7   :  { %v1941_v52 = vsel %vm1877_vm3, %v2855_v44, %v1749_v15  ;;  %v1174_v3 = vmul.f32 %v2664_v42, %v1046_v0  ;;  %v2246_v43 = vmul.f32 %v4313_v19, %v3673_v14  ;;  %v4344_v28 = vclamps-f32 %v3878_v47, 1.0 }
 0x2b8   :  { %2432 = vst [vmem:[#allocation10 + $0xf8] sm:$0xff] %v2368_v55  ;;  %v2133_v57 = vsel %vm2069_vm4, %v2919_v23, %v1941_v52  ;;  %v2729_v1 = vadd.f32 -2.0, %v1367_v62  ;;  %vm1687_vm6 = vcmp.le.f32.partialorder %v4290_v50, 1.7948966e-09  ;;  %v4349_v16 = vclamps-f32 %v3893_v24, 1.0 }
 0x2b9   :  { %v2373_v34 = vmul.f32 %v3673_v14, %v2133_v57  ;;  %v2793_v31 = vadd.f32 -4.0, %v1303_v35  ;;  %vm1879_vm7 = vcmp.le.f32.partialorder %v4290_v50, -0.70710677  ;;  %v1238_v56 = vmul.f32 8.0, %v1174_v3  ;;  %2310 = vst [vmem:[#allocation9 + $0x128] sm:$0xff] %v2246_v43 }
 0x2ba   :  { %v1048_v29 = vmul.f32 %v4344_v28, %v4344_v28  ;;  %v1559_v47 = vsel %vm1495_vm5, %v2729_v1, %v1303_v35  ;;  %v2857_v46 = vadd.f32 -6.0, %v1367_v62  ;;  %v2921_v7 = vadd.f32 -8.0, %v1303_v35 }
 0x2bb   :  { %2437 = vst [vmem:[#allocation10 + $0x120] sm:$0xff] %v2373_v34  ;;  %v2248_v13 = vmul.f32 %v4344_v28, %v3673_v14  ;;  %v1751_v26 = vsel %vm1687_vm6, %v2793_v31, %v1559_v47  ;;  %v1302_v24 = vadd.f32 1.0, %v1238_v56  ;;  %v1053_v27 = vmul.f32 %v4349_v16, %v4349_v16 }
 0x2bc   :  { %v2666_v54 = vadd.f32 -1.0, %v1048_v29  ;;  %v1943_v25 = vsel %vm1879_vm7, %v2857_v46, %v1751_v26  ;;  %vm2071_vm8 = vcmp.le.f32.partialorder %v4290_v50, -1.0  ;;  %vm1494_vm9 = vcmp.le.f32.partialorder %v4313_v19, 0.70710677 }
 0x2bd   :  { %2312 = vst [vmem:[#allocation9 + $0x138] sm:$0xff] %v2248_v13  ;;  %v2135_v59 = vsel %vm2071_vm8, %v2921_v7, %v1943_v25  ;;  %v1366_v6 = vsub.f32 0.0, %v1302_v24  ;;  %vm1686_vm10 = vcmp.le.f32.partialorder %v4313_v19, 1.7948966e-09  ;;  %vm1878_vm11 = vcmp.le.f32.partialorder %v4313_v19, -0.70710677 }
 0x2be   :  { %v2375_v17 = vmul.f32 %v3673_v14, %v2135_v59  ;;  %vm2070_vm12 = vcmp.le.f32.partialorder %v4313_v19, -1.0  ;;  %v1176_v63 = vmul.f32 %v2666_v54, %v1048_v29  ;;  %v2671_v33 = vadd.f32 -1.0, %v1053_v27 }
 0x2bf   :  { %v2728_v2 = vadd.f32 -2.0, %v1366_v6  ;;  %vm1496_vm13 = vcmp.le.f32.partialorder %v4344_v28, 0.70710677  ;;  %v2253_v50 = vmul.f32 %v4349_v16, %v3756_v8  ;;  %v4370_v20 = vclamps-f32 %v3908_v9, 1.0 }
 0x2c0   :  { %2439 = vst [vmem:[#allocation10 + $0x130] sm:$0xff] %v2375_v17  ;;  %v2792_v32 = vadd.f32 -4.0, %v1302_v24  ;;  %v1240_v21 = vmul.f32 8.0, %v1176_v63  ;;  %vm1688_vm14 = vcmp.le.f32.partialorder %v4344_v28, 1.7948966e-09  ;;  %v1181_v41 = vmul.f32 %v2671_v33, %v1053_v27 }
 0x2c1   :  { %v1558_v49 = vsel %vm1494_vm9, %v2728_v2, %v1302_v24  ;;  %v2856_v10 = vadd.f32 -6.0, %v1366_v6  ;;  %vm1880_vm15 = vcmp.le.f32.partialorder %v4344_v28, -0.70710677  ;;  %2317 = vst [vmem:[#allocation9 + $0x160] sm:$0xff] %v2253_v50  ;;  %v1055_v45 = vmul.f32 %v4370_v20, %v4370_v20 }
 0x2c2   :  { %v4379_v60 = vclamps-f32 %v3926_v5, 1.0  ;;  %v1750_v9 = vsel %vm1686_vm10, %v2792_v32, %v1558_v49  ;;  %v2920_v61 = vadd.f32 -8.0, %v1302_v24  ;;  %v1304_v40 = vadd.f32 1.0, %v1240_v21 }
 0x2c3   :  { %v1245_v48 = vmul.f32 8.0, %v1181_v41  ;;  %v1942_v0 = vsel %vm1878_vm11, %v2856_v10, %v1750_v9  ;;  %vm2072_vm0 = vcmp.le.f32.partialorder %v4344_v28, -1.0  ;;  %v2673_v18 = vadd.f32 -1.0, %v1055_v45 }
 0x2c4   :  { %v2255_v51 = vmul.f32 %v4370_v20, %v3756_v8  ;;  %v2134_v44 = vsel %vm2070_vm12, %v2920_v61, %v1942_v0  ;;  %v1368_v5 = vsub.f32 0.0, %v1304_v40  ;;  %vm1501_vm1 = vcmp.le.f32.partialorder %v4349_v16, 0.70710677 }
 0x2c5   :  { %vm1693_vm2 = vcmp.le.f32.partialorder %v4349_v16, 1.7948966e-09  ;;  %v2374_v35 = vmul.f32 %v3673_v14, %v2134_v44  ;;  %v1309_v55 = vadd.f32 1.0, %v1245_v48  ;;  %v1183_v15 = vmul.f32 %v2673_v18, %v1055_v45 }
 0x2c6   :  { %2319 = vst [vmem:[#allocation9 + $0x170] sm:$0xff] %v2255_v51  ;;  %v1054_v23 = vmul.f32 %v4379_v60, %v4379_v60  ;;  %v2730_v42 = vadd.f32 -2.0, %v1368_v5  ;;  %vm1885_vm3 = vcmp.le.f32.partialorder %v4349_v16, -0.70710677  ;;  %vm2077_vm4 = vcmp.le.f32.partialorder %v4349_v16, -1.0 }
 0x2c7   :  { %v4398_v19 = vclamps-f32 %v3950_v4, 1.0  ;;  %2438 = vst [vmem:[#allocation10 + $0x128] sm:$0xff] %v2374_v35  ;;  %v2794_v52 = vadd.f32 -4.0, %v1304_v40  ;;  %v1373_v62 = vsub.f32 0.0, %v1309_v55  ;;  %v1247_v57 = vmul.f32 8.0, %v1183_v15 }
 0x2c8   :  { %vm1503_vm5 = vcmp.le.f32.partialorder %v4370_v20, 0.70710677  ;;  %v1560_v3 = vsel %vm1496_vm13, %v2730_v42, %v1304_v40  ;;  %v2858_v43 = vadd.f32 -6.0, %v1368_v5  ;;  %v2922_v34 = vadd.f32 -8.0, %v1304_v40 }
 0x2c9   :  { %v2672_v1 = vadd.f32 -1.0, %v1054_v23  ;;  %v1752_v31 = vsel %vm1688_vm14, %v2794_v52, %v1560_v3  ;;  %v2735_v56 = vadd.f32 -2.0, %v1373_v62  ;;  %v2799_v29 = vadd.f32 -4.0, %v1309_v55 }
 0x2ca   :  { %v1311_v47 = vadd.f32 1.0, %v1247_v57  ;;  %v1944_v4 = vsel %vm1880_vm15, %v2858_v43, %v1752_v31  ;;  %v2254_v7 = vmul.f32 %v4379_v60, %v3756_v8  ;;  %v1056_v13 = vmul.f32 %v4398_v19, %v4398_v19 }
 0x2cb   :  { %v1182_v46 = vmul.f32 %v2672_v1, %v1054_v23  ;;  %v2136_v26 = vsel %vm2072_vm0, %v2922_v34, %v1944_v4  ;;  %v1565_v24 = vsel %vm1501_vm1, %v2735_v56, %v1309_v55  ;;  %v2863_v54 = vadd.f32 -6.0, %v1373_v62 }
 0x2cc   :  { %v1375_v27 = vsub.f32 0.0, %v1311_v47  ;;  %v2376_v25 = vmul.f32 %v3673_v14, %v2136_v26  ;;  %v1757_v59 = vsel %vm1693_vm2, %v2799_v29, %v1565_v24  ;;  %v2927_v6 = vadd.f32 -8.0, %v1309_v55  ;;  %2318 = vst [vmem:[#allocation9 + $0x168] sm:$0xff] %v2254_v7 }
 0x2cd   :  { %v1246_v17 = vmul.f32 8.0, %v1182_v46  ;;  %v1949_v63 = vsel %vm1885_vm3, %v2863_v54, %v1757_v59  ;;  %vm1695_vm6 = vcmp.le.f32.partialorder %v4370_v20, 1.7948966e-09  ;;  %v2674_v28 = vadd.f32 -1.0, %v1056_v13 }
 0x2ce   :  { %v2737_v33 = vadd.f32 -2.0, %v1375_v27  ;;  %2440 = vst [vmem:[#allocation10 + $0x138] sm:$0xff] %v2376_v25  ;;  %v2141_v2 = vsel %vm2077_vm4, %v2927_v6, %v1949_v63  ;;  %v2801_v50 = vadd.f32 -4.0, %v1311_v47  ;;  %vm1887_vm7 = vcmp.le.f32.partialorder %v4370_v20, -0.70710677 }
 0x2cf   :  { %v1310_v14 = vadd.f32 1.0, %v1246_v17  ;;  %v2381_v32 = vmul.f32 %v3756_v8, %v2141_v2  ;;  %v2865_v41 = vadd.f32 -6.0, %v1375_v27  ;;  %v1184_v49 = vmul.f32 %v2674_v28, %v1056_v13 }
 0x2d0   :  { %v1567_v21 = vsel %vm1503_vm5, %v2737_v33, %v1311_v47  ;;  %v2929_v45 = vadd.f32 -8.0, %v1311_v47  ;;  %vm2079_vm8 = vcmp.le.f32.partialorder %v4370_v20, -1.0  ;;  %vm1502_vm9 = vcmp.le.f32.partialorder %v4379_v60, 0.70710677 }
 0x2d1   :  { %v1759_v10 = vsel %vm1695_vm6, %v2801_v50, %v1567_v21  ;;  %v1374_v9 = vsub.f32 0.0, %v1310_v14  ;;  %2445 = vst [vmem:[#allocation10 + $0x160] sm:$0xff] %v2381_v32  ;;  %v1248_v16 = vmul.f32 8.0, %v1184_v49  ;;  %v2256_v40 = vmul.f32 %v4398_v19, %v3756_v8 }
 0x2d2   :  { %v1951_v61 = vsel %vm1887_vm7, %v2865_v41, %v1759_v10  ;;  %vm1694_vm10 = vcmp.le.f32.partialorder %v4379_v60, 1.7948966e-09  ;;  %v4433_v18 = vclamps-f32 %v3987_v36, 1.0  ;;  %v2800_v44 = vadd.f32 -4.0, %v1310_v14 }
 0x2d3   :  { %v2143_v48 = vsel %vm2079_vm8, %v2929_v45, %v1951_v61  ;;  %v2736_v0 = vadd.f32 -2.0, %v1374_v9  ;;  %vm1886_vm11 = vcmp.le.f32.partialorder %v4379_v60, -0.70710677  ;;  %v1312_v20 = vadd.f32 1.0, %v1248_v16  ;;  %2320 = vst [vmem:[#allocation9 + $0x178] sm:$0xff] %v2256_v40 }
 0x2d4   :  { %v2383_v51 = vmul.f32 %v3756_v8, %v2143_v48  ;;  %v2864_v35 = vadd.f32 -6.0, %v1374_v9  ;;  %v1061_v55 = vmul.f32 %v4433_v18, %v4433_v18  ;;  %v4440_v15 = vclamps-f32 %v3989_v37, 1.0 }
 0x2d5   :  { %v1566_v5 = vsel %vm1502_vm9, %v2736_v0, %v1310_v14  ;;  %v2928_v42 = vadd.f32 -8.0, %v1310_v14  ;;  %vm2078_vm12 = vcmp.le.f32.partialorder %v4379_v60, -1.0  ;;  %v1376_v36 = vsub.f32 0.0, %v1312_v20 }
 0x2d6   :  { %2447 = vst [vmem:[#allocation10 + $0x170] sm:$0xff] %v2383_v51  ;;  %v1758_v23 = vsel %vm1694_vm10, %v2800_v44, %v1566_v5  ;;  %vm1504_vm13 = vcmp.le.f32.partialorder %v4398_v19, 0.70710677  ;;  %vm1696_vm14 = vcmp.le.f32.partialorder %v4398_v19, 1.7948966e-09  ;;  %v2679_v62 = vadd.f32 -1.0, %v1061_v55 }
 0x2d7   :  { %v1950_v52 = vsel %vm1886_vm11, %v2864_v35, %v1758_v23  ;;  %v2738_v3 = vadd.f32 -2.0, %v1376_v36  ;;  %v2261_v43 = vmul.f32 %v4433_v18, %v3843_v38  ;;  %v4448_v37 = vclamps-f32 %v4006_v58, 1.0 }
 0x2d8   :  { %v2142_v57 = vsel %vm2078_vm12, %v2928_v42, %v1950_v52  ;;  %v2802_v1 = vadd.f32 -4.0, %v1312_v20  ;;  %v1189_v31 = vmul.f32 %v2679_v62, %v1061_v55  ;;  %v1063_v60 = vmul.f32 %v4440_v15, %v4440_v15 }
 0x2d9   :  { %v2382_v34 = vmul.f32 %v3756_v8, %v2142_v57  ;;  %v1568_v56 = vsel %vm1504_vm13, %v2738_v3, %v1312_v20  ;;  %v2866_v29 = vadd.f32 -6.0, %v1376_v36  ;;  %vm1888_vm15 = vcmp.le.f32.partialorder %v4398_v19, -0.70710677  ;;  %2325 = vst [vmem:[#allocation9 + $0x1a0] sm:$0xff] %v2261_v43 }
 0x2da   :  { %v2930_v47 = vadd.f32 -8.0, %v1312_v20  ;;  %v1760_v4 = vsel %vm1696_vm14, %v2802_v1, %v1568_v56  ;;  %v1253_v46 = vmul.f32 8.0, %v1189_v31  ;;  %v2681_v58 = vadd.f32 -1.0, %v1063_v60 }
 0x2db   :  { %2446 = vst [vmem:[#allocation10 + $0x168] sm:$0xff] %v2382_v34  ;;  %v2263_v7 = vmul.f32 %v4440_v15, %v3843_v38  ;;  %v1952_v13 = vsel %vm1888_vm15, %v2866_v29, %v1760_v4  ;;  %vm2080_vm0 = vcmp.le.f32.partialorder %v4398_v19, -1.0  ;;  %vm1509_vm1 = vcmp.le.f32.partialorder %v4433_v18, 0.70710677 }
 0x2dc   :  { %v1062_v26 = vmul.f32 %v4448_v37, %v4448_v37  ;;  %v2144_v24 = vsel %vm2080_vm0, %v2930_v47, %v1952_v13  ;;  %v1317_v54 = vadd.f32 1.0, %v1253_v46  ;;  %vm1701_vm2 = vcmp.le.f32.partialorder %v4433_v18, 1.7948966e-09 }
 0x2dd   :  { %v1191_v27 = vmul.f32 %v2681_v58, %v1063_v60  ;;  %2327 = vst [vmem:[#allocation9 + $0x1b0] sm:$0xff] %v2263_v7  ;;  %v2384_v25 = vmul.f32 %v3756_v8, %v2144_v24  ;;  %vm1893_vm3 = vcmp.le.f32.partialorder %v4433_v18, -0.70710677  ;;  %v2262_v6 = vmul.f32 %v4448_v37, %v3843_v38 }
 0x2de   :  { %v2680_v59 = vadd.f32 -1.0, %v1062_v26  ;;  %v1381_v19 = vsub.f32 0.0, %v1317_v54  ;;  %vm2085_vm4 = vcmp.le.f32.partialorder %v4433_v18, -1.0  ;;  %vm1511_vm5 = vcmp.le.f32.partialorder %v4440_v15, 0.70710677 }
 0x2df   :  { %v1255_v17 = vmul.f32 8.0, %v1191_v27  ;;  %2448 = vst [vmem:[#allocation10 + $0x178] sm:$0xff] %v2384_v25  ;;  %vm1703_vm6 = vcmp.le.f32.partialorder %v4440_v15, 1.7948966e-09  ;;  %vm1895_vm7 = vcmp.le.f32.partialorder %v4440_v15, -0.70710677 }
 0x2e0   :  { %v1190_v63 = vmul.f32 %v2680_v59, %v1062_v26  ;;  %2326 = vst [vmem:[#allocation9 + $0x1a8] sm:$0xff] %v2262_v6  ;;  %v4472_v8 = vclamps-f32 %v4010_v22, 1.0  ;;  %v2743_v33 = vadd.f32 -2.0, %v1381_v19  ;;  %vm2087_vm8 = vcmp.le.f32.partialorder %v4440_v15, -1.0 }
 0x2e1   :  { %v1319_v28 = vadd.f32 1.0, %v1255_v17  ;;  %vm1510_vm9 = vcmp.le.f32.partialorder %v4448_v37, 0.70710677  ;;  %v2807_v2 = vadd.f32 -4.0, %v1317_v54  ;;  %vm1702_vm10 = vcmp.le.f32.partialorder %v4448_v37, 1.7948966e-09 }
 0x2e2   :  { %v1254_v50 = vmul.f32 8.0, %v1190_v63  ;;  %v1064_v14 = vmul.f32 %v4472_v8, %v4472_v8  ;;  %v1573_v32 = vsel %vm1509_vm1, %v2743_v33, %v1317_v54  ;;  %v2871_v21 = vadd.f32 -6.0, %v1381_v19 }
 0x2e3   :  { %v2935_v41 = vadd.f32 -8.0, %v1317_v54  ;;  %v1383_v22 = vsub.f32 0.0, %v1319_v28  ;;  %v1765_v49 = vsel %vm1701_vm2, %v2807_v2, %v1573_v32  ;;  %v4484_v9 = vclamps-f32 %v4052_v53, 1.0 }
 0x2e4   :  { %v1318_v10 = vadd.f32 1.0, %v1254_v50  ;;  %v2682_v45 = vadd.f32 -1.0, %v1064_v14  ;;  %v1957_v61 = vsel %vm1893_vm3, %v2871_v21, %v1765_v49  ;;  %vm1894_vm11 = vcmp.le.f32.partialorder %v4448_v37, -0.70710677 }
 0x2e5   :  { %v2745_v16 = vadd.f32 -2.0, %v1383_v22  ;;  %v4490_v40 = vclamps-f32 %v4065_v30, 1.0  ;;  %v2149_v48 = vsel %vm2085_vm4, %v2935_v41, %v1957_v61  ;;  %v2809_v0 = vadd.f32 -4.0, %v1319_v28 }
 0x2e6   :  { %v2873_v51 = vadd.f32 -6.0, %v1383_v22  ;;  %v1382_v44 = vsub.f32 0.0, %v1318_v10  ;;  %v2389_v20 = vmul.f32 %v3843_v38, %v2149_v48  ;;  %v1192_v5 = vmul.f32 %v2682_v45, %v1064_v14 }
 0x2e7   :  { %v1575_v53 = vsel %vm1511_vm5, %v2745_v16, %v1319_v28  ;;  %v2264_v35 = vmul.f32 %v4472_v8, %v3843_v38  ;;  %v2937_v30 = vadd.f32 -8.0, %v1319_v28  ;;  %v1069_v18 = vmul.f32 %v4484_v9, %v4484_v9 }
 0x2e8   :  { %v1767_v55 = vsel %vm1703_vm6, %v2809_v0, %v1575_v53  ;;  %v2744_v23 = vadd.f32 -2.0, %v1382_v44  ;;  %2453 = vst [vmem:[#allocation10 + $0x1a0] sm:$0xff] %v2389_v20  ;;  %v2808_v36 = vadd.f32 -4.0, %v1318_v10  ;;  %vm2086_vm12 = vcmp.le.f32.partialorder %v4448_v37, -1.0 }
 0x2e9   :  { %v1959_v42 = vsel %vm1895_vm7, %v2873_v51, %v1767_v55  ;;  %v1256_v52 = vmul.f32 8.0, %v1192_v5  ;;  %2328 = vst [vmem:[#allocation9 + $0x1b8] sm:$0xff] %v2264_v35  ;;  %v2872_v3 = vadd.f32 -6.0, %v1382_v44  ;;  %v2687_v43 = vadd.f32 -1.0, %v1069_v18 }
 0x2ea   :  { %v2151_v62 = vsel %vm2087_vm8, %v2937_v30, %v1959_v42  ;;  %v1574_v57 = vsel %vm1510_vm9, %v2744_v23, %v1318_v10  ;;  %v2936_v31 = vadd.f32 -8.0, %v1318_v10  ;;  %v2269_v15 = vmul.f32 %v4484_v9, %v3922_v11 }
 0x2eb   :  { %v2391_v34 = vmul.f32 %v3843_v38, %v2151_v62  ;;  %v1766_v1 = vsel %vm1702_vm10, %v2808_v36, %v1574_v57  ;;  %v1320_v60 = vadd.f32 1.0, %v1256_v52  ;;  %v1197_v29 = vmul.f32 %v2687_v43, %v1069_v18 }
 0x2ec   :  { %v1958_v56 = vsel %vm1894_vm11, %v2872_v3, %v1766_v1  ;;  %v1071_v47 = vmul.f32 %v4490_v40, %v4490_v40  ;;  %v4522_v58 = vclamps-f32 %v4085_v39, 1.0  ;;  %2333 = vst [vmem:[#allocation9 + $0x1e0] sm:$0xff] %v2269_v15  ;;  %vm1512_vm13 = vcmp.le.f32.partialorder %v4472_v8, 0.70710677 }
 0x2ed   :  { %2455 = vst [vmem:[#allocation10 + $0x1b0] sm:$0xff] %v2391_v34  ;;  %v2150_v4 = vsel %vm2086_vm12, %v2936_v31, %v1958_v56  ;;  %v1384_v46 = vsub.f32 0.0, %v1320_v60  ;;  %v1261_v13 = vmul.f32 8.0, %v1197_v29  ;;  %v2810_v54 = vadd.f32 -4.0, %v1320_v60 }
 0x2ee   :  { %v2390_v7 = vmul.f32 %v3843_v38, %v2150_v4  ;;  %v2689_v26 = vadd.f32 -1.0, %v1071_v47  ;;  %v2271_v37 = vmul.f32 %v4490_v40, %v3922_v11  ;;  %vm1704_vm14 = vcmp.le.f32.partialorder %v4472_v8, 1.7948966e-09 }
 0x2ef   :  { %v2746_v24 = vadd.f32 -2.0, %v1384_v46  ;;  %v1325_v27 = vadd.f32 1.0, %v1261_v13  ;;  %v2874_v39 = vadd.f32 -6.0, %v1384_v46  ;;  %v1070_v6 = vmul.f32 %v4522_v58, %v4522_v58 }
 0x2f0   :  { %2454 = vst [vmem:[#allocation10 + $0x1a8] sm:$0xff] %v2390_v7  ;;  %v1199_v25 = vmul.f32 %v2689_v26, %v1071_v47  ;;  %vm1896_vm15 = vcmp.le.f32.partialorder %v4472_v8, -0.70710677  ;;  %v2938_v17 = vadd.f32 -8.0, %v1320_v60  ;;  %2335 = vst [vmem:[#allocation9 + $0x1f0] sm:$0xff] %v2271_v37  ;;  %vm2088_vm0 = vcmp.le.f32.partialorder %v4472_v8, -1.0 }
 0x2f1   :  { %v1576_v59 = vsel %vm1512_vm13, %v2746_v24, %v1320_v60  ;;  %v1389_v63 = vsub.f32 0.0, %v1325_v27  ;;  %v2688_v2 = vadd.f32 -1.0, %v1070_v6  ;;  %vm1517_vm1 = vcmp.le.f32.partialorder %v4484_v9, 0.70710677 }
 0x2f2   :  { %v1768_v19 = vsel %vm1704_vm14, %v2810_v54, %v1576_v59  ;;  %v1263_v28 = vmul.f32 8.0, %v1199_v25  ;;  %v2815_v32 = vadd.f32 -4.0, %v1325_v27  ;;  %v2270_v49 = vmul.f32 %v4522_v58, %v3922_v11 }
 0x2f3   :  { %v1960_v33 = vsel %vm1896_vm15, %v2874_v39, %v1768_v19  ;;  %v2751_v14 = vadd.f32 -2.0, %v1389_v63  ;;  %v1198_v22 = vmul.f32 %v2688_v2, %v1070_v6  ;;  %vm1709_vm2 = vcmp.le.f32.partialorder %v4484_v9, 1.7948966e-09 }
 0x2f4   :  { %v2152_v50 = vsel %vm2088_vm0, %v2938_v17, %v1960_v33  ;;  %v1327_v41 = vadd.f32 1.0, %v1263_v28  ;;  %v2879_v45 = vadd.f32 -6.0, %v1389_v63  ;;  %v4539_v8 = vclamps-f32 %v4103_v12, 1.0  ;;  %2334 = vst [vmem:[#allocation9 + $0x1e8] sm:$0xff] %v2270_v49 }
 0x2f5   :  { %v2392_v21 = vmul.f32 %v3843_v38, %v2152_v50  ;;  %v1581_v10 = vsel %vm1517_vm1, %v2751_v14, %v1325_v27  ;;  %vm1901_vm3 = vcmp.le.f32.partialorder %v4484_v9, -0.70710677  ;;  %v2943_v16 = vadd.f32 -8.0, %v1325_v27 }
 0x2f6   :  { %v1773_v61 = vsel %vm1709_vm2, %v2815_v32, %v1581_v10  ;;  %v1391_v48 = vsub.f32 0.0, %v1327_v41  ;;  %vm2093_vm4 = vcmp.le.f32.partialorder %v4484_v9, -1.0  ;;  %v1262_v0 = vmul.f32 8.0, %v1198_v22 }
 0x2f7   :  { %2456 = vst [vmem:[#allocation10 + $0x1b8] sm:$0xff] %v2392_v21  ;;  %v1965_v38 = vsel %vm1901_vm3, %v2879_v45, %v1773_v61  ;;  %v1072_v51 = vmul.f32 %v4539_v8, %v4539_v8  ;;  %vm1519_vm5 = vcmp.le.f32.partialorder %v4490_v40, 0.70710677  ;;  %v2817_v53 = vadd.f32 -4.0, %v1327_v41 }
 0x2f8   :  { %v2157_v44 = vsel %vm2093_vm4, %v2943_v16, %v1965_v38  ;;  %v2753_v20 = vadd.f32 -2.0, %v1391_v48  ;;  %v1326_v5 = vadd.f32 1.0, %v1262_v0  ;;  %vm1711_vm6 = vcmp.le.f32.partialorder %v4490_v40, 1.7948966e-09 }
 0x2f9   :  { %v2397_v12 = vmul.f32 %v3922_v11, %v2157_v44  ;;  %v2690_v35 = vadd.f32 -1.0, %v1072_v51  ;;  %v2881_v30 = vadd.f32 -6.0, %v1391_v48  ;;  %v2272_v9 = vmul.f32 %v4539_v8, %v3922_v11 }
 0x2fa   :  { %v1583_v55 = vsel %vm1519_vm5, %v2753_v20, %v1327_v41  ;;  %vm1903_vm7 = vcmp.le.f32.partialorder %v4490_v40, -0.70710677  ;;  %v2945_v18 = vadd.f32 -8.0, %v1327_v41  ;;  %v1390_v42 = vsub.f32 0.0, %v1326_v5 }
 0x2fb   :  { %2461 = vst [vmem:[#allocation10 + $0x1e0] sm:$0xff] %v2397_v12  ;;  %v1775_v23 = vsel %vm1711_vm6, %v2817_v53, %v1583_v55  ;;  %vm2095_vm8 = vcmp.le.f32.partialorder %v4490_v40, -1.0  ;;  %v1200_v52 = vmul.f32 %v2690_v35, %v1072_v51  ;;  %2336 = vst [vmem:[#allocation9 + $0x1f8] sm:$0xff] %v2272_v9 }
 0x2fc   :  { %v1967_v36 = vsel %vm1903_vm7, %v2881_v30, %v1775_v23  ;;  %v2752_v57 = vadd.f32 -2.0, %v1390_v42 }
 0x2fd   :  { %v2159_v62 = vsel %vm2095_vm8, %v2945_v18, %v1967_v36 }
 0x2fe   :  { %3047 = shalt.err (!%p3044_p6)
}
 0x2ff   :  { %s3048_s16 = scalar_lea.hbm %s4602_s2, 8192 }
 0x300   :  { %p3049_p7 = scmp.ne.s32.totalorder %s4602_s2, %s3048_s16  ;;  %p3052_p8 = scmp.lt.u32.totalorder %s3048_s16, %s4602_s2 }
 0x302   :  { %p3054_p9 = pnand %p3052_p8, %p3049_p7 }
 0x304   :  { %3057 = shalt.err (!%p3054_p9)
}
 0x305   :  { %s3096_s21 = smov 1024   ;;  %s3097_s22 = smov 64   ;;  %v2399_v40 = vmul.f32 %v3922_v11, %v2159_v62  ;;  %vm1518_vm9 = vcmp.le.f32.partialorder %v4522_v58, 0.70710677  ;;  %v2816_v3 = vadd.f32 -4.0, %v1326_v5  ;;  %v1264_v43 = vmul.f32 8.0, %v1200_v52 }
 0x306   :  { %2476 = dma.vmem_to_hbm [thread:$0]  %s4550_s12, 8192, %s4602_s2, [#allocation6], %s3096_s21, %s3096_s21, %s3097_s22   ;;  %v1582_v34 = vsel %vm1518_vm9, %v2752_v57, %v1326_v5  ;;  %vm1710_vm10 = vcmp.le.f32.partialorder %v4522_v58, 1.7948966e-09  ;;  %v2880_v1 = vadd.f32 -6.0, %v1390_v42  ;;  %v2944_v60 = vadd.f32 -8.0, %v1326_v5 }
 0x307   :  { %2463 = vst [vmem:[#allocation10 + $0x1f0] sm:$0xff] %v2399_v40  ;;  %v1774_v31 = vsel %vm1710_vm10, %v2816_v3, %v1582_v34  ;;  %vm1902_vm11 = vcmp.le.f32.partialorder %v4522_v58, -0.70710677  ;;  %v1328_v56 = vadd.f32 1.0, %v1264_v43  ;;  %vm2094_vm12 = vcmp.le.f32.partialorder %v4522_v58, -1.0  ;;  %s3098_s2 = smov [#allocation10]  }
 0x308   :  { %v1966_v29 = vsel %vm1902_vm11, %v2880_v1, %v1774_v31  ;;  %vm1520_vm13 = vcmp.le.f32.partialorder %v4539_v8, 0.70710677  ;;  %vm1712_vm14 = vcmp.le.f32.partialorder %v4539_v8, 1.7948966e-09  ;;  %vm1904_vm15 = vcmp.le.f32.partialorder %v4539_v8, -0.70710677 }
 0x309   :  { %v2158_v15 = vsel %vm2094_vm12, %v2944_v60, %v1966_v29  ;;  %v1392_v47 = vsub.f32 0.0, %v1328_v56  ;;  %v2818_v7 = vadd.f32 -4.0, %v1328_v56  ;;  %v2946_v54 = vadd.f32 -8.0, %v1328_v56  ;;  %s2482_s25 = sshll.u32 %s3098_s2, 4  ;;  %s2483_s25 = int_to_ptr.vmem [resolvable:$true] %s2482_s25 }
 0x30a   :  { %v2398_v4 = vmul.f32 %v3922_v11, %v2158_v15  ;;  %vm2096_vm0 = vcmp.le.f32.partialorder %v4539_v8, -1.0  ;;  %s3058_s26 = scalar_lea.vmem %s2483_s25, 8192  ;;  %p3063_p11 = scmp.lt.s32.totalorder %s2483_s25, %s2483_s25 }
 0x30b   :  { %v2754_v46 = vadd.f32 -2.0, %v1392_v47  ;;  %v2882_v26 = vadd.f32 -6.0, %v1392_v47  ;;  %p3059_p10 = scmp.ne.s32.totalorder %s2483_s25, %s3058_s26  ;;  %p3064_p12 = scmp.lt.s32.totalorder %s3058_s26, %s3058_s26 }
 0x30c   :  { %2462 = vst [vmem:[#allocation10 + $0x1e8] sm:$0xff] %v2398_v4 }
 0x30d   :  { %v1584_v13 = vsel %vm1520_vm13, %v2754_v46, %v1328_v56  ;;  %p3065_p13 = por %p3064_p12, %p3063_p11 }
 0x30e   :  { %v1776_v24 = vsel %vm1712_vm14, %v2818_v7, %v1584_v13 }
 0x30f   :  { %v1968_v58 = vsel %vm1904_vm15, %v2882_v26, %v1776_v24  ;;  %p3066_p0 = pnand %p3065_p13, %p3059_p10 }
 0x310   :  { %v2160_v27 = vsel %vm2096_vm0, %v2946_v54, %v1968_v58 }
 0x311   :  { %v2400_v25 = vmul.f32 %v3922_v11, %v2160_v27 }
 0x313   :  { %2464 = vst [vmem:[#allocation10 + $0x1f8] sm:$0xff] %v2400_v25 }
 0x314   :  { %3069 = shalt.err (!%p3066_p0)
}
 0x315   :  { %s3070_s29 = scalar_lea.hbm %s4603_s3, 8192 }
 0x316   :  { %p3071_p1 = scmp.ne.s32.totalorder %s4603_s3, %s3070_s29  ;;  %p3074_p2 = scmp.lt.u32.totalorder %s3070_s29, %s4603_s3 }
 0x318   :  { %p3076_p3 = pnand %p3074_p2, %p3071_p1 }
 0x31a   :  { %3079 = shalt.err (!%p3076_p3)
}
 0x31b   :  { %2488 = dma.vmem_to_hbm [thread:$0]  %s2483_s25, 8192, %s4603_s3, [#allocation11], %s3096_s21, %s3096_s21, %s3097_s22  }
 0x31c   :  { %3084 = dma.done.wait [#allocation6], 8192  }
 0x31d   :  { %3085 = vsyncadd [#allocation6], 4294959104 }
 0x31e   :  { %3086 = dma.done.wait [#allocation11], 8192  }
 0x31f   :  { %3087 = vsyncadd [#allocation11], 4294959104 }
 0x320   :  { %2495 = vsyncpa [#allocation5], 1 }
 0x321   :  { %2496 = vsyncpa [#allocation8], 1 }
 0x322   :  { %2497 = vsyncpa [#allocation6], 1 }
 0x323   :  { %2498 = vsyncpa [#allocation11], 1 }

</bundles_post_ra>
